<compile_context>
chip_gen: v7x
topology: tpu7x:2x2x1
jax: 0.10.0
libtpu: 0.0.40
codegen_flags: <defaults>
</compile_context>

<pallas_src>
import math
import functools

import numpy as np
import jax
import jax.numpy as jnp
from jax.experimental import pallas as pl
from jax.experimental.pallas import tpu as pltpu


def _encoder_gru_kernel(x_ref, *refs):
  """Fused multi-layer GRU forward.

  x_ref:        (B, T, input_size)
  per layer:    wih (D_in, 3G), whh (G, 3G), b0 (1, 3G), bhn (1, G)
                where G = round_up(H, 128); gate g occupies lanes [g*G, g*G+H)
                and all padded lanes/rows are zero.  b0 already contains
                b_ih + [b_hr, b_hz, 0]; bhn is b_hn.
  encoded_ref:  (B, T, H)   last layer's hidden sequence
  hidden_ref:   (B, L, H)   final hidden state of every layer (batch-major so a
                            per-batch grid BlockSpec is legal; transposed to
                            (L, B, H) outside the kernel)
  """
  num_layers = (len(refs) - 2) // 4
  param_refs = refs[:4 * num_layers]
  encoded_ref = refs[4 * num_layers]
  hidden_ref = refs[4 * num_layers + 1]

  B, T, D0 = x_ref.shape
  H = encoded_ref.shape[2]
  G = param_refs[1].shape[1] // 3          # padded gate stride (>= 128)

  # Time-major, flattened input so each step reads a contiguous leading slice.
  x = x_ref[...].astype(jnp.float32)                       # (B, T, D0)
  layer_in = jnp.transpose(x, (1, 0, 2)).reshape(T * B, D0)  # (T*B, D0)

  h_finals = []
  for layer in range(num_layers):
    wih = param_refs[4 * layer + 0][...]   # (D_in, 3G)
    whh = param_refs[4 * layer + 1][...]   # (G, 3G)
    b0 = param_refs[4 * layer + 2][...]    # (1, 3G)  b_ih + [b_hr, b_hz, 0]
    bhn = param_refs[4 * layer + 3][...]   # (1, G)   b_hn

    # Hoisted input projection for ALL time steps (one tall MXU matmul per
    # layer) with the foldable biases added once.
    gi_all = (
        jnp.dot(layer_in, wih, preferred_element_type=jnp.float32) + b0
    )                                      # (T*B, 3G), time-major rows

    # Hoist the (1,G)->(B,G) broadcast of b_hn out of the recurrence.
    bhn_b = jnp.broadcast_to(bhn, (B, G))

    h = jnp.zeros((B, G), jnp.float32)     # padded lanes [H:G) stay exactly 0
    hs = []
    for t in range(T):                     # static unroll (T small)
      gi = gi_all[t * B:(t + 1) * B]       # (B, 3G) contiguous slice
      gh = jnp.dot(h, whh, preferred_element_type=jnp.float32)   # (B, 3G)
      # Gate slices are full-vreg, lane-offset-0 slices (G is a multiple of 128).
      r = jax.nn.sigmoid(gi[:, 0:G] + gh[:, 0:G])
      z = jax.nn.sigmoid(gi[:, G:2 * G] + gh[:, G:2 * G])
      n = jnp.tanh(gi[:, 2 * G:3 * G] + r * (gh[:, 2 * G:3 * G] + bhn_b))
      h = (1.0 - z) * n + z * h
      hs.append(h)

    h_finals.append(h[:, :H])
    if layer + 1 < num_layers:
      # Next layer's input: time-major (T*B, G), stays a VMEM value (no ref
      # round-trip).  Padded lanes are zero and the next wih has zero rows
      # there, so no slicing is needed.
      layer_in = jnp.concatenate(hs, axis=0)
    else:
      # Single slab store of the last layer's full hidden sequence.
      encoded_ref[...] = jnp.stack(hs, axis=1)[:, :, :H].astype(encoded_ref.dtype)

  hidden_ref[...] = jnp.stack(h_finals, axis=1).astype(hidden_ref.dtype)


def _use_batch_grid(batch):
  """Batch-parallel grid only pays off on chips with 2 TensorCores (v7x)."""
  if batch < 2:
    return False
  try:
    kind = jax.devices()[0].device_kind.lower()
  except Exception:
    return False
  return ("v7" in kind) or ("tpu7" in kind)


@functools.partial(jax.jit, static_argnames=("hidden_size", "use_batch_grid"))
def _encoder_gru_call(x, flat, *, hidden_size, use_batch_grid):
  B, T, D = x.shape
  num_layers = len(flat) // 4
  H = hidden_size
  x32 = x.astype(jnp.float32)

  out_shape = (
      jax.ShapeDtypeStruct((B, T, H), jnp.float32),
      jax.ShapeDtypeStruct((B, num_layers, H), jnp.float32),
  )
  # Explicit VMEM budget (scaling safeguard for v7x's 64 MiB VMEM); current
  # resident footprint is a few KB.
  vmem_limit = 32 * 1024 * 1024

  if use_batch_grid:
    # v7x: shard independent batch elements across the two TensorCores.
    in_specs = [pl.BlockSpec((1, T, D), lambda b: (b, 0, 0))]
    in_specs += [pl.BlockSpec(p.shape, lambda b: (0, 0)) for p in flat]
    out_specs = (
        pl.BlockSpec((1, T, H), lambda b: (b, 0, 0)),
        pl.BlockSpec((1, num_layers, H), lambda b: (b, 0, 0)),
    )
    encoded, hidden_blh = pl.pallas_call(
        _encoder_gru_kernel,
        out_shape=out_shape,
        grid=(B,),
        in_specs=in_specs,
        out_specs=out_specs,
        compiler_params=pltpu.CompilerParams(
            dimension_semantics=("parallel",),
            vmem_limit_bytes=vmem_limit),
    )(x32, *flat)
  else:
    # 1-TC chips (v5e/v6e): single grid-free invocation, everything VMEM-resident.
    vmem = pl.BlockSpec(memory_space=pltpu.MemorySpace.VMEM)
    encoded, hidden_blh = pl.pallas_call(
        _encoder_gru_kernel,
        out_shape=out_shape,
        in_specs=[vmem] * (1 + len(flat)),
        out_specs=(vmem, vmem),
        compiler_params=pltpu.CompilerParams(vmem_limit_bytes=vmem_limit),
    )(x32, *flat)

  # (B, L, H) -> (L, B, H) to match PyTorch's hidden layout (outside kernel).
  return encoded, jnp.transpose(hidden_blh, (1, 0, 2))


def encoder_gru_forward(x, packed_params, hidden_size):
  """x: (B, T, input_size) f32; packed_params from pack_gru_params.
  Returns (encoded_input (B, T, H), hidden (num_layers, B, H))."""
  flat = tuple(p for layer_p in packed_params for p in layer_p)
  return _encoder_gru_call(
      x, flat, hidden_size=hidden_size, use_batch_grid=_use_batch_grid(x.shape[0]))


def pack_gru_params(params, input_size, hidden_size):
  """Pack PyTorch-layout GRU params into 128-lane-aligned, bias-folded form.

  Per layer input: wih (3H, D_in), whh (3H, H), bih (3H,), bhh (3H,)   [r,z,n]
  Per layer output:
    wih_p (D_in_pad, 3G), whh_p (G, 3G), b0 (1, 3G) = b_ih + [b_hr, b_hz, 0],
    bhn (1, G) = b_hn,  with G = round_up(H, 128); padded rows/lanes are zero.
  """
  H = hidden_size
  G = ((H + 127) // 128) * 128
  packed = []
  for layer, (wih, whh, bih, bhh) in enumerate(params):
    d_in = input_size if layer == 0 else hidden_size
    d_in_pad = d_in if layer == 0 else G      # layers>0 consume the padded h
    wih_p = jnp.zeros((d_in_pad, 3 * G), jnp.float32)
    whh_p = jnp.zeros((G, 3 * G), jnp.float32)
    b0 = jnp.zeros((1, 3 * G), jnp.float32)
    bhn = jnp.zeros((1, G), jnp.float32)
    for g in range(3):
      wih_p = wih_p.at[:d_in, g * G:g * G + H].set(wih[g * H:(g + 1) * H, :].T)
      whh_p = whh_p.at[:H, g * G:g * G + H].set(whh[g * H:(g + 1) * H, :].T)
    b0 = b0.at[0, 0 * G:0 * G + H].set(bih[0:H] + bhh[0:H])          # r
    b0 = b0.at[0, 1 * G:1 * G + H].set(bih[H:2 * H] + bhh[H:2 * H])  # z
    b0 = b0.at[0, 2 * G:2 * G + H].set(bih[2 * H:3 * H])             # n (b_in only)
    bhn = bhn.at[0, :H].set(bhh[2 * H:3 * H])                        # b_hn
    packed.append((wih_p, whh_p, b0, bhn))
  return packed


def init_encoder_gru_params(key, input_size, hidden_size, num_layers):
  """Deterministic init mirroring the module's __init__ (PyTorch layout).

  Layer 0 weight_ih/weight_hh: xavier_uniform with gain=sqrt(2) (as in the
  module); other layers / all biases: PyTorch GRU default U(-1/sqrt(H), 1/sqrt(H)).
  """
  params = []
  stdv = 1.0 / math.sqrt(hidden_size)
  for layer in range(num_layers):
    d_in = input_size if layer == 0 else hidden_size
    key, k1, k2, k3, k4 = jax.random.split(key, 5)
    if layer == 0:
      gain = math.sqrt(2.0)
      bound_ih = gain * math.sqrt(6.0 / (3 * hidden_size + d_in))
      bound_hh = gain * math.sqrt(6.0 / (3 * hidden_size + hidden_size))
      wih = jax.random.uniform(k1, (3 * hidden_size, d_in),
                               jnp.float32, -bound_ih, bound_ih)
      whh = jax.random.uniform(k2, (3 * hidden_size, hidden_size),
                               jnp.float32, -bound_hh, bound_hh)
    else:
      wih = jax.random.uniform(k1, (3 * hidden_size, d_in),
                               jnp.float32, -stdv, stdv)
      whh = jax.random.uniform(k2, (3 * hidden_size, hidden_size),
                               jnp.float32, -stdv, stdv)
    bih = jax.random.uniform(k3, (3 * hidden_size,), jnp.float32, -stdv, stdv)
    bhh = jax.random.uniform(k4, (3 * hidden_size,), jnp.float32, -stdv, stdv)
    params.append((wih, whh, bih, bhh))
  return params


def _gru_reference(x, params):
  """Pure-JAX reference (PyTorch GRU math, HIGHEST-precision matmuls)."""
  H = params[0][1].shape[1]                 # whh is (3H, H)
  hp = jax.lax.Precision.HIGHEST
  seq = jnp.transpose(x, (1, 0, 2)).astype(jnp.float32)   # (T, B, D)
  hiddens = []
  for (wih, whh, bih, bhh) in params:

    def step(h, x_t, wih=wih, whh=whh, bih=bih, bhh=bhh):
      gi = jnp.dot(x_t, wih.T, precision=hp) + bih
      gh = jnp.dot(h, whh.T, precision=hp) + bhh
      r = jax.nn.sigmoid(gi[:, :H] + gh[:, :H])
      z = jax.nn.sigmoid(gi[:, H:2 * H] + gh[:, H:2 * H])
      n = jnp.tanh(gi[:, 2 * H:] + r * gh[:, 2 * H:])
      h_new = (1.0 - z) * n + z * h
      return h_new, h_new

    h0 = jnp.zeros((x.shape[0], H), jnp.float32)
    h_last, outs = jax.lax.scan(step, h0, seq)
    hiddens.append(h_last)
    seq = outs
  return jnp.transpose(seq, (1, 0, 2)), jnp.stack(hiddens, axis=0)


if __name__ == "__main__":
  # Shapes consistent with the module's forward: input (B, T, input_size);
  # EncoderGRU(input_size=4, hidden_size=32, num_layers=2, isCuda=False)
  B, T, input_size, hidden_size, num_layers = 2, 8, 4, 32, 2

  key = jax.random.PRNGKey(0)
  kx, kp = jax.random.split(key)
  x = jax.random.normal(kx, (B, T, input_size), dtype=jnp.float32)

  params = init_encoder_gru_params(kp, input_size, hidden_size, num_layers)
  packed = pack_gru_params(params, input_size, hidden_size)

  encoded, hidden = encoder_gru_forward(x, packed, hidden_size)
  jax.block_until_ready((encoded, hidden))

  assert encoded.shape == (B, T, hidden_size)
  assert hidden.shape == (num_layers, B, hidden_size)

  # Correctness check against a pure-JAX scan reference (all-f32 path ->
  # tightened tolerance vs the previous 1e-2).
  enc_ref, hid_ref = _gru_reference(x, params)
  np.testing.assert_allclose(np.asarray(encoded), np.asarray(enc_ref),
                             atol=1e-4, rtol=1e-4)
  np.testing.assert_allclose(np.asarray(hidden), np.asarray(hid_ref),
                             atol=1e-4, rtol=1e-4)

  print("KERNEL_OK")
</pallas_src>

<mosaic_0001>
module attributes {stable_mosaic.version = 11 : i64} {
  func.func @_encoder_gru_kernel(%arg0: memref<2x8x4xf32, #tpu.memory_space<vmem>>, %arg1: memref<4x384xf32, #tpu.memory_space<vmem>>, %arg2: memref<128x384xf32, #tpu.memory_space<vmem>>, %arg3: memref<1x384xf32, #tpu.memory_space<vmem>>, %arg4: memref<1x128xf32, #tpu.memory_space<vmem>>, %arg5: memref<128x384xf32, #tpu.memory_space<vmem>>, %arg6: memref<128x384xf32, #tpu.memory_space<vmem>>, %arg7: memref<1x384xf32, #tpu.memory_space<vmem>>, %arg8: memref<1x128xf32, #tpu.memory_space<vmem>>, %arg9: memref<2x8x32xf32, #tpu.memory_space<vmem>>, %arg10: memref<2x2x32xf32, #tpu.memory_space<vmem>>) attributes {dimension_semantics = [], scalar_prefetch = 0 : i64, scratch_operands = 0 : i64, tpu.core_type = #tpu.core_type<tc>} {
    %c0 = arith.constant 0 : index
    %c0_0 = arith.constant 0 : index
    %c0_1 = arith.constant 0 : index
    %0 = vector.load %arg0[%c0, %c0_0, %c0_1] : memref<2x8x4xf32, #tpu.memory_space<vmem>>, vector<2x8x4xf32>
    %1 = tpu.transpose %0, [1, 0, 2] : vector<2x8x4xf32> -> vector<8x2x4xf32>
    %2 = vector.shape_cast %1 : vector<8x2x4xf32> to vector<16x4xf32>
    %c0_2 = arith.constant 0 : index
    %c0_3 = arith.constant 0 : index
    %3 = vector.load %arg1[%c0_2, %c0_3] : memref<4x384xf32, #tpu.memory_space<vmem>>, vector<4x384xf32>
    %c0_4 = arith.constant 0 : index
    %c0_5 = arith.constant 0 : index
    %4 = vector.load %arg2[%c0_4, %c0_5] : memref<128x384xf32, #tpu.memory_space<vmem>>, vector<128x384xf32>
    %c0_6 = arith.constant 0 : index
    %c0_7 = arith.constant 0 : index
    %5 = vector.load %arg3[%c0_6, %c0_7] : memref<1x384xf32, #tpu.memory_space<vmem>>, vector<1x384xf32>
    %c0_8 = arith.constant 0 : index
    %c0_9 = arith.constant 0 : index
    %6 = vector.load %arg4[%c0_8, %c0_9] : memref<1x128xf32, #tpu.memory_space<vmem>>, vector<1x128xf32>
    %cst = arith.constant dense<0.000000e+00> : vector<16x384xf32>
    %7 = tpu.matmul %2, %3, %cst {dimension_numbers = #tpu.dot_dimension_numbers<[1], [0], [0], [1], [0, 0, 1, 1], [], []>} : vector<16x4xf32>, vector<4x384xf32>, vector<16x384xf32> -> vector<16x384xf32>
    %8 = vector.broadcast %5 : vector<1x384xf32> to vector<16x384xf32>
    %9 = arith.addf %7, %8 : vector<16x384xf32>
    %10 = vector.shape_cast %6 : vector<1x128xf32> to vector<1x128xf32>
    %11 = vector.broadcast %10 : vector<1x128xf32> to vector<2x128xf32>
    %cst_10 = arith.constant 0.000000e+00 : f32
    %12 = vector.broadcast %cst_10 : f32 to vector<2x128xf32>
    %13 = vector.extract_strided_slice %9 {offsets = [0, 0], sizes = [2, 384], strides = [1, 1]} : vector<16x384xf32> to vector<2x384xf32>
    %cst_11 = arith.constant dense<0.000000e+00> : vector<2x384xf32>
    %14 = tpu.matmul %12, %4, %cst_11 {dimension_numbers = #tpu.dot_dimension_numbers<[1], [0], [0], [1], [0, 0, 1, 1], [], []>} : vector<2x128xf32>, vector<128x384xf32>, vector<2x384xf32> -> vector<2x384xf32>
    %15 = vector.extract_strided_slice %13 {offsets = [0, 0], sizes = [2, 128], strides = [1, 1]} : vector<2x384xf32> to vector<2x128xf32>
    %16 = vector.extract_strided_slice %14 {offsets = [0, 0], sizes = [2, 128], strides = [1, 1]} : vector<2x384xf32> to vector<2x128xf32>
    %17 = arith.addf %15, %16 : vector<2x128xf32>
    %18 = arith.negf %17 : vector<2x128xf32>
    %19 = math.exp %18 : vector<2x128xf32>
    %cst_12 = arith.constant 1.000000e+00 : f32
    %20 = vector.broadcast %cst_12 : f32 to vector<2x128xf32>
    %21 = arith.addf %20, %19 : vector<2x128xf32>
    %22 = arith.divf %20, %21 : vector<2x128xf32>
    %23 = vector.extract_strided_slice %13 {offsets = [0, 128], sizes = [2, 128], strides = [1, 1]} : vector<2x384xf32> to vector<2x128xf32>
    %24 = vector.extract_strided_slice %14 {offsets = [0, 128], sizes = [2, 128], strides = [1, 1]} : vector<2x384xf32> to vector<2x128xf32>
    %25 = arith.addf %23, %24 : vector<2x128xf32>
    %26 = arith.negf %25 : vector<2x128xf32>
    %27 = math.exp %26 : vector<2x128xf32>
    %cst_13 = arith.constant 1.000000e+00 : f32
    %28 = vector.broadcast %cst_13 : f32 to vector<2x128xf32>
    %29 = arith.addf %28, %27 : vector<2x128xf32>
    %30 = arith.divf %28, %29 : vector<2x128xf32>
    %31 = vector.extract_strided_slice %13 {offsets = [0, 256], sizes = [2, 128], strides = [1, 1]} : vector<2x384xf32> to vector<2x128xf32>
    %32 = vector.extract_strided_slice %14 {offsets = [0, 256], sizes = [2, 128], strides = [1, 1]} : vector<2x384xf32> to vector<2x128xf32>
    %33 = arith.addf %32, %11 : vector<2x128xf32>
    %34 = arith.mulf %22, %33 : vector<2x128xf32>
    %35 = arith.addf %31, %34 : vector<2x128xf32>
    %36 = math.tanh %35 : vector<2x128xf32>
    %cst_14 = arith.constant 1.000000e+00 : f32
    %37 = vector.broadcast %cst_14 : f32 to vector<2x128xf32>
    %38 = arith.subf %37, %30 : vector<2x128xf32>
    %39 = arith.mulf %38, %36 : vector<2x128xf32>
    %40 = arith.mulf %30, %12 : vector<2x128xf32>
    %41 = arith.addf %39, %40 : vector<2x128xf32>
    %42 = vector.extract_strided_slice %9 {offsets = [2, 0], sizes = [2, 384], strides = [1, 1]} : vector<16x384xf32> to vector<2x384xf32>
    %cst_15 = arith.constant dense<0.000000e+00> : vector<2x384xf32>
    %43 = tpu.matmul %41, %4, %cst_15 {dimension_numbers = #tpu.dot_dimension_numbers<[1], [0], [0], [1], [0, 0, 1, 1], [], []>} : vector<2x128xf32>, vector<128x384xf32>, vector<2x384xf32> -> vector<2x384xf32>
    %44 = vector.extract_strided_slice %42 {offsets = [0, 0], sizes = [2, 128], strides = [1, 1]} : vector<2x384xf32> to vector<2x128xf32>
    %45 = vector.extract_strided_slice %43 {offsets = [0, 0], sizes = [2, 128], strides = [1, 1]} : vector<2x384xf32> to vector<2x128xf32>
    %46 = arith.addf %44, %45 : vector<2x128xf32>
    %47 = arith.negf %46 : vector<2x128xf32>
    %48 = math.exp %47 : vector<2x128xf32>
    %cst_16 = arith.constant 1.000000e+00 : f32
    %49 = vector.broadcast %cst_16 : f32 to vector<2x128xf32>
    %50 = arith.addf %49, %48 : vector<2x128xf32>
    %51 = arith.divf %49, %50 : vector<2x128xf32>
    %52 = vector.extract_strided_slice %42 {offsets = [0, 128], sizes = [2, 128], strides = [1, 1]} : vector<2x384xf32> to vector<2x128xf32>
    %53 = vector.extract_strided_slice %43 {offsets = [0, 128], sizes = [2, 128], strides = [1, 1]} : vector<2x384xf32> to vector<2x128xf32>
    %54 = arith.addf %52, %53 : vector<2x128xf32>
    %55 = arith.negf %54 : vector<2x128xf32>
    %56 = math.exp %55 : vector<2x128xf32>
    %cst_17 = arith.constant 1.000000e+00 : f32
    %57 = vector.broadcast %cst_17 : f32 to vector<2x128xf32>
    %58 = arith.addf %57, %56 : vector<2x128xf32>
    %59 = arith.divf %57, %58 : vector<2x128xf32>
    %60 = vector.extract_strided_slice %42 {offsets = [0, 256], sizes = [2, 128], strides = [1, 1]} : vector<2x384xf32> to vector<2x128xf32>
    %61 = vector.extract_strided_slice %43 {offsets = [0, 256], sizes = [2, 128], strides = [1, 1]} : vector<2x384xf32> to vector<2x128xf32>
    %62 = arith.addf %61, %11 : vector<2x128xf32>
    %63 = arith.mulf %51, %62 : vector<2x128xf32>
    %64 = arith.addf %60, %63 : vector<2x128xf32>
    %65 = math.tanh %64 : vector<2x128xf32>
    %cst_18 = arith.constant 1.000000e+00 : f32
    %66 = vector.broadcast %cst_18 : f32 to vector<2x128xf32>
    %67 = arith.subf %66, %59 : vector<2x128xf32>
    %68 = arith.mulf %67, %65 : vector<2x128xf32>
    %69 = arith.mulf %59, %41 : vector<2x128xf32>
    %70 = arith.addf %68, %69 : vector<2x128xf32>
    %71 = vector.extract_strided_slice %9 {offsets = [4, 0], sizes = [2, 384], strides = [1, 1]} : vector<16x384xf32> to vector<2x384xf32>
    %cst_19 = arith.constant dense<0.000000e+00> : vector<2x384xf32>
    %72 = tpu.matmul %70, %4, %cst_19 {dimension_numbers = #tpu.dot_dimension_numbers<[1], [0], [0], [1], [0, 0, 1, 1], [], []>} : vector<2x128xf32>, vector<128x384xf32>, vector<2x384xf32> -> vector<2x384xf32>
    %73 = vector.extract_strided_slice %71 {offsets = [0, 0], sizes = [2, 128], strides = [1, 1]} : vector<2x384xf32> to vector<2x128xf32>
    %74 = vector.extract_strided_slice %72 {offsets = [0, 0], sizes = [2, 128], strides = [1, 1]} : vector<2x384xf32> to vector<2x128xf32>
    %75 = arith.addf %73, %74 : vector<2x128xf32>
    %76 = arith.negf %75 : vector<2x128xf32>
    %77 = math.exp %76 : vector<2x128xf32>
    %cst_20 = arith.constant 1.000000e+00 : f32
    %78 = vector.broadcast %cst_20 : f32 to vector<2x128xf32>
    %79 = arith.addf %78, %77 : vector<2x128xf32>
    %80 = arith.divf %78, %79 : vector<2x128xf32>
    %81 = vector.extract_strided_slice %71 {offsets = [0, 128], sizes = [2, 128], strides = [1, 1]} : vector<2x384xf32> to vector<2x128xf32>
    %82 = vector.extract_strided_slice %72 {offsets = [0, 128], sizes = [2, 128], strides = [1, 1]} : vector<2x384xf32> to vector<2x128xf32>
    %83 = arith.addf %81, %82 : vector<2x128xf32>
    %84 = arith.negf %83 : vector<2x128xf32>
    %85 = math.exp %84 : vector<2x128xf32>
    %cst_21 = arith.constant 1.000000e+00 : f32
    %86 = vector.broadcast %cst_21 : f32 to vector<2x128xf32>
    %87 = arith.addf %86, %85 : vector<2x128xf32>
    %88 = arith.divf %86, %87 : vector<2x128xf32>
    %89 = vector.extract_strided_slice %71 {offsets = [0, 256], sizes = [2, 128], strides = [1, 1]} : vector<2x384xf32> to vector<2x128xf32>
    %90 = vector.extract_strided_slice %72 {offsets = [0, 256], sizes = [2, 128], strides = [1, 1]} : vector<2x384xf32> to vector<2x128xf32>
    %91 = arith.addf %90, %11 : vector<2x128xf32>
    %92 = arith.mulf %80, %91 : vector<2x128xf32>
    %93 = arith.addf %89, %92 : vector<2x128xf32>
    %94 = math.tanh %93 : vector<2x128xf32>
    %cst_22 = arith.constant 1.000000e+00 : f32
    %95 = vector.broadcast %cst_22 : f32 to vector<2x128xf32>
    %96 = arith.subf %95, %88 : vector<2x128xf32>
    %97 = arith.mulf %96, %94 : vector<2x128xf32>
    %98 = arith.mulf %88, %70 : vector<2x128xf32>
    %99 = arith.addf %97, %98 : vector<2x128xf32>
    %100 = vector.extract_strided_slice %9 {offsets = [6, 0], sizes = [2, 384], strides = [1, 1]} : vector<16x384xf32> to vector<2x384xf32>
    %cst_23 = arith.constant dense<0.000000e+00> : vector<2x384xf32>
    %101 = tpu.matmul %99, %4, %cst_23 {dimension_numbers = #tpu.dot_dimension_numbers<[1], [0], [0], [1], [0, 0, 1, 1], [], []>} : vector<2x128xf32>, vector<128x384xf32>, vector<2x384xf32> -> vector<2x384xf32>
    %102 = vector.extract_strided_slice %100 {offsets = [0, 0], sizes = [2, 128], strides = [1, 1]} : vector<2x384xf32> to vector<2x128xf32>
    %103 = vector.extract_strided_slice %101 {offsets = [0, 0], sizes = [2, 128], strides = [1, 1]} : vector<2x384xf32> to vector<2x128xf32>
    %104 = arith.addf %102, %103 : vector<2x128xf32>
    %105 = arith.negf %104 : vector<2x128xf32>
    %106 = math.exp %105 : vector<2x128xf32>
    %cst_24 = arith.constant 1.000000e+00 : f32
    %107 = vector.broadcast %cst_24 : f32 to vector<2x128xf32>
    %108 = arith.addf %107, %106 : vector<2x128xf32>
    %109 = arith.divf %107, %108 : vector<2x128xf32>
    %110 = vector.extract_strided_slice %100 {offsets = [0, 128], sizes = [2, 128], strides = [1, 1]} : vector<2x384xf32> to vector<2x128xf32>
    %111 = vector.extract_strided_slice %101 {offsets = [0, 128], sizes = [2, 128], strides = [1, 1]} : vector<2x384xf32> to vector<2x128xf32>
    %112 = arith.addf %110, %111 : vector<2x128xf32>
    %113 = arith.negf %112 : vector<2x128xf32>
    %114 = math.exp %113 : vector<2x128xf32>
    %cst_25 = arith.constant 1.000000e+00 : f32
    %115 = vector.broadcast %cst_25 : f32 to vector<2x128xf32>
    %116 = arith.addf %115, %114 : vector<2x128xf32>
    %117 = arith.divf %115, %116 : vector<2x128xf32>
    %118 = vector.extract_strided_slice %100 {offsets = [0, 256], sizes = [2, 128], strides = [1, 1]} : vector<2x384xf32> to vector<2x128xf32>
    %119 = vector.extract_strided_slice %101 {offsets = [0, 256], sizes = [2, 128], strides = [1, 1]} : vector<2x384xf32> to vector<2x128xf32>
    %120 = arith.addf %119, %11 : vector<2x128xf32>
    %121 = arith.mulf %109, %120 : vector<2x128xf32>
    %122 = arith.addf %118, %121 : vector<2x128xf32>
    %123 = math.tanh %122 : vector<2x128xf32>
    %cst_26 = arith.constant 1.000000e+00 : f32
    %124 = vector.broadcast %cst_26 : f32 to vector<2x128xf32>
    %125 = arith.subf %124, %117 : vector<2x128xf32>
    %126 = arith.mulf %125, %123 : vector<2x128xf32>
    %127 = arith.mulf %117, %99 : vector<2x128xf32>
    %128 = arith.addf %126, %127 : vector<2x128xf32>
    %129 = vector.extract_strided_slice %9 {offsets = [8, 0], sizes = [2, 384], strides = [1, 1]} : vector<16x384xf32> to vector<2x384xf32>
    %cst_27 = arith.constant dense<0.000000e+00> : vector<2x384xf32>
    %130 = tpu.matmul %128, %4, %cst_27 {dimension_numbers = #tpu.dot_dimension_numbers<[1], [0], [0], [1], [0, 0, 1, 1], [], []>} : vector<2x128xf32>, vector<128x384xf32>, vector<2x384xf32> -> vector<2x384xf32>
    %131 = vector.extract_strided_slice %129 {offsets = [0, 0], sizes = [2, 128], strides = [1, 1]} : vector<2x384xf32> to vector<2x128xf32>
    %132 = vector.extract_strided_slice %130 {offsets = [0, 0], sizes = [2, 128], strides = [1, 1]} : vector<2x384xf32> to vector<2x128xf32>
    %133 = arith.addf %131, %132 : vector<2x128xf32>
    %134 = arith.negf %133 : vector<2x128xf32>
    %135 = math.exp %134 : vector<2x128xf32>
    %cst_28 = arith.constant 1.000000e+00 : f32
    %136 = vector.broadcast %cst_28 : f32 to vector<2x128xf32>
    %137 = arith.addf %136, %135 : vector<2x128xf32>
    %138 = arith.divf %136, %137 : vector<2x128xf32>
    %139 = vector.extract_strided_slice %129 {offsets = [0, 128], sizes = [2, 128], strides = [1, 1]} : vector<2x384xf32> to vector<2x128xf32>
    %140 = vector.extract_strided_slice %130 {offsets = [0, 128], sizes = [2, 128], strides = [1, 1]} : vector<2x384xf32> to vector<2x128xf32>
    %141 = arith.addf %139, %140 : vector<2x128xf32>
    %142 = arith.negf %141 : vector<2x128xf32>
    %143 = math.exp %142 : vector<2x128xf32>
    %cst_29 = arith.constant 1.000000e+00 : f32
    %144 = vector.broadcast %cst_29 : f32 to vector<2x128xf32>
    %145 = arith.addf %144, %143 : vector<2x128xf32>
    %146 = arith.divf %144, %145 : vector<2x128xf32>
    %147 = vector.extract_strided_slice %129 {offsets = [0, 256], sizes = [2, 128], strides = [1, 1]} : vector<2x384xf32> to vector<2x128xf32>
    %148 = vector.extract_strided_slice %130 {offsets = [0, 256], sizes = [2, 128], strides = [1, 1]} : vector<2x384xf32> to vector<2x128xf32>
    %149 = arith.addf %148, %11 : vector<2x128xf32>
    %150 = arith.mulf %138, %149 : vector<2x128xf32>
    %151 = arith.addf %147, %150 : vector<2x128xf32>
    %152 = math.tanh %151 : vector<2x128xf32>
    %cst_30 = arith.constant 1.000000e+00 : f32
    %153 = vector.broadcast %cst_30 : f32 to vector<2x128xf32>
    %154 = arith.subf %153, %146 : vector<2x128xf32>
    %155 = arith.mulf %154, %152 : vector<2x128xf32>
    %156 = arith.mulf %146, %128 : vector<2x128xf32>
    %157 = arith.addf %155, %156 : vector<2x128xf32>
    %158 = vector.extract_strided_slice %9 {offsets = [10, 0], sizes = [2, 384], strides = [1, 1]} : vector<16x384xf32> to vector<2x384xf32>
    %cst_31 = arith.constant dense<0.000000e+00> : vector<2x384xf32>
    %159 = tpu.matmul %157, %4, %cst_31 {dimension_numbers = #tpu.dot_dimension_numbers<[1], [0], [0], [1], [0, 0, 1, 1], [], []>} : vector<2x128xf32>, vector<128x384xf32>, vector<2x384xf32> -> vector<2x384xf32>
    %160 = vector.extract_strided_slice %158 {offsets = [0, 0], sizes = [2, 128], strides = [1, 1]} : vector<2x384xf32> to vector<2x128xf32>
    %161 = vector.extract_strided_slice %159 {offsets = [0, 0], sizes = [2, 128], strides = [1, 1]} : vector<2x384xf32> to vector<2x128xf32>
    %162 = arith.addf %160, %161 : vector<2x128xf32>
    %163 = arith.negf %162 : vector<2x128xf32>
    %164 = math.exp %163 : vector<2x128xf32>
    %cst_32 = arith.constant 1.000000e+00 : f32
    %165 = vector.broadcast %cst_32 : f32 to vector<2x128xf32>
    %166 = arith.addf %165, %164 : vector<2x128xf32>
    %167 = arith.divf %165, %166 : vector<2x128xf32>
    %168 = vector.extract_strided_slice %158 {offsets = [0, 128], sizes = [2, 128], strides = [1, 1]} : vector<2x384xf32> to vector<2x128xf32>
    %169 = vector.extract_strided_slice %159 {offsets = [0, 128], sizes = [2, 128], strides = [1, 1]} : vector<2x384xf32> to vector<2x128xf32>
    %170 = arith.addf %168, %169 : vector<2x128xf32>
    %171 = arith.negf %170 : vector<2x128xf32>
    %172 = math.exp %171 : vector<2x128xf32>
    %cst_33 = arith.constant 1.000000e+00 : f32
    %173 = vector.broadcast %cst_33 : f32 to vector<2x128xf32>
    %174 = arith.addf %173, %172 : vector<2x128xf32>
    %175 = arith.divf %173, %174 : vector<2x128xf32>
    %176 = vector.extract_strided_slice %158 {offsets = [0, 256], sizes = [2, 128], strides = [1, 1]} : vector<2x384xf32> to vector<2x128xf32>
    %177 = vector.extract_strided_slice %159 {offsets = [0, 256], sizes = [2, 128], strides = [1, 1]} : vector<2x384xf32> to vector<2x128xf32>
    %178 = arith.addf %177, %11 : vector<2x128xf32>
    %179 = arith.mulf %167, %178 : vector<2x128xf32>
    %180 = arith.addf %176, %179 : vector<2x128xf32>
    %181 = math.tanh %180 : vector<2x128xf32>
    %cst_34 = arith.constant 1.000000e+00 : f32
    %182 = vector.broadcast %cst_34 : f32 to vector<2x128xf32>
    %183 = arith.subf %182, %175 : vector<2x128xf32>
    %184 = arith.mulf %183, %181 : vector<2x128xf32>
    %185 = arith.mulf %175, %157 : vector<2x128xf32>
    %186 = arith.addf %184, %185 : vector<2x128xf32>
    %187 = vector.extract_strided_slice %9 {offsets = [12, 0], sizes = [2, 384], strides = [1, 1]} : vector<16x384xf32> to vector<2x384xf32>
    %cst_35 = arith.constant dense<0.000000e+00> : vector<2x384xf32>
    %188 = tpu.matmul %186, %4, %cst_35 {dimension_numbers = #tpu.dot_dimension_numbers<[1], [0], [0], [1], [0, 0, 1, 1], [], []>} : vector<2x128xf32>, vector<128x384xf32>, vector<2x384xf32> -> vector<2x384xf32>
    %189 = vector.extract_strided_slice %187 {offsets = [0, 0], sizes = [2, 128], strides = [1, 1]} : vector<2x384xf32> to vector<2x128xf32>
    %190 = vector.extract_strided_slice %188 {offsets = [0, 0], sizes = [2, 128], strides = [1, 1]} : vector<2x384xf32> to vector<2x128xf32>
    %191 = arith.addf %189, %190 : vector<2x128xf32>
    %192 = arith.negf %191 : vector<2x128xf32>
    %193 = math.exp %192 : vector<2x128xf32>
    %cst_36 = arith.constant 1.000000e+00 : f32
    %194 = vector.broadcast %cst_36 : f32 to vector<2x128xf32>
    %195 = arith.addf %194, %193 : vector<2x128xf32>
    %196 = arith.divf %194, %195 : vector<2x128xf32>
    %197 = vector.extract_strided_slice %187 {offsets = [0, 128], sizes = [2, 128], strides = [1, 1]} : vector<2x384xf32> to vector<2x128xf32>
    %198 = vector.extract_strided_slice %188 {offsets = [0, 128], sizes = [2, 128], strides = [1, 1]} : vector<2x384xf32> to vector<2x128xf32>
    %199 = arith.addf %197, %198 : vector<2x128xf32>
    %200 = arith.negf %199 : vector<2x128xf32>
    %201 = math.exp %200 : vector<2x128xf32>
    %cst_37 = arith.constant 1.000000e+00 : f32
    %202 = vector.broadcast %cst_37 : f32 to vector<2x128xf32>
    %203 = arith.addf %202, %201 : vector<2x128xf32>
    %204 = arith.divf %202, %203 : vector<2x128xf32>
    %205 = vector.extract_strided_slice %187 {offsets = [0, 256], sizes = [2, 128], strides = [1, 1]} : vector<2x384xf32> to vector<2x128xf32>
    %206 = vector.extract_strided_slice %188 {offsets = [0, 256], sizes = [2, 128], strides = [1, 1]} : vector<2x384xf32> to vector<2x128xf32>
    %207 = arith.addf %206, %11 : vector<2x128xf32>
    %208 = arith.mulf %196, %207 : vector<2x128xf32>
    %209 = arith.addf %205, %208 : vector<2x128xf32>
    %210 = math.tanh %209 : vector<2x128xf32>
    %cst_38 = arith.constant 1.000000e+00 : f32
    %211 = vector.broadcast %cst_38 : f32 to vector<2x128xf32>
    %212 = arith.subf %211, %204 : vector<2x128xf32>
    %213 = arith.mulf %212, %210 : vector<2x128xf32>
    %214 = arith.mulf %204, %186 : vector<2x128xf32>
    %215 = arith.addf %213, %214 : vector<2x128xf32>
    %216 = vector.extract_strided_slice %9 {offsets = [14, 0], sizes = [2, 384], strides = [1, 1]} : vector<16x384xf32> to vector<2x384xf32>
    %cst_39 = arith.constant dense<0.000000e+00> : vector<2x384xf32>
    %217 = tpu.matmul %215, %4, %cst_39 {dimension_numbers = #tpu.dot_dimension_numbers<[1], [0], [0], [1], [0, 0, 1, 1], [], []>} : vector<2x128xf32>, vector<128x384xf32>, vector<2x384xf32> -> vector<2x384xf32>
    %218 = vector.extract_strided_slice %216 {offsets = [0, 0], sizes = [2, 128], strides = [1, 1]} : vector<2x384xf32> to vector<2x128xf32>
    %219 = vector.extract_strided_slice %217 {offsets = [0, 0], sizes = [2, 128], strides = [1, 1]} : vector<2x384xf32> to vector<2x128xf32>
    %220 = arith.addf %218, %219 : vector<2x128xf32>
    %221 = arith.negf %220 : vector<2x128xf32>
    %222 = math.exp %221 : vector<2x128xf32>
    %cst_40 = arith.constant 1.000000e+00 : f32
    %223 = vector.broadcast %cst_40 : f32 to vector<2x128xf32>
    %224 = arith.addf %223, %222 : vector<2x128xf32>
    %225 = arith.divf %223, %224 : vector<2x128xf32>
    %226 = vector.extract_strided_slice %216 {offsets = [0, 128], sizes = [2, 128], strides = [1, 1]} : vector<2x384xf32> to vector<2x128xf32>
    %227 = vector.extract_strided_slice %217 {offsets = [0, 128], sizes = [2, 128], strides = [1, 1]} : vector<2x384xf32> to vector<2x128xf32>
    %228 = arith.addf %226, %227 : vector<2x128xf32>
    %229 = arith.negf %228 : vector<2x128xf32>
    %230 = math.exp %229 : vector<2x128xf32>
    %cst_41 = arith.constant 1.000000e+00 : f32
    %231 = vector.broadcast %cst_41 : f32 to vector<2x128xf32>
    %232 = arith.addf %231, %230 : vector<2x128xf32>
    %233 = arith.divf %231, %232 : vector<2x128xf32>
    %234 = vector.extract_strided_slice %216 {offsets = [0, 256], sizes = [2, 128], strides = [1, 1]} : vector<2x384xf32> to vector<2x128xf32>
    %235 = vector.extract_strided_slice %217 {offsets = [0, 256], sizes = [2, 128], strides = [1, 1]} : vector<2x384xf32> to vector<2x128xf32>
    %236 = arith.addf %235, %11 : vector<2x128xf32>
    %237 = arith.mulf %225, %236 : vector<2x128xf32>
    %238 = arith.addf %234, %237 : vector<2x128xf32>
    %239 = math.tanh %238 : vector<2x128xf32>
    %cst_42 = arith.constant 1.000000e+00 : f32
    %240 = vector.broadcast %cst_42 : f32 to vector<2x128xf32>
    %241 = arith.subf %240, %233 : vector<2x128xf32>
    %242 = arith.mulf %241, %239 : vector<2x128xf32>
    %243 = arith.mulf %233, %215 : vector<2x128xf32>
    %244 = arith.addf %242, %243 : vector<2x128xf32>
    %245 = vector.extract_strided_slice %244 {offsets = [0, 0], sizes = [2, 32], strides = [1, 1]} : vector<2x128xf32> to vector<2x32xf32>
    %246 = tpu.concatenate %41, %70, %99, %128, %157, %186, %215, %244 in 0 : vector<2x128xf32>, vector<2x128xf32>, vector<2x128xf32>, vector<2x128xf32>, vector<2x128xf32>, vector<2x128xf32>, vector<2x128xf32>, vector<2x128xf32> -> vector<16x128xf32>
    %c0_43 = arith.constant 0 : index
    %c0_44 = arith.constant 0 : index
    %247 = vector.load %arg5[%c0_43, %c0_44] : memref<128x384xf32, #tpu.memory_space<vmem>>, vector<128x384xf32>
    %c0_45 = arith.constant 0 : index
    %c0_46 = arith.constant 0 : index
    %248 = vector.load %arg6[%c0_45, %c0_46] : memref<128x384xf32, #tpu.memory_space<vmem>>, vector<128x384xf32>
    %c0_47 = arith.constant 0 : index
    %c0_48 = arith.constant 0 : index
    %249 = vector.load %arg7[%c0_47, %c0_48] : memref<1x384xf32, #tpu.memory_space<vmem>>, vector<1x384xf32>
    %c0_49 = arith.constant 0 : index
    %c0_50 = arith.constant 0 : index
    %250 = vector.load %arg8[%c0_49, %c0_50] : memref<1x128xf32, #tpu.memory_space<vmem>>, vector<1x128xf32>
    %cst_51 = arith.constant dense<0.000000e+00> : vector<16x384xf32>
    %251 = tpu.matmul %246, %247, %cst_51 {dimension_numbers = #tpu.dot_dimension_numbers<[1], [0], [0], [1], [0, 0, 1, 1], [], []>} : vector<16x128xf32>, vector<128x384xf32>, vector<16x384xf32> -> vector<16x384xf32>
    %252 = vector.broadcast %249 : vector<1x384xf32> to vector<16x384xf32>
    %253 = arith.addf %251, %252 : vector<16x384xf32>
    %254 = vector.shape_cast %250 : vector<1x128xf32> to vector<1x128xf32>
    %255 = vector.broadcast %254 : vector<1x128xf32> to vector<2x128xf32>
    %cst_52 = arith.constant 0.000000e+00 : f32
    %256 = vector.broadcast %cst_52 : f32 to vector<2x128xf32>
    %257 = vector.extract_strided_slice %253 {offsets = [0, 0], sizes = [2, 384], strides = [1, 1]} : vector<16x384xf32> to vector<2x384xf32>
    %cst_53 = arith.constant dense<0.000000e+00> : vector<2x384xf32>
    %258 = tpu.matmul %256, %248, %cst_53 {dimension_numbers = #tpu.dot_dimension_numbers<[1], [0], [0], [1], [0, 0, 1, 1], [], []>} : vector<2x128xf32>, vector<128x384xf32>, vector<2x384xf32> -> vector<2x384xf32>
    %259 = vector.extract_strided_slice %257 {offsets = [0, 0], sizes = [2, 128], strides = [1, 1]} : vector<2x384xf32> to vector<2x128xf32>
    %260 = vector.extract_strided_slice %258 {offsets = [0, 0], sizes = [2, 128], strides = [1, 1]} : vector<2x384xf32> to vector<2x128xf32>
    %261 = arith.addf %259, %260 : vector<2x128xf32>
    %262 = arith.negf %261 : vector<2x128xf32>
    %263 = math.exp %262 : vector<2x128xf32>
    %cst_54 = arith.constant 1.000000e+00 : f32
    %264 = vector.broadcast %cst_54 : f32 to vector<2x128xf32>
    %265 = arith.addf %264, %263 : vector<2x128xf32>
    %266 = arith.divf %264, %265 : vector<2x128xf32>
    %267 = vector.extract_strided_slice %257 {offsets = [0, 128], sizes = [2, 128], strides = [1, 1]} : vector<2x384xf32> to vector<2x128xf32>
    %268 = vector.extract_strided_slice %258 {offsets = [0, 128], sizes = [2, 128], strides = [1, 1]} : vector<2x384xf32> to vector<2x128xf32>
    %269 = arith.addf %267, %268 : vector<2x128xf32>
    %270 = arith.negf %269 : vector<2x128xf32>
    %271 = math.exp %270 : vector<2x128xf32>
    %cst_55 = arith.constant 1.000000e+00 : f32
    %272 = vector.broadcast %cst_55 : f32 to vector<2x128xf32>
    %273 = arith.addf %272, %271 : vector<2x128xf32>
    %274 = arith.divf %272, %273 : vector<2x128xf32>
    %275 = vector.extract_strided_slice %257 {offsets = [0, 256], sizes = [2, 128], strides = [1, 1]} : vector<2x384xf32> to vector<2x128xf32>
    %276 = vector.extract_strided_slice %258 {offsets = [0, 256], sizes = [2, 128], strides = [1, 1]} : vector<2x384xf32> to vector<2x128xf32>
    %277 = arith.addf %276, %255 : vector<2x128xf32>
    %278 = arith.mulf %266, %277 : vector<2x128xf32>
    %279 = arith.addf %275, %278 : vector<2x128xf32>
    %280 = math.tanh %279 : vector<2x128xf32>
    %cst_56 = arith.constant 1.000000e+00 : f32
    %281 = vector.broadcast %cst_56 : f32 to vector<2x128xf32>
    %282 = arith.subf %281, %274 : vector<2x128xf32>
    %283 = arith.mulf %282, %280 : vector<2x128xf32>
    %284 = arith.mulf %274, %256 : vector<2x128xf32>
    %285 = arith.addf %283, %284 : vector<2x128xf32>
    %286 = vector.extract_strided_slice %253 {offsets = [2, 0], sizes = [2, 384], strides = [1, 1]} : vector<16x384xf32> to vector<2x384xf32>
    %cst_57 = arith.constant dense<0.000000e+00> : vector<2x384xf32>
    %287 = tpu.matmul %285, %248, %cst_57 {dimension_numbers = #tpu.dot_dimension_numbers<[1], [0], [0], [1], [0, 0, 1, 1], [], []>} : vector<2x128xf32>, vector<128x384xf32>, vector<2x384xf32> -> vector<2x384xf32>
    %288 = vector.extract_strided_slice %286 {offsets = [0, 0], sizes = [2, 128], strides = [1, 1]} : vector<2x384xf32> to vector<2x128xf32>
    %289 = vector.extract_strided_slice %287 {offsets = [0, 0], sizes = [2, 128], strides = [1, 1]} : vector<2x384xf32> to vector<2x128xf32>
    %290 = arith.addf %288, %289 : vector<2x128xf32>
    %291 = arith.negf %290 : vector<2x128xf32>
    %292 = math.exp %291 : vector<2x128xf32>
    %cst_58 = arith.constant 1.000000e+00 : f32
    %293 = vector.broadcast %cst_58 : f32 to vector<2x128xf32>
    %294 = arith.addf %293, %292 : vector<2x128xf32>
    %295 = arith.divf %293, %294 : vector<2x128xf32>
    %296 = vector.extract_strided_slice %286 {offsets = [0, 128], sizes = [2, 128], strides = [1, 1]} : vector<2x384xf32> to vector<2x128xf32>
    %297 = vector.extract_strided_slice %287 {offsets = [0, 128], sizes = [2, 128], strides = [1, 1]} : vector<2x384xf32> to vector<2x128xf32>
    %298 = arith.addf %296, %297 : vector<2x128xf32>
    %299 = arith.negf %298 : vector<2x128xf32>
    %300 = math.exp %299 : vector<2x128xf32>
    %cst_59 = arith.constant 1.000000e+00 : f32
    %301 = vector.broadcast %cst_59 : f32 to vector<2x128xf32>
    %302 = arith.addf %301, %300 : vector<2x128xf32>
    %303 = arith.divf %301, %302 : vector<2x128xf32>
    %304 = vector.extract_strided_slice %286 {offsets = [0, 256], sizes = [2, 128], strides = [1, 1]} : vector<2x384xf32> to vector<2x128xf32>
    %305 = vector.extract_strided_slice %287 {offsets = [0, 256], sizes = [2, 128], strides = [1, 1]} : vector<2x384xf32> to vector<2x128xf32>
    %306 = arith.addf %305, %255 : vector<2x128xf32>
    %307 = arith.mulf %295, %306 : vector<2x128xf32>
    %308 = arith.addf %304, %307 : vector<2x128xf32>
    %309 = math.tanh %308 : vector<2x128xf32>
    %cst_60 = arith.constant 1.000000e+00 : f32
    %310 = vector.broadcast %cst_60 : f32 to vector<2x128xf32>
    %311 = arith.subf %310, %303 : vector<2x128xf32>
    %312 = arith.mulf %311, %309 : vector<2x128xf32>
    %313 = arith.mulf %303, %285 : vector<2x128xf32>
    %314 = arith.addf %312, %313 : vector<2x128xf32>
    %315 = vector.extract_strided_slice %253 {offsets = [4, 0], sizes = [2, 384], strides = [1, 1]} : vector<16x384xf32> to vector<2x384xf32>
    %cst_61 = arith.constant dense<0.000000e+00> : vector<2x384xf32>
    %316 = tpu.matmul %314, %248, %cst_61 {dimension_numbers = #tpu.dot_dimension_numbers<[1], [0], [0], [1], [0, 0, 1, 1], [], []>} : vector<2x128xf32>, vector<128x384xf32>, vector<2x384xf32> -> vector<2x384xf32>
    %317 = vector.extract_strided_slice %315 {offsets = [0, 0], sizes = [2, 128], strides = [1, 1]} : vector<2x384xf32> to vector<2x128xf32>
    %318 = vector.extract_strided_slice %316 {offsets = [0, 0], sizes = [2, 128], strides = [1, 1]} : vector<2x384xf32> to vector<2x128xf32>
    %319 = arith.addf %317, %318 : vector<2x128xf32>
    %320 = arith.negf %319 : vector<2x128xf32>
    %321 = math.exp %320 : vector<2x128xf32>
    %cst_62 = arith.constant 1.000000e+00 : f32
    %322 = vector.broadcast %cst_62 : f32 to vector<2x128xf32>
    %323 = arith.addf %322, %321 : vector<2x128xf32>
    %324 = arith.divf %322, %323 : vector<2x128xf32>
    %325 = vector.extract_strided_slice %315 {offsets = [0, 128], sizes = [2, 128], strides = [1, 1]} : vector<2x384xf32> to vector<2x128xf32>
    %326 = vector.extract_strided_slice %316 {offsets = [0, 128], sizes = [2, 128], strides = [1, 1]} : vector<2x384xf32> to vector<2x128xf32>
    %327 = arith.addf %325, %326 : vector<2x128xf32>
    %328 = arith.negf %327 : vector<2x128xf32>
    %329 = math.exp %328 : vector<2x128xf32>
    %cst_63 = arith.constant 1.000000e+00 : f32
    %330 = vector.broadcast %cst_63 : f32 to vector<2x128xf32>
    %331 = arith.addf %330, %329 : vector<2x128xf32>
    %332 = arith.divf %330, %331 : vector<2x128xf32>
    %333 = vector.extract_strided_slice %315 {offsets = [0, 256], sizes = [2, 128], strides = [1, 1]} : vector<2x384xf32> to vector<2x128xf32>
    %334 = vector.extract_strided_slice %316 {offsets = [0, 256], sizes = [2, 128], strides = [1, 1]} : vector<2x384xf32> to vector<2x128xf32>
    %335 = arith.addf %334, %255 : vector<2x128xf32>
    %336 = arith.mulf %324, %335 : vector<2x128xf32>
    %337 = arith.addf %333, %336 : vector<2x128xf32>
    %338 = math.tanh %337 : vector<2x128xf32>
    %cst_64 = arith.constant 1.000000e+00 : f32
    %339 = vector.broadcast %cst_64 : f32 to vector<2x128xf32>
    %340 = arith.subf %339, %332 : vector<2x128xf32>
    %341 = arith.mulf %340, %338 : vector<2x128xf32>
    %342 = arith.mulf %332, %314 : vector<2x128xf32>
    %343 = arith.addf %341, %342 : vector<2x128xf32>
    %344 = vector.extract_strided_slice %253 {offsets = [6, 0], sizes = [2, 384], strides = [1, 1]} : vector<16x384xf32> to vector<2x384xf32>
    %cst_65 = arith.constant dense<0.000000e+00> : vector<2x384xf32>
    %345 = tpu.matmul %343, %248, %cst_65 {dimension_numbers = #tpu.dot_dimension_numbers<[1], [0], [0], [1], [0, 0, 1, 1], [], []>} : vector<2x128xf32>, vector<128x384xf32>, vector<2x384xf32> -> vector<2x384xf32>
    %346 = vector.extract_strided_slice %344 {offsets = [0, 0], sizes = [2, 128], strides = [1, 1]} : vector<2x384xf32> to vector<2x128xf32>
    %347 = vector.extract_strided_slice %345 {offsets = [0, 0], sizes = [2, 128], strides = [1, 1]} : vector<2x384xf32> to vector<2x128xf32>
    %348 = arith.addf %346, %347 : vector<2x128xf32>
    %349 = arith.negf %348 : vector<2x128xf32>
    %350 = math.exp %349 : vector<2x128xf32>
    %cst_66 = arith.constant 1.000000e+00 : f32
    %351 = vector.broadcast %cst_66 : f32 to vector<2x128xf32>
    %352 = arith.addf %351, %350 : vector<2x128xf32>
    %353 = arith.divf %351, %352 : vector<2x128xf32>
    %354 = vector.extract_strided_slice %344 {offsets = [0, 128], sizes = [2, 128], strides = [1, 1]} : vector<2x384xf32> to vector<2x128xf32>
    %355 = vector.extract_strided_slice %345 {offsets = [0, 128], sizes = [2, 128], strides = [1, 1]} : vector<2x384xf32> to vector<2x128xf32>
    %356 = arith.addf %354, %355 : vector<2x128xf32>
    %357 = arith.negf %356 : vector<2x128xf32>
    %358 = math.exp %357 : vector<2x128xf32>
    %cst_67 = arith.constant 1.000000e+00 : f32
    %359 = vector.broadcast %cst_67 : f32 to vector<2x128xf32>
    %360 = arith.addf %359, %358 : vector<2x128xf32>
    %361 = arith.divf %359, %360 : vector<2x128xf32>
    %362 = vector.extract_strided_slice %344 {offsets = [0, 256], sizes = [2, 128], strides = [1, 1]} : vector<2x384xf32> to vector<2x128xf32>
    %363 = vector.extract_strided_slice %345 {offsets = [0, 256], sizes = [2, 128], strides = [1, 1]} : vector<2x384xf32> to vector<2x128xf32>
    %364 = arith.addf %363, %255 : vector<2x128xf32>
    %365 = arith.mulf %353, %364 : vector<2x128xf32>
    %366 = arith.addf %362, %365 : vector<2x128xf32>
    %367 = math.tanh %366 : vector<2x128xf32>
    %cst_68 = arith.constant 1.000000e+00 : f32
    %368 = vector.broadcast %cst_68 : f32 to vector<2x128xf32>
    %369 = arith.subf %368, %361 : vector<2x128xf32>
    %370 = arith.mulf %369, %367 : vector<2x128xf32>
    %371 = arith.mulf %361, %343 : vector<2x128xf32>
    %372 = arith.addf %370, %371 : vector<2x128xf32>
    %373 = vector.extract_strided_slice %253 {offsets = [8, 0], sizes = [2, 384], strides = [1, 1]} : vector<16x384xf32> to vector<2x384xf32>
    %cst_69 = arith.constant dense<0.000000e+00> : vector<2x384xf32>
    %374 = tpu.matmul %372, %248, %cst_69 {dimension_numbers = #tpu.dot_dimension_numbers<[1], [0], [0], [1], [0, 0, 1, 1], [], []>} : vector<2x128xf32>, vector<128x384xf32>, vector<2x384xf32> -> vector<2x384xf32>
    %375 = vector.extract_strided_slice %373 {offsets = [0, 0], sizes = [2, 128], strides = [1, 1]} : vector<2x384xf32> to vector<2x128xf32>
    %376 = vector.extract_strided_slice %374 {offsets = [0, 0], sizes = [2, 128], strides = [1, 1]} : vector<2x384xf32> to vector<2x128xf32>
    %377 = arith.addf %375, %376 : vector<2x128xf32>
    %378 = arith.negf %377 : vector<2x128xf32>
    %379 = math.exp %378 : vector<2x128xf32>
    %cst_70 = arith.constant 1.000000e+00 : f32
    %380 = vector.broadcast %cst_70 : f32 to vector<2x128xf32>
    %381 = arith.addf %380, %379 : vector<2x128xf32>
    %382 = arith.divf %380, %381 : vector<2x128xf32>
    %383 = vector.extract_strided_slice %373 {offsets = [0, 128], sizes = [2, 128], strides = [1, 1]} : vector<2x384xf32> to vector<2x128xf32>
    %384 = vector.extract_strided_slice %374 {offsets = [0, 128], sizes = [2, 128], strides = [1, 1]} : vector<2x384xf32> to vector<2x128xf32>
    %385 = arith.addf %383, %384 : vector<2x128xf32>
    %386 = arith.negf %385 : vector<2x128xf32>
    %387 = math.exp %386 : vector<2x128xf32>
    %cst_71 = arith.constant 1.000000e+00 : f32
    %388 = vector.broadcast %cst_71 : f32 to vector<2x128xf32>
    %389 = arith.addf %388, %387 : vector<2x128xf32>
    %390 = arith.divf %388, %389 : vector<2x128xf32>
    %391 = vector.extract_strided_slice %373 {offsets = [0, 256], sizes = [2, 128], strides = [1, 1]} : vector<2x384xf32> to vector<2x128xf32>
    %392 = vector.extract_strided_slice %374 {offsets = [0, 256], sizes = [2, 128], strides = [1, 1]} : vector<2x384xf32> to vector<2x128xf32>
    %393 = arith.addf %392, %255 : vector<2x128xf32>
    %394 = arith.mulf %382, %393 : vector<2x128xf32>
    %395 = arith.addf %391, %394 : vector<2x128xf32>
    %396 = math.tanh %395 : vector<2x128xf32>
    %cst_72 = arith.constant 1.000000e+00 : f32
    %397 = vector.broadcast %cst_72 : f32 to vector<2x128xf32>
    %398 = arith.subf %397, %390 : vector<2x128xf32>
    %399 = arith.mulf %398, %396 : vector<2x128xf32>
    %400 = arith.mulf %390, %372 : vector<2x128xf32>
    %401 = arith.addf %399, %400 : vector<2x128xf32>
    %402 = vector.extract_strided_slice %253 {offsets = [10, 0], sizes = [2, 384], strides = [1, 1]} : vector<16x384xf32> to vector<2x384xf32>
    %cst_73 = arith.constant dense<0.000000e+00> : vector<2x384xf32>
    %403 = tpu.matmul %401, %248, %cst_73 {dimension_numbers = #tpu.dot_dimension_numbers<[1], [0], [0], [1], [0, 0, 1, 1], [], []>} : vector<2x128xf32>, vector<128x384xf32>, vector<2x384xf32> -> vector<2x384xf32>
    %404 = vector.extract_strided_slice %402 {offsets = [0, 0], sizes = [2, 128], strides = [1, 1]} : vector<2x384xf32> to vector<2x128xf32>
    %405 = vector.extract_strided_slice %403 {offsets = [0, 0], sizes = [2, 128], strides = [1, 1]} : vector<2x384xf32> to vector<2x128xf32>
    %406 = arith.addf %404, %405 : vector<2x128xf32>
    %407 = arith.negf %406 : vector<2x128xf32>
    %408 = math.exp %407 : vector<2x128xf32>
    %cst_74 = arith.constant 1.000000e+00 : f32
    %409 = vector.broadcast %cst_74 : f32 to vector<2x128xf32>
    %410 = arith.addf %409, %408 : vector<2x128xf32>
    %411 = arith.divf %409, %410 : vector<2x128xf32>
    %412 = vector.extract_strided_slice %402 {offsets = [0, 128], sizes = [2, 128], strides = [1, 1]} : vector<2x384xf32> to vector<2x128xf32>
    %413 = vector.extract_strided_slice %403 {offsets = [0, 128], sizes = [2, 128], strides = [1, 1]} : vector<2x384xf32> to vector<2x128xf32>
    %414 = arith.addf %412, %413 : vector<2x128xf32>
    %415 = arith.negf %414 : vector<2x128xf32>
    %416 = math.exp %415 : vector<2x128xf32>
    %cst_75 = arith.constant 1.000000e+00 : f32
    %417 = vector.broadcast %cst_75 : f32 to vector<2x128xf32>
    %418 = arith.addf %417, %416 : vector<2x128xf32>
    %419 = arith.divf %417, %418 : vector<2x128xf32>
    %420 = vector.extract_strided_slice %402 {offsets = [0, 256], sizes = [2, 128], strides = [1, 1]} : vector<2x384xf32> to vector<2x128xf32>
    %421 = vector.extract_strided_slice %403 {offsets = [0, 256], sizes = [2, 128], strides = [1, 1]} : vector<2x384xf32> to vector<2x128xf32>
    %422 = arith.addf %421, %255 : vector<2x128xf32>
    %423 = arith.mulf %411, %422 : vector<2x128xf32>
    %424 = arith.addf %420, %423 : vector<2x128xf32>
    %425 = math.tanh %424 : vector<2x128xf32>
    %cst_76 = arith.constant 1.000000e+00 : f32
    %426 = vector.broadcast %cst_76 : f32 to vector<2x128xf32>
    %427 = arith.subf %426, %419 : vector<2x128xf32>
    %428 = arith.mulf %427, %425 : vector<2x128xf32>
    %429 = arith.mulf %419, %401 : vector<2x128xf32>
    %430 = arith.addf %428, %429 : vector<2x128xf32>
    %431 = vector.extract_strided_slice %253 {offsets = [12, 0], sizes = [2, 384], strides = [1, 1]} : vector<16x384xf32> to vector<2x384xf32>
    %cst_77 = arith.constant dense<0.000000e+00> : vector<2x384xf32>
    %432 = tpu.matmul %430, %248, %cst_77 {dimension_numbers = #tpu.dot_dimension_numbers<[1], [0], [0], [1], [0, 0, 1, 1], [], []>} : vector<2x128xf32>, vector<128x384xf32>, vector<2x384xf32> -> vector<2x384xf32>
    %433 = vector.extract_strided_slice %431 {offsets = [0, 0], sizes = [2, 128], strides = [1, 1]} : vector<2x384xf32> to vector<2x128xf32>
    %434 = vector.extract_strided_slice %432 {offsets = [0, 0], sizes = [2, 128], strides = [1, 1]} : vector<2x384xf32> to vector<2x128xf32>
    %435 = arith.addf %433, %434 : vector<2x128xf32>
    %436 = arith.negf %435 : vector<2x128xf32>
    %437 = math.exp %436 : vector<2x128xf32>
    %cst_78 = arith.constant 1.000000e+00 : f32
    %438 = vector.broadcast %cst_78 : f32 to vector<2x128xf32>
    %439 = arith.addf %438, %437 : vector<2x128xf32>
    %440 = arith.divf %438, %439 : vector<2x128xf32>
    %441 = vector.extract_strided_slice %431 {offsets = [0, 128], sizes = [2, 128], strides = [1, 1]} : vector<2x384xf32> to vector<2x128xf32>
    %442 = vector.extract_strided_slice %432 {offsets = [0, 128], sizes = [2, 128], strides = [1, 1]} : vector<2x384xf32> to vector<2x128xf32>
    %443 = arith.addf %441, %442 : vector<2x128xf32>
    %444 = arith.negf %443 : vector<2x128xf32>
    %445 = math.exp %444 : vector<2x128xf32>
    %cst_79 = arith.constant 1.000000e+00 : f32
    %446 = vector.broadcast %cst_79 : f32 to vector<2x128xf32>
    %447 = arith.addf %446, %445 : vector<2x128xf32>
    %448 = arith.divf %446, %447 : vector<2x128xf32>
    %449 = vector.extract_strided_slice %431 {offsets = [0, 256], sizes = [2, 128], strides = [1, 1]} : vector<2x384xf32> to vector<2x128xf32>
    %450 = vector.extract_strided_slice %432 {offsets = [0, 256], sizes = [2, 128], strides = [1, 1]} : vector<2x384xf32> to vector<2x128xf32>
    %451 = arith.addf %450, %255 : vector<2x128xf32>
    %452 = arith.mulf %440, %451 : vector<2x128xf32>
    %453 = arith.addf %449, %452 : vector<2x128xf32>
    %454 = math.tanh %453 : vector<2x128xf32>
    %cst_80 = arith.constant 1.000000e+00 : f32
    %455 = vector.broadcast %cst_80 : f32 to vector<2x128xf32>
    %456 = arith.subf %455, %448 : vector<2x128xf32>
    %457 = arith.mulf %456, %454 : vector<2x128xf32>
    %458 = arith.mulf %448, %430 : vector<2x128xf32>
    %459 = arith.addf %457, %458 : vector<2x128xf32>
    %460 = vector.extract_strided_slice %253 {offsets = [14, 0], sizes = [2, 384], strides = [1, 1]} : vector<16x384xf32> to vector<2x384xf32>
    %cst_81 = arith.constant dense<0.000000e+00> : vector<2x384xf32>
    %461 = tpu.matmul %459, %248, %cst_81 {dimension_numbers = #tpu.dot_dimension_numbers<[1], [0], [0], [1], [0, 0, 1, 1], [], []>} : vector<2x128xf32>, vector<128x384xf32>, vector<2x384xf32> -> vector<2x384xf32>
    %462 = vector.extract_strided_slice %460 {offsets = [0, 0], sizes = [2, 128], strides = [1, 1]} : vector<2x384xf32> to vector<2x128xf32>
    %463 = vector.extract_strided_slice %461 {offsets = [0, 0], sizes = [2, 128], strides = [1, 1]} : vector<2x384xf32> to vector<2x128xf32>
    %464 = arith.addf %462, %463 : vector<2x128xf32>
    %465 = arith.negf %464 : vector<2x128xf32>
    %466 = math.exp %465 : vector<2x128xf32>
    %cst_82 = arith.constant 1.000000e+00 : f32
    %467 = vector.broadcast %cst_82 : f32 to vector<2x128xf32>
    %468 = arith.addf %467, %466 : vector<2x128xf32>
    %469 = arith.divf %467, %468 : vector<2x128xf32>
    %470 = vector.extract_strided_slice %460 {offsets = [0, 128], sizes = [2, 128], strides = [1, 1]} : vector<2x384xf32> to vector<2x128xf32>
    %471 = vector.extract_strided_slice %461 {offsets = [0, 128], sizes = [2, 128], strides = [1, 1]} : vector<2x384xf32> to vector<2x128xf32>
    %472 = arith.addf %470, %471 : vector<2x128xf32>
    %473 = arith.negf %472 : vector<2x128xf32>
    %474 = math.exp %473 : vector<2x128xf32>
    %cst_83 = arith.constant 1.000000e+00 : f32
    %475 = vector.broadcast %cst_83 : f32 to vector<2x128xf32>
    %476 = arith.addf %475, %474 : vector<2x128xf32>
    %477 = arith.divf %475, %476 : vector<2x128xf32>
    %478 = vector.extract_strided_slice %460 {offsets = [0, 256], sizes = [2, 128], strides = [1, 1]} : vector<2x384xf32> to vector<2x128xf32>
    %479 = vector.extract_strided_slice %461 {offsets = [0, 256], sizes = [2, 128], strides = [1, 1]} : vector<2x384xf32> to vector<2x128xf32>
    %480 = arith.addf %479, %255 : vector<2x128xf32>
    %481 = arith.mulf %469, %480 : vector<2x128xf32>
    %482 = arith.addf %478, %481 : vector<2x128xf32>
    %483 = math.tanh %482 : vector<2x128xf32>
    %cst_84 = arith.constant 1.000000e+00 : f32
    %484 = vector.broadcast %cst_84 : f32 to vector<2x128xf32>
    %485 = arith.subf %484, %477 : vector<2x128xf32>
    %486 = arith.mulf %485, %483 : vector<2x128xf32>
    %487 = arith.mulf %477, %459 : vector<2x128xf32>
    %488 = arith.addf %486, %487 : vector<2x128xf32>
    %489 = vector.extract_strided_slice %488 {offsets = [0, 0], sizes = [2, 32], strides = [1, 1]} : vector<2x128xf32> to vector<2x32xf32>
    %490 = vector.shape_cast %285 : vector<2x128xf32> to vector<2x1x128xf32>
    %491 = vector.shape_cast %314 : vector<2x128xf32> to vector<2x1x128xf32>
    %492 = vector.shape_cast %343 : vector<2x128xf32> to vector<2x1x128xf32>
    %493 = vector.shape_cast %372 : vector<2x128xf32> to vector<2x1x128xf32>
    %494 = vector.shape_cast %401 : vector<2x128xf32> to vector<2x1x128xf32>
    %495 = vector.shape_cast %430 : vector<2x128xf32> to vector<2x1x128xf32>
    %496 = vector.shape_cast %459 : vector<2x128xf32> to vector<2x1x128xf32>
    %497 = vector.shape_cast %488 : vector<2x128xf32> to vector<2x1x128xf32>
    %498 = tpu.concatenate %490, %491, %492, %493, %494, %495, %496, %497 in 1 : vector<2x1x128xf32>, vector<2x1x128xf32>, vector<2x1x128xf32>, vector<2x1x128xf32>, vector<2x1x128xf32>, vector<2x1x128xf32>, vector<2x1x128xf32>, vector<2x1x128xf32> -> vector<2x8x128xf32>
    %499 = vector.extract_strided_slice %498 {offsets = [0, 0, 0], sizes = [2, 8, 32], strides = [1, 1, 1]} : vector<2x8x128xf32> to vector<2x8x32xf32>
    %c0_85 = arith.constant 0 : index
    %c0_86 = arith.constant 0 : index
    %c0_87 = arith.constant 0 : index
    %500 = vector.load %arg9[%c0_85, %c0_86, %c0_87] : memref<2x8x32xf32, #tpu.memory_space<vmem>>, vector<2x8x32xf32>
    tpu.vector_store %arg9[%c0_85, %c0_86, %c0_87], %499 {strides = array<i32>} : memref<2x8x32xf32, #tpu.memory_space<vmem>>, vector<2x8x32xf32>,
    %501 = vector.shape_cast %245 : vector<2x32xf32> to vector<2x1x32xf32>
    %502 = vector.shape_cast %489 : vector<2x32xf32> to vector<2x1x32xf32>
    %503 = tpu.concatenate %501, %502 in 1 : vector<2x1x32xf32>, vector<2x1x32xf32> -> vector<2x2x32xf32>
    %c0_88 = arith.constant 0 : index
    %c0_89 = arith.constant 0 : index
    %c0_90 = arith.constant 0 : index
    %504 = vector.load %arg10[%c0_88, %c0_89, %c0_90] : memref<2x2x32xf32, #tpu.memory_space<vmem>>, vector<2x2x32xf32>
    tpu.vector_store %arg10[%c0_88, %c0_89, %c0_90], %503 {strides = array<i32>} : memref<2x2x32xf32, #tpu.memory_space<vmem>>, vector<2x2x32xf32>,
    return
  }
}

</mosaic_0001>

<bundles_post_ra>
// kernel: _encoder_gru_call.1
= control target key start
LH: loop header
LB: loop body
LE: loop exit
PB: predicated region body
PF: predicated region fallthrough
CT: control target
= control target key end

     0   :  { %16 = vsyncpa [#allocation3], 0  ;;  %s7131_s0 = inlined_call_operand.vmem [shape: f32[2,8,4], index: 0, kind: input, shape index: {}]   ;;  %s7132_s1 = inlined_call_operand.vmem [shape: f32[4,384], index: 1, kind: input, shape index: {}]   ;;  %s7133_s2 = inlined_call_operand.hbm [shape: f32[128,384], index: 2, kind: input, shape index: {}]   ;;  %s7134_s3 = inlined_call_operand.vmem [shape: f32[1,384], index: 3, kind: input, shape index: {}]   ;;  %s7135_s4 = inlined_call_operand.vmem [shape: f32[1,128], index: 4, kind: input, shape index: {}]   ;;  %s7136_s5 = inlined_call_operand.hbm [shape: f32[128,384], index: 5, kind: input, shape index: {}]   ;;  %s7137_s6 = inlined_call_operand.hbm [shape: f32[128,384], index: 6, kind: input, shape index: {}]   ;;  %s7138_s7 = inlined_call_operand.vmem [shape: f32[1,384], index: 7, kind: input, shape index: {}]   ;;  %s7139_s8 = inlined_call_operand.vmem [shape: f32[1,128], index: 8, kind: input, shape index: {}]   ;;  %s7140_s9 = inlined_call_operand.hbm [shape: f32[2,8,32], index: 9, kind: output, shape index: {0}]   ;;  %s7141_s10 = inlined_call_operand.vmem [shape: f32[2,2,32], index: 10, kind: output, shape index: {1}]  }
   0x1   :  { %17 = vsyncpa [#allocation6], 0 }
   0x2   :  { %18 = vsyncpa [#allocation4], 0  ;;  %s5982_s13 = smov [#allocation5]   ;;  %s5983_s15 = smov [#allocation2]  }
   0x3   :  { %s44_s14 = sshll.u32 %s5982_s13, 4  ;;  %s28_s16 = sshll.u32 %s5983_s15, 4  ;;  %s45_s14 = int_to_ptr.vmem [resolvable:$true] %s44_s14  ;;  %s6051_s16 = int_to_ptr.vmem [resolvable:$true] %s28_s16 }
   0x4   :  { %s5888_s19 = scalar_lea.hbm %s7136_s5, 6144 }
   0x5   :  { %p5889_p0 = scmp.ne.s32.totalorder %s7136_s5, %s5888_s19  ;;  %p5892_p1 = scmp.lt.u32.totalorder %s5888_s19, %s7136_s5 }
   0x7   :  { %p5894_p2 = pnand %p5892_p1, %p5889_p0 }
   0x9   :  { %5897 = shalt.err (!%p5894_p2)
}
   0xa   :  { %s5898_s24 = scalar_lea.vmem %s45_s14, 6144  ;;  %p5903_p4 = scmp.lt.s32.totalorder %s45_s14, %s45_s14 }
   0xb   :  { %p5899_p3 = scmp.ne.s32.totalorder %s45_s14, %s5898_s24  ;;  %p5904_p5 = scmp.lt.s32.totalorder %s5898_s24, %s5898_s24 }
   0xd   :  { %p5905_p6 = por %p5904_p5, %p5903_p4 }
   0xf   :  { %p5906_p7 = pnand %p5905_p6, %p5899_p3 }
  0x11   :  { %5909 = shalt.err (!%p5906_p7)
}
  0x12   :  { %s5984_s25 = smov 384   ;;  %s5985_s26 = smov 24  }
  0x13   :  { %50 = dma.hbm_to_vmem [thread:$0]  %s7136_s5, 6144, %s45_s14, [#allocation6], %s5984_s25, %s5984_s25, %s5985_s26  }
  0x14   :  { %s5910_s11 = scalar_lea.hbm %s7133_s2, 6144 }
  0x15   :  { %p5911_p8 = scmp.ne.s32.totalorder %s7133_s2, %s5910_s11  ;;  %p5914_p9 = scmp.lt.u32.totalorder %s5910_s11, %s7133_s2 }
  0x17   :  { %p5916_p10 = pnand %p5914_p9, %p5911_p8 }
  0x19   :  { %5919 = shalt.err (!%p5916_p10)
}
  0x1a   :  { %s5920_s18 = scalar_lea.vmem %s6051_s16, 6144  ;;  %p5925_p12 = scmp.lt.s32.totalorder %s6051_s16, %s6051_s16 }
  0x1b   :  { %p5921_p11 = scmp.ne.s32.totalorder %s6051_s16, %s5920_s18  ;;  %p5926_p13 = scmp.lt.s32.totalorder %s5920_s18, %s5920_s18 }
  0x1d   :  { %p5927_p0 = por %p5926_p13, %p5925_p12 }
  0x1f   :  { %p5928_p1 = pnand %p5927_p0, %p5921_p11 }
  0x21   :  { %5931 = shalt.err (!%p5928_p1)
}
  0x22   :  { %34 = dma.hbm_to_vmem [thread:$0]  %s7133_s2, 6144, %s6051_s16, [#allocation3], %s5984_s25, %s5984_s25, %s5985_s26  }
  0x23   :  { %s5986_s19 = smov [#allocation7]   ;;  %s5932_s23 = scalar_lea.hbm %s7137_s6, 6144 }
  0x24   :  { %s56_s20 = sshll.u32 %s5986_s19, 4  ;;  %p5933_p2 = scmp.ne.s32.totalorder %s7137_s6, %s5932_s23  ;;  %s57_s20 = int_to_ptr.vmem [resolvable:$true] %s56_s20 }
  0x25   :  { %p5936_p3 = scmp.lt.u32.totalorder %s5932_s23, %s7137_s6 }
  0x27   :  { %p5938_p4 = pnand %p5936_p3, %p5933_p2 }
  0x29   :  { %5941 = shalt.err (!%p5938_p4)
}
  0x2a   :  { %s5942_s30 = scalar_lea.vmem %s57_s20, 6144  ;;  %p5947_p6 = scmp.lt.s32.totalorder %s57_s20, %s57_s20 }
  0x2b   :  { %p5943_p5 = scmp.ne.s32.totalorder %s57_s20, %s5942_s30  ;;  %p5948_p7 = scmp.lt.s32.totalorder %s5942_s30, %s5942_s30 }
  0x2d   :  { %p5949_p8 = por %p5948_p7, %p5947_p6 }
  0x2f   :  { %p5950_p9 = pnand %p5949_p8, %p5943_p5 }
  0x31   :  { %5953 = shalt.err (!%p5950_p9)
}
  0x32   :  { %62 = dma.hbm_to_vmem [thread:$0]  %s7137_s6, 6144, %s57_s20, [#allocation6], %s5984_s25, %s5984_s25, %s5985_s26  }
  0x33   :  { %5976 = dma.done.wait [#allocation3], 6144  }
  0x34   :  { %5977 = vsyncadd [#allocation3], 4294961152 }
  0x35   :  { %5978 = dma.done.wait [#allocation6], 12288  }
  0x36   :  { %5979 = vsyncadd [#allocation6], 4294955008  ;;  %v82_v0 = vlaneseq  ;;  %v5987_v1 = vmov 0.0   ;;  %v5988_v2 = vmov 1983009808   ;;  %v144_v10 = vld [vmem:[%s7132_s1] sm:$0xff] }
  0x37   :  { %333 = vmatprep.mubr.f32.mxu0 %v5987_v1  ;;  %v80_v3 = vunpack.c.l.s4 %v5988_v2  ;;  %v5989_v5 = vmov 1934713408   ;;  %vm262_vm0 = vcmask 1043456   ;;  %v147_v11 = vld [vmem:[#allocation2 + $0x8] sm:$0xff]  ;;  %v150_v12 = vld [vmem:[#allocation2 + $0x20] sm:$0xff]  ;;  %v256_v13 = vcombine.high %v144_v10, %v144_v10  ;;  %v149_v38 = vld [vmem:[#allocation2 + $0x18] sm:$0xff] }
  0x38   :  { %v6104_v4 = vshrl.u32 %v82_v0, 7  ;;  %v111_v6 = vunpack.c.l.s4 %v5989_v5  ;;  %v6110_v14 = vpack.c.bf16 %v150_v12, %v147_v11  ;;  %v76_v15 = vld [vmem:[%s7131_s0] sm:$0xff]  ;;  %v77_v16 = vld [vmem:[%s7131_s0 + $0x8] sm:$0xff]  ;;  %v153_v39 = vld [vmem:[#allocation2 + $0x38] sm:$0xff]  ;;  %v5990_v45 = vmov 0.0|0.0  }
  0x39   :  { %v81_v7 = vunpack.c.0.s8 %v80_v3  ;;  %v78_v20 = vcombine.high %v76_v15, %v5987_v1  ;;  %v93_v21 = vcombine.high %v77_v16, %v5987_v1  ;;  %3818 = vmatprep.subr.msk.mxu0 %vm262_vm0, %v256_v13  ;;  %v145_v32 = vld [vmem:[%s7132_s1 + $0x8] sm:$0xf]  ;;  %v146_v37 = vld [vmem:[#allocation2] sm:$0xff]  ;;  %v156_v40 = vld [vmem:[#allocation2 + $0x50] sm:$0xff]  ;;  %vm257_vm1 = vcmask 31744  }
  0x3a   :  { %v112_v8 = vunpack.c.0.s8 %v111_v6  ;;  %3819 = vmatpush1.msk.msra.mxu0 %vm262_vm0, %v144_v10  ;;  %4152 = vmatprep.subr.msk.mxu1 %vm262_vm0, %v145_v32  ;;  %v6134_v46 = vpack.c.bf16 %v149_v38, %v146_v37  ;;  %v148_v49 = vld [vmem:[#allocation2 + $0x10] sm:$0xff]  ;;  %v151_v50 = vld [vmem:[#allocation2 + $0x28] sm:$0xff]  ;;  %v6136_v52 = vpack.c.bf16 %v156_v40, %v153_v39  ;;  %v162_v56 = vld [vmem:[#allocation2 + $0x80] sm:$0xff]  ;;  %vm5991_vm2 = vmmov 0  }
  0x3b   :  { %v84_v9 = vsub.s32 %v81_v7, %v6104_v4  ;;  %4753 = vmatprep.subr.bf16.mxu0 %v6110_v14  ;;  %4153 = vmatpush3.msk.msra.mxu1 %vm262_vm0, %v145_v32  ;;  %v152_v53 = vld [vmem:[#allocation2 + $0x30] sm:$0xff]  ;;  %v155_v54 = vld [vmem:[#allocation2 + $0x48] sm:$0xff]  ;;  %v6140_v59 = vpack.c.bf16 %v151_v50, %v148_v49  ;;  %v154_v62 = vld [vmem:[#allocation2 + $0x40] sm:$0xff]  ;;  %vm1814_vm3 = vcmask 1041408   ;;  %vm1817_vm4 = vcmask 1045504  }
  0x3c   :  { %v115_v17 = vsub.s32 %v112_v8, %v6104_v4  ;;  %4784 = vmatprep.subr.bf16.mxu1 %v5990_v45  ;;  %v159_v55 = vld [vmem:[#allocation2 + $0x68] sm:$0xff]  ;;  %v6143_v60 = vpack.c.bf16 %v155_v54, %v152_v53  ;;  %v157_v63 = vld [vmem:[#allocation2 + $0x58] sm:$0xff]  ;;  %v158_v2 = vld [vmem:[#allocation2 + $0x60] sm:$0xff]  ;;  %vm3742_vm5 = vcmask 1040384   ;;  %vm3747_vm6 = vcmask 1042432  }
  0x3d   :  { %v85_v18 = vrot.slane %v76_v15, %v84_v9  ;;  %v100_v19 = vrot.slane %v77_v16, %v84_v9  ;;  %v92_v24 = vrot.slane %v78_v20, %v84_v9  ;;  %v107_v25 = vrot.slane %v93_v21, %v84_v9  ;;  %v161_v3 = vld [vmem:[#allocation2 + $0x78] sm:$0xff]  ;;  %v168_v6 = vld [vmem:[#allocation2 + $0xb0] sm:$0xff]  ;;  %v163_v10 = vld [vmem:[#allocation2 + $0x88] sm:$0xff] }
  0x3e   :  { %v6147_v0 = vpack.c.bf16 %v162_v56, %v159_v55  ;;  %v165_v5 = vld [vmem:[#allocation2 + $0x98] sm:$0xff]  ;;  %v6152_v7 = vpack.c.bf16 %v157_v63, %v154_v62  ;;  %v6155_v8 = vpack.c.bf16 %v161_v3, %v158_v2  ;;  %v164_v12 = vld [vmem:[#allocation2 + $0x90] sm:$0xff]  ;;  %v167_v13 = vld [vmem:[#allocation2 + $0xa8] sm:$0xff]  ;;  %v6259_v62 = vsub.s32 0, %v6104_v4 }
  0x3f   :  { %v108_v22 = vcombine.low %v85_v18, %v100_v19  ;;  %v109_v23 = vcombine.high %v85_v18, %v100_v19  ;;  %v124_v28 = vcombine.low %v92_v24, %v107_v25  ;;  %v125_v29 = vcombine.high %v92_v24, %v107_v25  ;;  %v171_v15 = vld [vmem:[#allocation2 + $0xc8] sm:$0xff]  ;;  %v174_v16 = vld [vmem:[#allocation2 + $0xe0] sm:$0xff]  ;;  %v169_v20 = vld [vmem:[#allocation2 + $0xb8] sm:$0xff] }
  0x40   :  { %v6159_v11 = vpack.c.bf16 %v168_v6, %v165_v5  ;;  %v6168_v18 = vpack.c.bf16 %v167_v13, %v164_v12  ;;  %v166_v19 = vld [vmem:[#allocation2 + $0xa0] sm:$0xff]  ;;  %v6172_v21 = vpack.c.bf16 %v174_v16, %v171_v15  ;;  %v177_v24 = vld [vmem:[#allocation2 + $0xf8] sm:$0xff]  ;;  %v180_v25 = vld [vmem:[#allocation2 + $0x110] sm:$0xff]  ;;  %v203_v3 = vsub.s32 1, %v6104_v4 }
  0x41   :  { %v116_v26 = vrot.slane %v108_v22, %v115_v17  ;;  %v123_v27 = vrot.slane %v109_v23, %v115_v17  ;;  %v132_v33 = vrot.slane %v124_v28, %v115_v17  ;;  %v139_v34 = vrot.slane %v125_v29, %v115_v17  ;;  %v170_v22 = vld [vmem:[#allocation2 + $0xc0] sm:$0xff]  ;;  %v173_v23 = vld [vmem:[#allocation2 + $0xd8] sm:$0xff]  ;;  %v172_v28 = vld [vmem:[#allocation2 + $0xd0] sm:$0xff] }
  0x42   :  { %v175_v29 = vld [vmem:[#allocation2 + $0xe8] sm:$0xff]  ;;  %v178_v37 = vld [vmem:[#allocation2 + $0x100] sm:$0xff]  ;;  %v181_v38 = vld [vmem:[#allocation2 + $0x118] sm:$0xff]  ;;  %vm3752_vm7 = vcmask 1044480   ;;  %vm3757_vm8 = vcmask 1046528   ;;  %vm3760_vm9 = vcmask 261120  }
  0x43   :  { %v140_v30 = vcombine.high %v116_v26, %v5987_v1  ;;  %v141_v31 = vcombine.high %v123_v27, %v5987_v1  ;;  %v142_v41 = vcombine.high %v132_v33, %v5987_v1  ;;  %v143_v42 = vcombine.high %v139_v34, %v5987_v1  ;;  %v179_v32 = vld [vmem:[#allocation2 + $0x108] sm:$0xff]  ;;  %v182_v40 = vld [vmem:[#allocation2 + $0x120] sm:$0xff] }
  0x44   :  { %v187_v49 = vld [vmem:[#allocation2 + $0x148] sm:$0xff]  ;;  %v190_v56 = vld [vmem:[#allocation2 + $0x160] sm:$0xff]  ;;  %vm3793_vm10 = vcmask 254976  }
  0x45   :  { %v220_v35 = vcombine.low %v116_v26, %v140_v30  ;;  %v221_v36 = vcombine.low %v123_v27, %v141_v31  ;;  %v237_v47 = vcombine.low %v132_v33, %v142_v41  ;;  %v238_v48 = vcombine.low %v139_v34, %v143_v42  ;;  %v176_v31 = vld [vmem:[#allocation2 + $0xf0] sm:$0xff]  ;;  %v183_v33 = vld [vmem:[#allocation2 + $0x128] sm:$0xff]  ;;  %v186_v34 = vld [vmem:[#allocation2 + $0x140] sm:$0xff] }
  0x46   :  { %v6175_v26 = vpack.c.bf16 %v169_v20, %v166_v19  ;;  %v6178_v27 = vpack.c.bf16 %v173_v23, %v170_v22  ;;  %v6182_v30 = vpack.c.bf16 %v180_v25, %v177_v24  ;;  %v6192_v39 = vpack.c.bf16 %v186_v34, %v183_v33  ;;  %v185_v41 = vld [vmem:[#allocation2 + $0x138] sm:$0xff]  ;;  %v191_v53 = vld [vmem:[#allocation2 + $0x168] sm:$0xff]  ;;  %v194_v63 = vld [vmem:[%s7134_s3] sm:$0x7] }
  0x47   :  { %v228_v43 = vrot.slane %v220_v35, %v84_v9  ;;  %v235_v44 = vrot.slane %v221_v36, %v84_v9  ;;  %v245_v57 = vrot.slane %v237_v47, %v84_v9  ;;  %v252_v58 = vrot.slane %v238_v48, %v84_v9  ;;  %v160_v9 = vld [vmem:[#allocation2 + $0x70] sm:$0xff]  ;;  %v189_v42 = vld [vmem:[#allocation2 + $0x158] sm:$0xff] }
  0x48   :  { %v6165_v17 = vpack.c.bf16 %v163_v10, %v160_v9  ;;  %v6185_v35 = vpack.c.bf16 %v175_v29, %v172_v28  ;;  %v6188_v36 = vpack.c.bf16 %v179_v32, %v176_v31  ;;  %v6198_v47 = vpack.c.bf16 %v185_v41, %v182_v40  ;;  %v184_v48 = vld [vmem:[#allocation2 + $0x130] sm:$0xff] }
  0x49   :  { %v236_v51 = vcombine.low %v228_v43, %v235_v44  ;;  %v253_v61 = vcombine.low %v245_v57, %v252_v58  ;;  %v192_v43 = vld [vmem:[#allocation2 + $0x170] sm:$0xff]  ;;  %v6195_v44 = vpack.c.bf16 %v181_v38, %v178_v37  ;;  %v6205_v54 = vpack.c.bf16 %v187_v49, %v184_v48  ;;  %v193_v57 = vld [vmem:[#allocation2 + $0x178] sm:$0xff] }
  0x4a   :  { %v6202_v50 = vpack.c.bf16 %v192_v43, %v189_v42  ;;  %v6213_v58 = vpack.c.bf16 %v193_v57, %v190_v56  ;;  %v200_v9 = vrot.slane %v194_v63, %v6259_v62  ;;  %v204_v12 = vrot.slane %v194_v63, %v203_v3  ;;  %v6285_v42 = vld [vmem:[%s7135_s4] ss:$0 sm:$0xff] }
  0x4b   :  { %3820 = vmatmul.mubr.msk.f32.vlgmr.msra.gmra.mrb[0].mxu0 %vm257_vm1, %v236_v51  ;;  %4154 = vmatprep.mubr.msk.f32.mxu1 %vm257_vm1, %v236_v51  ;;  %v188_v51 = vld [vmem:[#allocation2 + $0x150] sm:$0xff] }
  0x4c   :  { %4755 = vmatpush1.bf16.msra.mxu0 %v6134_v46  ;;  %339 = vmatprep.mubr.f32.mxu0 %v5987_v1  ;;  %v6208_v55 = vpack.c.bf16 %v191_v53, %v188_v51 }
  0x4d   :  { %4757 = vmatprep.subr.bf16.mxu0 %v6136_v52  ;;  %4155 = vmatmul.mubr.msk.f32.vlgmr.msra.gmra.mrb[0].mxu1 %vm257_vm1, %v253_v61 }
  0x4e   :  { %4786 = vmatpush3.bf16.msra.mxu1 %v6140_v59  ;;  %4189 = vmatprep.mubr.msk.f32.mxu1 %vm5991_vm2, %v5987_v1 }
  0x4f   :  { %3821 = vmatmul.mubr.msk.f32.gmra.mrb[2].mxu0 %vm257_vm1, %v253_v61  ;;  %4787 = vmatprep.subr.bf16.mxu1 %v5990_v45  ;;  %v207_v61 = vsub.s32 2, %v6104_v4 }
  0x50   :  { %4759 = vmatpush1.bf16.msra.mxu0 %v6143_v60  ;;  %491 = vmatprep.mubr.f32.mxu0 %v5987_v1 }
  0x51   :  { %4761 = vmatprep.subr.bf16.mxu0 %v6147_v0  ;;  %v208_v5 = vrot.slane %v194_v63, %v207_v61 }
  0x52   :  { %4789 = vmatpush3.bf16.msra.mxu1 %v6152_v7 }
  0x53   :  { %4790 = vmatprep.subr.bf16.mxu1 %v5990_v45 }
  0x54   :  { %4763 = vmatpush1.bf16.msra.mxu0 %v6155_v8 }
  0x55   :  { %4765 = vmatprep.subr.bf16.mxu0 %v6159_v11 }
  0x56   :  { %4792 = vmatpush3.bf16.msra.mxu1 %v6165_v17 }
  0x57   :  { %4793 = vmatprep.subr.bf16.mxu1 %v5990_v45 }
  0x58   :  { %4767 = vmatpush1.bf16.msra.mxu0 %v6168_v18 }
  0x59   :  { %4769 = vmatprep.subr.bf16.mxu0 %v6172_v21 }
  0x5a   :  { %4795 = vmatpush3.bf16.msra.mxu1 %v6175_v26 }
  0x5b   :  { %4796 = vmatprep.subr.bf16.mxu1 %v5990_v45 }
  0x5c   :  { %4771 = vmatpush1.bf16.msra.mxu0 %v6178_v27 }
  0x5d   :  { %4773 = vmatprep.subr.bf16.mxu0 %v6182_v30 }
  0x5e   :  { %4798 = vmatpush3.bf16.msra.mxu1 %v6185_v35 }
  0x5f   :  { %4799 = vmatprep.subr.bf16.mxu1 %v5990_v45 }
  0x60   :  { %4775 = vmatpush1.bf16.msra.mxu0 %v6188_v36 }
  0x61   :  { %4777 = vmatprep.subr.bf16.mxu0 %v6192_v39 }
  0x62   :  { %4801 = vmatpush3.bf16.msra.mxu1 %v6195_v44 }
  0x63   :  { %4802 = vmatprep.subr.bf16.mxu1 %v5990_v45 }
  0x64   :  { %4779 = vmatpush1.bf16.msra.mxu0 %v6198_v47 }
  0x65   :  { %4781 = vmatprep.subr.bf16.mxu0 %v6202_v50 }
  0x66   :  { %4804 = vmatpush3.bf16.msra.mxu1 %v6205_v54 }
  0x67   :  { %4805 = vmatprep.subr.bf16.mxu1 %v5990_v45 }
  0x68   :  { %4783 = vmatpush1.bf16.msra.mxu0 %v6208_v55 }
  0x69   :  { %4809 = vmatprep.subr.bf16.mxu0 %v6110_v14 }
  0x6a   :  { %4807 = vmatpush3.bf16.msra.mxu1 %v6213_v58 }
  0x6b   :  { %492 = vmatmul.mubr.f32.vlgmr.msra.gmra.mrb[4].mxu0 %v5987_v1  ;;  %4840 = vmatprep.subr.bf16.mxu1 %v5990_v45 }
  0x6c   :  { %4811 = vmatpush1.bf16.msra.mxu0 %v6134_v46  ;;  %654 = vmatprep.mubr.f32.mxu0 %v5987_v1 }
  0x6d   :  { %4813 = vmatprep.subr.bf16.mxu0 %v6136_v52  ;;  %4190 = vmatmul.mubr.f32.vlgmr.msra.gmra.mrb[2].mxu1 %v5987_v1 }
  0x6e   :  { %4842 = vmatpush3.bf16.msra.mxu1 %v6140_v59  ;;  %4224 = vmatprep.mubr.msk.f32.mxu1 %vm5991_vm2, %v5987_v1 }
  0x6f   :  { %4843 = vmatprep.subr.bf16.mxu1 %v5990_v45 }
  0x70   :  { %4815 = vmatpush1.bf16.msra.mxu0 %v6143_v60 }
  0x71   :  { %4817 = vmatprep.subr.bf16.mxu0 %v6147_v0 }
  0x72   :  { %4845 = vmatpush3.bf16.msra.mxu1 %v6152_v7 }
  0x73   :  { %4846 = vmatprep.subr.bf16.mxu1 %v5990_v45 }
  0x74   :  { %4819 = vmatpush1.bf16.msra.mxu0 %v6155_v8 }
  0x75   :  { %4821 = vmatprep.subr.bf16.mxu0 %v6159_v11 }
  0x76   :  { %4848 = vmatpush3.bf16.msra.mxu1 %v6165_v17 }
  0x77   :  { %4849 = vmatprep.subr.bf16.mxu1 %v5990_v45 }
  0x78   :  { %4823 = vmatpush1.bf16.msra.mxu0 %v6168_v18 }
  0x79   :  { %4825 = vmatprep.subr.bf16.mxu0 %v6172_v21 }
  0x7a   :  { %4851 = vmatpush3.bf16.msra.mxu1 %v6175_v26 }
  0x7b   :  { %4852 = vmatprep.subr.bf16.mxu1 %v5990_v45 }
  0x7c   :  { %4827 = vmatpush1.bf16.msra.mxu0 %v6178_v27 }
  0x7d   :  { %4829 = vmatprep.subr.bf16.mxu0 %v6182_v30 }
  0x7e   :  { %4854 = vmatpush3.bf16.msra.mxu1 %v6185_v35 }
  0x7f   :  { %4855 = vmatprep.subr.bf16.mxu1 %v5990_v45 }
  0x80   :  { %4831 = vmatpush1.bf16.msra.mxu0 %v6188_v36 }
  0x81   :  { %4833 = vmatprep.subr.bf16.mxu0 %v6192_v39 }
  0x82   :  { %4857 = vmatpush3.bf16.msra.mxu1 %v6195_v44 }
  0x83   :  { %4858 = vmatprep.subr.bf16.mxu1 %v5990_v45 }
  0x84   :  { %4835 = vmatpush1.bf16.msra.mxu0 %v6198_v47 }
  0x85   :  { %4837 = vmatprep.subr.bf16.mxu0 %v6202_v50 }
  0x86   :  { %4860 = vmatpush3.bf16.msra.mxu1 %v6205_v54 }
  0x87   :  { %4861 = vmatprep.subr.bf16.mxu1 %v5990_v45 }
  0x88   :  { %4839 = vmatpush1.bf16.msra.mxu0 %v6208_v55 }
  0x89   :  { %4865 = vmatprep.subr.bf16.mxu0 %v6110_v14 }
  0x8a   :  { %4863 = vmatpush3.bf16.msra.mxu1 %v6213_v58 }
  0x8b   :  { %4896 = vmatprep.subr.bf16.mxu1 %v5990_v45 }
 0x11e   :  { %v335_v2 = vpop.f32.mrb[0].mxu0 }
 0x11f   :  { %v337_v6 = vpop.f32.mrb[1].mxu0  ;;  %v6276_v23 = vadd.f32 %v335_v2, %v200_v9 }
 0x120   :  { %v4156_v10 = vpop.f32.mrb[0].mxu1  ;;  %v6279_v29 = vadd.f32 %v337_v6, %v204_v12 }
 0x121   :  { %v6270_v13 = vadd.f32 %v4156_v10, %v208_v5  ;;  %v412_v16 = vpop.f32.mrb[1].mxu1 }
 0x122   :  { %v341_v15 = vpop.f32.mrb[2].mxu0  ;;  %v6288_v51 = vadd.f32 %v412_v16, %v208_v5 }
 0x123   :  { %v6272_v19 = vadd.f32 %v341_v15, %v200_v9  ;;  %v343_v20 = vpop.f32.mrb[3].mxu0 }
 0x124   :  { %v6274_v22 = vadd.f32 %v343_v20, %v204_v12 }
 0x13e   :  { %v493_v24 = vpop.f32.mrb[4].mxu0 }
 0x13f   :  { %v568_v25 = vadd.f32 %v493_v24, %v6276_v23  ;;  %v495_v28 = vpop.f32.mrb[5].mxu0 }
 0x140   :  { %v564_v32 = vpop.f32.mrb[2].mxu1  ;;  %v575_v33 = vadd.f32 %v495_v28, %v6279_v29 }
 0x141   :  { %v3826_v31 = vmul.f32 -1.442695, %v568_v25  ;;  %v4191_v34 = vpop.f32.mrb[3].mxu1  ;;  %v582_v48 = vadd.f32 %v6285_v42, %v564_v32 }
 0x142   :  { %v3827_v37 = vmul.f32 -1.442695, %v575_v33 }
 0x143   :  { %5727 = vpow2.f32 %v3826_v31 }
 0x144   :  { %5729 = vpow2.f32 %v3827_v37 }
 0x14d   :  { %v5728_v38 = vpop.eup %5727 }
 0x14e   :  { %v572_v40 = vadd.f32 1.0, %v5728_v38  ;;  %v5730_v41 = vpop.eup %5729 }
 0x14f   :  { %v579_v43 = vadd.f32 1.0, %v5730_v41 }
 0x150   :  { %5731 = vrcp.f32 %v572_v40 }
 0x151   :  { %5733 = vrcp.f32 %v579_v43 }
 0x15a   :  { %v5732_v49 = vpop.eup %5731 }
 0x15b   :  { %v583_v53 = vmul.f32 %v5732_v49, %v582_v48  ;;  %v5734_v57 = vpop.eup %5733 }
 0x15c   :  { %v586_v63 = vsub.f32 1.0, %v5734_v57  ;;  %v588_v9 = vmul.f32 0.0, %v5734_v57 }
 0x15d   :  { %v584_v56 = vadd.f32 %v583_v53, %v6288_v51 }
 0x15f   :  { %5735 = vtanh.f32 %v584_v56 }
 0x169   :  { %v5736_v2 = vpop.eup %5735 }
 0x16a   :  { %v587_v6 = vmul.f32 %v5736_v2, %v586_v63 }
 0x16c   :  { %v6291_v10 = vadd.f32 %v588_v9, %v587_v6 }
 0x16e   :  { %655 = vmatmul.mubr.f32.vlgmr.msra.gmra.mrb[6].mxu0 %v6291_v10  ;;  %4225 = vmatmul.mubr.f32.vlgmr.msra.gmra.mrb[4].mxu1 %v6291_v10  ;;  %v761_v56 = vrot.slane %v6291_v10, 6 }
 0x16f   :  { %4867 = vmatpush1.bf16.msra.mxu0 %v6134_v46  ;;  %4898 = vmatpush3.bf16.msra.mxu1 %v6140_v59 }
 0x170   :  { %4869 = vmatprep.subr.bf16.mxu0 %v6136_v52  ;;  %4899 = vmatprep.subr.bf16.mxu1 %v5990_v45 }
 0x171   :  { %832 = vmatprep.mubr.f32.mxu0 %v5987_v1  ;;  %4259 = vmatprep.mubr.msk.f32.mxu1 %vm5991_vm2, %v5987_v1 }
 0x173   :  { %4871 = vmatpush1.bf16.msra.mxu0 %v6143_v60  ;;  %4901 = vmatpush3.bf16.msra.mxu1 %v6152_v7 }
 0x174   :  { %4873 = vmatprep.subr.bf16.mxu0 %v6147_v0  ;;  %4902 = vmatprep.subr.bf16.mxu1 %v5990_v45 }
 0x177   :  { %4875 = vmatpush1.bf16.msra.mxu0 %v6155_v8  ;;  %4904 = vmatpush3.bf16.msra.mxu1 %v6165_v17 }
 0x178   :  { %4877 = vmatprep.subr.bf16.mxu0 %v6159_v11  ;;  %4905 = vmatprep.subr.bf16.mxu1 %v5990_v45 }
 0x17b   :  { %4879 = vmatpush1.bf16.msra.mxu0 %v6168_v18  ;;  %4907 = vmatpush3.bf16.msra.mxu1 %v6175_v26 }
 0x17c   :  { %4881 = vmatprep.subr.bf16.mxu0 %v6172_v21  ;;  %4908 = vmatprep.subr.bf16.mxu1 %v5990_v45 }
 0x17f   :  { %4883 = vmatpush1.bf16.msra.mxu0 %v6178_v27  ;;  %4910 = vmatpush3.bf16.msra.mxu1 %v6185_v35 }
 0x180   :  { %4885 = vmatprep.subr.bf16.mxu0 %v6182_v30  ;;  %4911 = vmatprep.subr.bf16.mxu1 %v5990_v45 }
 0x183   :  { %4887 = vmatpush1.bf16.msra.mxu0 %v6188_v36  ;;  %4913 = vmatpush3.bf16.msra.mxu1 %v6195_v44 }
 0x184   :  { %4889 = vmatprep.subr.bf16.mxu0 %v6192_v39  ;;  %4914 = vmatprep.subr.bf16.mxu1 %v5990_v45 }
 0x187   :  { %4891 = vmatpush1.bf16.msra.mxu0 %v6198_v47  ;;  %4916 = vmatpush3.bf16.msra.mxu1 %v6205_v54 }
 0x188   :  { %4893 = vmatprep.subr.bf16.mxu0 %v6202_v50  ;;  %4917 = vmatprep.subr.bf16.mxu1 %v5990_v45 }
 0x18b   :  { %4895 = vmatpush1.bf16.msra.mxu0 %v6208_v55  ;;  %4919 = vmatpush3.bf16.msra.mxu1 %v6213_v58 }
 0x18c   :  { %4921 = vmatprep.subr.bf16.mxu0 %v6110_v14  ;;  %4952 = vmatprep.subr.bf16.mxu1 %v5990_v45 }
 0x241   :  { %v656_v5 = vpop.f32.mrb[6].mxu0  ;;  %v727_v12 = vpop.f32.mrb[4].mxu1 }
 0x242   :  { %v732_v15 = vrot.slane %v656_v5, 6  ;;  %v658_v16 = vpop.f32.mrb[7].mxu0  ;;  %v4226_v20 = vpop.f32.mrb[5].mxu1  ;;  %v751_v38 = vadd.f32 %v6285_v42, %v727_v12 }
 0x243   :  { %v742_v24 = vrot.slane %v658_v16, 6 }
 0x244   :  { %v734_v25 = vadd.f32 %v732_v15, %v6276_v23  ;;  %v753_v41 = vrot.slane %v751_v38, 6 }
 0x245   :  { %v744_v31 = vadd.f32 %v742_v24, %v6279_v29 }
 0x246   :  { %v3828_v28 = vmul.f32 -1.442695, %v734_v25 }
 0x247   :  { %v3829_v32 = vmul.f32 -1.442695, %v744_v31 }
 0x248   :  { %5737 = vpow2.f32 %v3828_v28 }
 0x249   :  { %5739 = vpow2.f32 %v3829_v32 }
 0x252   :  { %v5738_v33 = vpop.eup %5737 }
 0x253   :  { %v738_v34 = vadd.f32 1.0, %v5738_v33  ;;  %v5740_v37 = vpop.eup %5739 }
 0x254   :  { %v748_v40 = vadd.f32 1.0, %v5740_v37 }
 0x255   :  { %5741 = vrcp.f32 %v738_v34 }
 0x256   :  { %5743 = vrcp.f32 %v748_v40 }
 0x25f   :  { %v5742_v43 = vpop.eup %5741 }
 0x260   :  { %v755_v48 = vmul.f32 %v5742_v43, %v753_v41  ;;  %v5744_v53 = vpop.eup %5743 }
 0x261   :  { %v758_v57 = vsub.f32 1.0, %v5744_v53  ;;  %v763_v6 = vmul.f32 %v5744_v53, %v761_v56 }
 0x262   :  { %v756_v49 = vadd.f32 %v755_v48, %v6288_v51 }
 0x264   :  { %5745 = vtanh.f32 %v756_v49 }
 0x26e   :  { %v5746_v63 = vpop.eup %5745 }
 0x26f   :  { %v759_v2 = vmul.f32 %v5746_v63, %v758_v57 }
 0x271   :  { %v6335_v9 = vadd.f32 %v763_v6, %v759_v2 }
 0x273   :  { %v766_v5 = vrot.slane %v6335_v9, 2  ;;  %v938_v49 = vrot.slane %v6335_v9, 6 }
 0x275   :  { %833 = vmatmul.mubr.f32.vlgmr.msra.gmra.mrb[8].mxu0 %v766_v5  ;;  %4260 = vmatmul.mubr.f32.vlgmr.msra.gmra.mrb[6].mxu1 %v766_v5 }
 0x276   :  { %4923 = vmatpush1.bf16.msra.mxu0 %v6134_v46  ;;  %4954 = vmatpush3.bf16.msra.mxu1 %v6140_v59 }
 0x277   :  { %4925 = vmatprep.subr.bf16.mxu0 %v6136_v52  ;;  %4955 = vmatprep.subr.bf16.mxu1 %v5990_v45 }
 0x278   :  { %1009 = vmatprep.mubr.f32.mxu0 %v5987_v1  ;;  %4294 = vmatprep.mubr.msk.f32.mxu1 %vm5991_vm2, %v5987_v1 }
 0x27a   :  { %4927 = vmatpush1.bf16.msra.mxu0 %v6143_v60  ;;  %4957 = vmatpush3.bf16.msra.mxu1 %v6152_v7 }
 0x27b   :  { %4929 = vmatprep.subr.bf16.mxu0 %v6147_v0  ;;  %4958 = vmatprep.subr.bf16.mxu1 %v5990_v45 }
 0x27e   :  { %4931 = vmatpush1.bf16.msra.mxu0 %v6155_v8  ;;  %4960 = vmatpush3.bf16.msra.mxu1 %v6165_v17 }
 0x27f   :  { %4933 = vmatprep.subr.bf16.mxu0 %v6159_v11  ;;  %4961 = vmatprep.subr.bf16.mxu1 %v5990_v45 }
 0x282   :  { %4935 = vmatpush1.bf16.msra.mxu0 %v6168_v18  ;;  %4963 = vmatpush3.bf16.msra.mxu1 %v6175_v26 }
 0x283   :  { %4937 = vmatprep.subr.bf16.mxu0 %v6172_v21  ;;  %4964 = vmatprep.subr.bf16.mxu1 %v5990_v45 }
 0x286   :  { %4939 = vmatpush1.bf16.msra.mxu0 %v6178_v27  ;;  %4966 = vmatpush3.bf16.msra.mxu1 %v6185_v35 }
 0x287   :  { %4941 = vmatprep.subr.bf16.mxu0 %v6182_v30  ;;  %4967 = vmatprep.subr.bf16.mxu1 %v5990_v45 }
 0x28a   :  { %4943 = vmatpush1.bf16.msra.mxu0 %v6188_v36  ;;  %4969 = vmatpush3.bf16.msra.mxu1 %v6195_v44 }
 0x28b   :  { %4945 = vmatprep.subr.bf16.mxu0 %v6192_v39  ;;  %4970 = vmatprep.subr.bf16.mxu1 %v5990_v45 }
 0x28e   :  { %4947 = vmatpush1.bf16.msra.mxu0 %v6198_v47  ;;  %4972 = vmatpush3.bf16.msra.mxu1 %v6205_v54 }
 0x28f   :  { %4949 = vmatprep.subr.bf16.mxu0 %v6202_v50  ;;  %4973 = vmatprep.subr.bf16.mxu1 %v5990_v45 }
 0x292   :  { %4951 = vmatpush1.bf16.msra.mxu0 %v6208_v55  ;;  %4975 = vmatpush3.bf16.msra.mxu1 %v6213_v58 }
 0x293   :  { %4977 = vmatprep.subr.bf16.mxu0 %v6110_v14  ;;  %5008 = vmatprep.subr.bf16.mxu1 %v5990_v45 }
 0x348   :  { %v834_v12 = vpop.f32.mrb[8].mxu0  ;;  %v905_v15 = vpop.f32.mrb[6].mxu1 }
 0x349   :  { %v910_v16 = vrot.slane %v834_v12, 4  ;;  %v836_v20 = vpop.f32.mrb[9].mxu0  ;;  %v4261_v24 = vpop.f32.mrb[7].mxu1  ;;  %v929_v41 = vadd.f32 %v6285_v42, %v905_v15  ;;  %v1815_v15 = vsel %vm1814_vm3, %v6291_v10, %v6335_v9 }
 0x34a   :  { %v920_v25 = vrot.slane %v836_v20, 4 }
 0x34b   :  { %v912_v28 = vadd.f32 %v910_v16, %v6276_v23  ;;  %v931_v43 = vrot.slane %v929_v41, 4 }
 0x34c   :  { %v922_v31 = vadd.f32 %v920_v25, %v6279_v29 }
 0x34d   :  { %v3830_v32 = vmul.f32 -1.442695, %v912_v28 }
 0x34e   :  { %v3831_v33 = vmul.f32 -1.442695, %v922_v31 }
 0x34f   :  { %5747 = vpow2.f32 %v3830_v32 }
 0x350   :  { %5749 = vpow2.f32 %v3831_v33 }
 0x359   :  { %v5748_v34 = vpop.eup %5747 }
 0x35a   :  { %v5750_v37 = vpop.eup %5749  ;;  %v916_v38 = vadd.f32 1.0, %v5748_v34 }
 0x35b   :  { %v926_v40 = vadd.f32 1.0, %v5750_v37 }
 0x35c   :  { %5751 = vrcp.f32 %v916_v38 }
 0x35d   :  { %5753 = vrcp.f32 %v926_v40 }
 0x366   :  { %v5752_v48 = vpop.eup %5751 }
 0x367   :  { %v5754_v53 = vpop.eup %5753  ;;  %v933_v56 = vmul.f32 %v5752_v48, %v931_v43 }
 0x368   :  { %v940_v57 = vmul.f32 %v5754_v53, %v938_v49  ;;  %v936_v2 = vsub.f32 1.0, %v5754_v53 }
 0x369   :  { %v934_v63 = vadd.f32 %v933_v56, %v6288_v51 }
 0x36b   :  { %5755 = vtanh.f32 %v934_v63 }
 0x375   :  { %v5756_v6 = vpop.eup %5755 }
 0x376   :  { %v937_v5 = vmul.f32 %v5756_v6, %v936_v2 }
 0x378   :  { %v6378_v12 = vadd.f32 %v940_v57, %v937_v5 }
 0x37a   :  { %v943_v16 = vrot.slane %v6378_v12, 4  ;;  %v6386_v20 = vsel %vm262_vm0, %v1815_v15, %v6378_v12  ;;  %v1115_v56 = vrot.slane %v6378_v12, 6 }
 0x37c   :  { %1010 = vmatmul.mubr.f32.vlgmr.msra.gmra.mrb[10].mxu0 %v943_v16  ;;  %4295 = vmatmul.mubr.f32.vlgmr.msra.gmra.mrb[8].mxu1 %v943_v16 }
 0x37d   :  { %4979 = vmatpush1.bf16.msra.mxu0 %v6134_v46  ;;  %5010 = vmatpush3.bf16.msra.mxu1 %v6140_v59 }
 0x37e   :  { %4981 = vmatprep.subr.bf16.mxu0 %v6136_v52  ;;  %5011 = vmatprep.subr.bf16.mxu1 %v5990_v45 }
 0x37f   :  { %1186 = vmatprep.mubr.f32.mxu0 %v5987_v1  ;;  %4329 = vmatprep.mubr.msk.f32.mxu1 %vm5991_vm2, %v5987_v1 }
 0x381   :  { %4983 = vmatpush1.bf16.msra.mxu0 %v6143_v60  ;;  %5013 = vmatpush3.bf16.msra.mxu1 %v6152_v7 }
 0x382   :  { %4985 = vmatprep.subr.bf16.mxu0 %v6147_v0  ;;  %5014 = vmatprep.subr.bf16.mxu1 %v5990_v45 }
 0x385   :  { %4987 = vmatpush1.bf16.msra.mxu0 %v6155_v8  ;;  %5016 = vmatpush3.bf16.msra.mxu1 %v6165_v17 }
 0x386   :  { %4989 = vmatprep.subr.bf16.mxu0 %v6159_v11  ;;  %5017 = vmatprep.subr.bf16.mxu1 %v5990_v45 }
 0x389   :  { %4991 = vmatpush1.bf16.msra.mxu0 %v6168_v18  ;;  %5019 = vmatpush3.bf16.msra.mxu1 %v6175_v26 }
 0x38a   :  { %4993 = vmatprep.subr.bf16.mxu0 %v6172_v21  ;;  %5020 = vmatprep.subr.bf16.mxu1 %v5990_v45 }
 0x38d   :  { %4995 = vmatpush1.bf16.msra.mxu0 %v6178_v27  ;;  %5022 = vmatpush3.bf16.msra.mxu1 %v6185_v35 }
 0x38e   :  { %4997 = vmatprep.subr.bf16.mxu0 %v6182_v30  ;;  %5023 = vmatprep.subr.bf16.mxu1 %v5990_v45 }
 0x391   :  { %4999 = vmatpush1.bf16.msra.mxu0 %v6188_v36  ;;  %5025 = vmatpush3.bf16.msra.mxu1 %v6195_v44 }
 0x392   :  { %5001 = vmatprep.subr.bf16.mxu0 %v6192_v39  ;;  %5026 = vmatprep.subr.bf16.mxu1 %v5990_v45 }
 0x395   :  { %5003 = vmatpush1.bf16.msra.mxu0 %v6198_v47  ;;  %5028 = vmatpush3.bf16.msra.mxu1 %v6205_v54 }
 0x396   :  { %5005 = vmatprep.subr.bf16.mxu0 %v6202_v50  ;;  %5029 = vmatprep.subr.bf16.mxu1 %v5990_v45 }
 0x399   :  { %5007 = vmatpush1.bf16.msra.mxu0 %v6208_v55  ;;  %5031 = vmatpush3.bf16.msra.mxu1 %v6213_v58 }
 0x39a   :  { %5033 = vmatprep.subr.bf16.mxu0 %v6110_v14  ;;  %5064 = vmatprep.subr.bf16.mxu1 %v5990_v45 }
 0x44f   :  { %v1011_v10 = vpop.f32.mrb[10].mxu0  ;;  %v1082_v9 = vpop.f32.mrb[8].mxu1 }
 0x450   :  { %v1087_v24 = vrot.slane %v1011_v10, 2  ;;  %v1013_v25 = vpop.f32.mrb[11].mxu0  ;;  %v4296_v28 = vpop.f32.mrb[9].mxu1  ;;  %v1106_v48 = vadd.f32 %v6285_v42, %v1082_v9 }
 0x451   :  { %v1097_v31 = vrot.slane %v1013_v25, 2 }
 0x452   :  { %v1089_v32 = vadd.f32 %v1087_v24, %v6276_v23  ;;  %v1108_v49 = vrot.slane %v1106_v48, 2 }
 0x453   :  { %v1099_v33 = vadd.f32 %v1097_v31, %v6279_v29 }
 0x454   :  { %v3832_v34 = vmul.f32 -1.442695, %v1089_v32 }
 0x455   :  { %v3833_v37 = vmul.f32 -1.442695, %v1099_v33 }
 0x456   :  { %5757 = vpow2.f32 %v3832_v34 }
 0x457   :  { %5759 = vpow2.f32 %v3833_v37 }
 0x460   :  { %v5758_v38 = vpop.eup %5757 }
 0x461   :  { %v5760_v40 = vpop.eup %5759  ;;  %v1093_v41 = vadd.f32 1.0, %v5758_v38 }
 0x462   :  { %v1103_v43 = vadd.f32 1.0, %v5760_v40 }
 0x463   :  { %5761 = vrcp.f32 %v1093_v41 }
 0x464   :  { %5763 = vrcp.f32 %v1103_v43 }
 0x46d   :  { %v5762_v53 = vpop.eup %5761 }
 0x46e   :  { %v5764_v57 = vpop.eup %5763  ;;  %v1110_v23 = vmul.f32 %v5762_v53, %v1108_v49 }
 0x46f   :  { %v1117_v63 = vmul.f32 %v5764_v57, %v1115_v56  ;;  %v1113_v2 = vsub.f32 1.0, %v5764_v57 }
 0x470   :  { %v1111_v29 = vadd.f32 %v1110_v23, %v6288_v51 }
 0x472   :  { %5765 = vtanh.f32 %v1111_v29 }
 0x47c   :  { %v5766_v6 = vpop.eup %5765 }
 0x47d   :  { %v1114_v5 = vmul.f32 %v5766_v6, %v1113_v2 }
 0x47f   :  { %v1118_v15 = vadd.f32 %v1117_v63, %v1114_v5 }
 0x481   :  { %v6428_v16 = vrot.slane %v1118_v15, 6  ;;  %v6432_v10 = vsel %vm1817_vm4, %v6386_v20, %v1118_v15 }
 0x483   :  { %1187 = vmatmul.mubr.f32.vlgmr.msra.gmra.mrb[12].mxu0 %v6428_v16  ;;  %4330 = vmatmul.mubr.f32.vlgmr.msra.gmra.mrb[10].mxu1 %v6428_v16 }
 0x484   :  { %5035 = vmatpush1.bf16.msra.mxu0 %v6134_v46  ;;  %5066 = vmatpush3.bf16.msra.mxu1 %v6140_v59 }
 0x485   :  { %5037 = vmatprep.subr.bf16.mxu0 %v6136_v52  ;;  %5067 = vmatprep.subr.bf16.mxu1 %v5990_v45 }
 0x486   :  { %1349 = vmatprep.mubr.f32.mxu0 %v5987_v1  ;;  %4364 = vmatprep.mubr.msk.f32.mxu1 %vm5991_vm2, %v5987_v1 }
 0x488   :  { %5039 = vmatpush1.bf16.msra.mxu0 %v6143_v60  ;;  %5069 = vmatpush3.bf16.msra.mxu1 %v6152_v7 }
 0x489   :  { %5041 = vmatprep.subr.bf16.mxu0 %v6147_v0  ;;  %5070 = vmatprep.subr.bf16.mxu1 %v5990_v45 }
 0x48c   :  { %5043 = vmatpush1.bf16.msra.mxu0 %v6155_v8  ;;  %5072 = vmatpush3.bf16.msra.mxu1 %v6165_v17 }
 0x48d   :  { %5045 = vmatprep.subr.bf16.mxu0 %v6159_v11  ;;  %5073 = vmatprep.subr.bf16.mxu1 %v5990_v45 }
 0x490   :  { %5047 = vmatpush1.bf16.msra.mxu0 %v6168_v18  ;;  %5075 = vmatpush3.bf16.msra.mxu1 %v6175_v26 }
 0x491   :  { %5049 = vmatprep.subr.bf16.mxu0 %v6172_v21  ;;  %5076 = vmatprep.subr.bf16.mxu1 %v5990_v45 }
 0x494   :  { %5051 = vmatpush1.bf16.msra.mxu0 %v6178_v27  ;;  %5078 = vmatpush3.bf16.msra.mxu1 %v6185_v35 }
 0x495   :  { %5053 = vmatprep.subr.bf16.mxu0 %v6182_v30  ;;  %5079 = vmatprep.subr.bf16.mxu1 %v5990_v45 }
 0x498   :  { %5055 = vmatpush1.bf16.msra.mxu0 %v6188_v36  ;;  %5081 = vmatpush3.bf16.msra.mxu1 %v6195_v44 }
 0x499   :  { %5057 = vmatprep.subr.bf16.mxu0 %v6192_v39  ;;  %5082 = vmatprep.subr.bf16.mxu1 %v5990_v45 }
 0x49c   :  { %5059 = vmatpush1.bf16.msra.mxu0 %v6198_v47  ;;  %5084 = vmatpush3.bf16.msra.mxu1 %v6205_v54 }
 0x49d   :  { %5061 = vmatprep.subr.bf16.mxu0 %v6202_v50  ;;  %5085 = vmatprep.subr.bf16.mxu1 %v5990_v45 }
 0x4a0   :  { %5063 = vmatpush1.bf16.msra.mxu0 %v6208_v55  ;;  %5087 = vmatpush3.bf16.msra.mxu1 %v6213_v58 }
 0x4a1   :  { %5089 = vmatprep.subr.bf16.mxu0 %v6110_v14  ;;  %5120 = vmatprep.subr.bf16.mxu1 %v5990_v45 }
 0x556   :  { %v1188_v51 = vpop.f32.mrb[12].mxu0  ;;  %v1259_v12 = vpop.f32.mrb[10].mxu1 }
 0x557   :  { %v1263_v20 = vadd.f32 %v1188_v51, %v6272_v19  ;;  %v1190_v9 = vpop.f32.mrb[13].mxu0  ;;  %v4331_v24 = vpop.f32.mrb[11].mxu1  ;;  %v1277_v38 = vadd.f32 %v6285_v42, %v1259_v12 }
 0x558   :  { %v1270_v28 = vadd.f32 %v1190_v9, %v6274_v22 }
 0x559   :  { %v3834_v25 = vmul.f32 -1.442695, %v1263_v20 }
 0x55a   :  { %v3835_v31 = vmul.f32 -1.442695, %v1270_v28 }
 0x55b   :  { %5767 = vpow2.f32 %v3834_v25 }
 0x55c   :  { %5769 = vpow2.f32 %v3835_v31 }
 0x565   :  { %v5768_v32 = vpop.eup %5767 }
 0x566   :  { %v1267_v33 = vadd.f32 1.0, %v5768_v32  ;;  %v5770_v34 = vpop.eup %5769 }
 0x567   :  { %v1274_v37 = vadd.f32 1.0, %v5770_v34 }
 0x568   :  { %5771 = vrcp.f32 %v1267_v33 }
 0x569   :  { %5773 = vrcp.f32 %v1274_v37 }
 0x572   :  { %v5772_v40 = vpop.eup %5771 }
 0x573   :  { %v1278_v41 = vmul.f32 %v5772_v40, %v1277_v38  ;;  %v5774_v48 = vpop.eup %5773 }
 0x574   :  { %v1281_v49 = vsub.f32 1.0, %v5774_v48  ;;  %v1283_v57 = vmul.f32 %v5774_v48, %v6428_v16 }
 0x575   :  { %v1279_v43 = vadd.f32 %v1278_v41, %v6270_v13 }
 0x577   :  { %5775 = vtanh.f32 %v1279_v43 }
 0x581   :  { %v5776_v53 = vpop.eup %5775 }
 0x582   :  { %v1282_v56 = vmul.f32 %v5776_v53, %v1281_v49 }
 0x584   :  { %v6476_v23 = vadd.f32 %v1283_v57, %v1282_v56 }
 0x586   :  { %1350 = vmatmul.mubr.f32.vlgmr.msra.gmra.mrb[14].mxu0 %v6476_v23  ;;  %4365 = vmatmul.mubr.f32.vlgmr.msra.gmra.mrb[12].mxu1 %v6476_v23  ;;  %v1456_v38 = vrot.slane %v6476_v23, 6 }
 0x587   :  { %5091 = vmatpush1.bf16.msra.mxu0 %v6134_v46  ;;  %5122 = vmatpush3.bf16.msra.mxu1 %v6140_v59 }
 0x588   :  { %5093 = vmatprep.subr.bf16.mxu0 %v6136_v52  ;;  %5123 = vmatprep.subr.bf16.mxu1 %v5990_v45 }
 0x589   :  { %1527 = vmatprep.mubr.f32.mxu0 %v5987_v1  ;;  %4399 = vmatprep.mubr.msk.f32.mxu1 %vm5991_vm2, %v5987_v1 }
 0x58b   :  { %5095 = vmatpush1.bf16.msra.mxu0 %v6143_v60  ;;  %5125 = vmatpush3.bf16.msra.mxu1 %v6152_v7 }
 0x58c   :  { %5097 = vmatprep.subr.bf16.mxu0 %v6147_v0  ;;  %5126 = vmatprep.subr.bf16.mxu1 %v5990_v45 }
 0x58f   :  { %5099 = vmatpush1.bf16.msra.mxu0 %v6155_v8  ;;  %5128 = vmatpush3.bf16.msra.mxu1 %v6165_v17 }
 0x590   :  { %5101 = vmatprep.subr.bf16.mxu0 %v6159_v11  ;;  %5129 = vmatprep.subr.bf16.mxu1 %v5990_v45 }
 0x593   :  { %5103 = vmatpush1.bf16.msra.mxu0 %v6168_v18  ;;  %5131 = vmatpush3.bf16.msra.mxu1 %v6175_v26 }
 0x594   :  { %5105 = vmatprep.subr.bf16.mxu0 %v6172_v21  ;;  %5132 = vmatprep.subr.bf16.mxu1 %v5990_v45 }
 0x597   :  { %5107 = vmatpush1.bf16.msra.mxu0 %v6178_v27  ;;  %5134 = vmatpush3.bf16.msra.mxu1 %v6185_v35 }
 0x598   :  { %5109 = vmatprep.subr.bf16.mxu0 %v6182_v30  ;;  %5135 = vmatprep.subr.bf16.mxu1 %v5990_v45 }
 0x59b   :  { %5111 = vmatpush1.bf16.msra.mxu0 %v6188_v36  ;;  %5137 = vmatpush3.bf16.msra.mxu1 %v6195_v44 }
 0x59c   :  { %5113 = vmatprep.subr.bf16.mxu0 %v6192_v39  ;;  %5138 = vmatprep.subr.bf16.mxu1 %v5990_v45 }
 0x59f   :  { %5115 = vmatpush1.bf16.msra.mxu0 %v6198_v47  ;;  %5140 = vmatpush3.bf16.msra.mxu1 %v6205_v54 }
 0x5a0   :  { %5117 = vmatprep.subr.bf16.mxu0 %v6202_v50  ;;  %5141 = vmatprep.subr.bf16.mxu1 %v5990_v45 }
 0x5a3   :  { %5119 = vmatpush1.bf16.msra.mxu0 %v6208_v55  ;;  %5143 = vmatpush3.bf16.msra.mxu1 %v6213_v58 }
 0x5a4   :  { %5145 = vmatprep.subr.bf16.mxu0 %v6110_v14  ;;  %5176 = vmatprep.subr.bf16.mxu1 %v5990_v45 }
 0x659   :  { %v1351_v63 = vpop.f32.mrb[14].mxu0  ;;  %v1422_v29 = vpop.f32.mrb[12].mxu1 }
 0x65a   :  { %v1427_v2 = vrot.slane %v1351_v63, 6  ;;  %v1353_v6 = vpop.f32.mrb[15].mxu0  ;;  %v4366_v5 = vpop.f32.mrb[13].mxu1  ;;  %v1446_v25 = vadd.f32 %v6285_v42, %v1422_v29 }
 0x65b   :  { %v1437_v15 = vrot.slane %v1353_v6, 6  ;;  %v1822_v6 = vld [vmem:[#allocation5] sm:$0xff]  ;;  %v1825_v5 = vld [vmem:[#allocation5 + $0x18] sm:$0xff] }
 0x65c   :  { %v1429_v16 = vadd.f32 %v1427_v2, %v6272_v19  ;;  %v1448_v31 = vrot.slane %v1446_v25, 6 }
 0x65d   :  { %v1439_v12 = vadd.f32 %v1437_v15, %v6274_v22  ;;  %v1829_v15 = vld [vmem:[#allocation5 + $0x38] sm:$0xff] }
 0x65e   :  { %v3836_v51 = vmul.f32 -1.442695, %v1429_v16  ;;  %v1832_v16 = vld [vmem:[#allocation5 + $0x50] sm:$0xff] }
 0x65f   :  { %v3837_v20 = vmul.f32 -1.442695, %v1439_v12 }
 0x660   :  { %5777 = vpow2.f32 %v3836_v51 }
 0x661   :  { %5779 = vpow2.f32 %v3837_v20 }
 0x66a   :  { %v5778_v9 = vpop.eup %5777 }
 0x66b   :  { %v1433_v24 = vadd.f32 1.0, %v5778_v9  ;;  %v5780_v14 = vpop.eup %5779  ;;  %v5204_v9 = vpack.c.bf16 %v1832_v16, %v1829_v15  ;;  %v1874_v15 = vld [vmem:[#allocation7 + $0x20] sm:$0xff] }
 0x66c   :  { %v1443_v28 = vadd.f32 1.0, %v5780_v14  ;;  %v1831_v14 = vld [vmem:[#allocation5 + $0x48] sm:$0xff] }
 0x66d   :  { %5781 = vrcp.f32 %v1433_v24  ;;  %v1828_v24 = vld [vmem:[#allocation5 + $0x30] sm:$0xff] }
 0x66e   :  { %5783 = vrcp.f32 %v1443_v28  ;;  %v1835_v28 = vld [vmem:[#allocation5 + $0x68] sm:$0xff] }
 0x677   :  { %v5782_v32 = vpop.eup %5781 }
 0x678   :  { %v1450_v33 = vmul.f32 %v5782_v32, %v1448_v31  ;;  %v5784_v37 = vpop.eup %5783  ;;  %v1838_v31 = vld [vmem:[#allocation5 + $0x80] sm:$0xff]  ;;  %v5206_v32 = vpack.c.bf16 %v1831_v14, %v1828_v24  ;;  %v1877_v14 = vld [vmem:[#allocation7 + $0x38] sm:$0xff] }
 0x679   :  { %v1453_v40 = vsub.f32 1.0, %v5784_v37  ;;  %v1458_v48 = vmul.f32 %v5784_v37, %v1456_v38  ;;  %v1841_v37 = vld [vmem:[#allocation5 + $0x98] sm:$0xff]  ;;  %v1844_v38 = vld [vmem:[#allocation5 + $0xb0] sm:$0xff] }
 0x67a   :  { %v1451_v34 = vadd.f32 %v1450_v33, %v6270_v13  ;;  %v5208_v33 = vpack.c.bf16 %v1838_v31, %v1835_v28  ;;  %v1880_v28 = vld [vmem:[#allocation7 + $0x50] sm:$0xff] }
 0x67b   :  { %v6581_v31 = vpack.c.bf16 %v1880_v28, %v1877_v14  ;;  %v1913_v14 = vld [vmem:[#allocation7 + $0x158] sm:$0xff]  ;;  %v1916_v28 = vld [vmem:[#allocation7 + $0x170] sm:$0xff] }
 0x67c   :  { %5785 = vtanh.f32 %v1451_v34  ;;  %v1837_v34 = vld [vmem:[#allocation5 + $0x78] sm:$0xff] }
 0x686   :  { %v5786_v41 = vpop.eup %5785 }
 0x687   :  { %v1454_v43 = vmul.f32 %v5786_v41, %v1453_v40  ;;  %v5212_v41 = vpack.c.bf16 %v1844_v38, %v1841_v37  ;;  %v1845_v37 = vld [vmem:[#allocation5 + $0xb8] sm:$0xff] }
 0x689   :  { %v6520_v49 = vadd.f32 %v1458_v48, %v1454_v43  ;;  %v1840_v43 = vld [vmem:[#allocation5 + $0x90] sm:$0xff]  ;;  %v1843_v48 = vld [vmem:[#allocation5 + $0xa8] sm:$0xff] }
 0x68b   :  { %v1461_v53 = vrot.slane %v6520_v49, 2  ;;  %v1819_v12 = vsel %vm1814_vm3, %v6476_v23, %v6520_v49  ;;  %v1834_v23 = vld [vmem:[#allocation5 + $0x60] sm:$0xff] }
 0x68c   :  { %v5210_v40 = vpack.c.bf16 %v1837_v34, %v1834_v23  ;;  %v1842_v34 = vld [vmem:[#allocation5 + $0xa0] sm:$0xff] }
 0x68d   :  { %1528 = vmatmul.mubr.f32.vlgmr.msra.gmra.mrb[16].mxu0 %v1461_v53  ;;  %4400 = vmatmul.mubr.f32.vlgmr.msra.gmra.mrb[14].mxu1 %v1461_v53  ;;  %v1850_v53 = vld [vmem:[#allocation5 + $0xe0] sm:$0xff]  ;;  %v5244_v38 = vpack.c.bf16 %v1845_v37, %v1842_v34  ;;  %v1915_v34 = vld [vmem:[#allocation7 + $0x168] sm:$0xff] }
 0x68e   :  { %5147 = vmatpush1.bf16.msra.mxu0 %v6134_v46  ;;  %5178 = vmatpush3.bf16.msra.mxu1 %v6140_v59  ;;  %v1823_v46 = vld [vmem:[#allocation5 + $0x8] sm:$0xff] }
 0x68f   :  { %5149 = vmatprep.subr.bf16.mxu0 %v6136_v52  ;;  %5179 = vmatprep.subr.bf16.mxu1 %v5990_v45  ;;  %v1826_v52 = vld [vmem:[#allocation5 + $0x20] sm:$0xff] }
 0x690   :  { %1704 = vmatprep.mubr.f32.mxu0 %v5987_v1  ;;  %4434 = vmatprep.mubr.msk.f32.mxu1 %vm5991_vm2, %v5987_v1  ;;  %v5200_v59 = vpack.c.bf16 %v1826_v52, %v1823_v46  ;;  %v5214_v46 = vpack.c.bf16 %v1843_v48, %v1840_v43  ;;  %v1882_v48 = vld [vmem:[#allocation7 + $0x60] sm:$0xff] }
 0x692   :  { %5151 = vmatpush1.bf16.msra.mxu0 %v6143_v60  ;;  %5181 = vmatpush3.bf16.msra.mxu1 %v6152_v7 }
 0x693   :  { %5153 = vmatprep.subr.bf16.mxu0 %v6147_v0  ;;  %5182 = vmatprep.subr.bf16.mxu1 %v5990_v45 }
 0x696   :  { %5155 = vmatpush1.bf16.msra.mxu0 %v6155_v8  ;;  %5184 = vmatpush3.bf16.msra.mxu1 %v6165_v17 }
 0x697   :  { %5157 = vmatprep.subr.bf16.mxu0 %v6159_v11  ;;  %5185 = vmatprep.subr.bf16.mxu1 %v5990_v45 }
 0x69a   :  { %5159 = vmatpush1.bf16.msra.mxu0 %v6168_v18  ;;  %5187 = vmatpush3.bf16.msra.mxu1 %v6175_v26 }
 0x69b   :  { %5161 = vmatprep.subr.bf16.mxu0 %v6172_v21  ;;  %5188 = vmatprep.subr.bf16.mxu1 %v5990_v45 }
 0x69e   :  { %5163 = vmatpush1.bf16.msra.mxu0 %v6178_v27  ;;  %5190 = vmatpush3.bf16.msra.mxu1 %v6185_v35 }
 0x69f   :  { %5165 = vmatprep.subr.bf16.mxu0 %v6182_v30  ;;  %5191 = vmatprep.subr.bf16.mxu1 %v5990_v45 }
 0x6a2   :  { %5167 = vmatpush1.bf16.msra.mxu0 %v6188_v36  ;;  %5193 = vmatpush3.bf16.msra.mxu1 %v6195_v44 }
 0x6a3   :  { %5169 = vmatprep.subr.bf16.mxu0 %v6192_v39  ;;  %5194 = vmatprep.subr.bf16.mxu1 %v5990_v45 }
 0x6a6   :  { %5171 = vmatpush1.bf16.msra.mxu0 %v6198_v47  ;;  %5196 = vmatpush3.bf16.msra.mxu1 %v6205_v54  ;;  %v1633_v54 = vrot.slane %v6520_v49, 6  ;;  %v1847_v49 = vld [vmem:[#allocation5 + $0xc8] sm:$0xff] }
 0x6a7   :  { %5173 = vmatprep.subr.bf16.mxu0 %v6202_v50  ;;  %5197 = vmatprep.subr.bf16.mxu1 %v5990_v45  ;;  %v5216_v52 = vpack.c.bf16 %v1850_v53, %v1847_v49  ;;  %v1885_v49 = vld [vmem:[#allocation7 + $0x78] sm:$0xff] }
 0x6a8   :  { %v6589_v53 = vpack.c.bf16 %v1885_v49, %v1882_v48 }
 0x6aa   :  { %5175 = vmatpush1.bf16.msra.mxu0 %v6208_v55  ;;  %5199 = vmatpush3.bf16.msra.mxu1 %v6213_v58 }
 0x6ab   :  { %5201 = vmatprep.subr.bf16.mxu0 %v5200_v59  ;;  %v1846_v59 = vld [vmem:[#allocation5 + $0xc0] sm:$0xff] }
 0x760   :  { %v1529_v60 = vpop.f32.mrb[16].mxu0  ;;  %v1600_v0 = vpop.f32.mrb[14].mxu1 }
 0x761   :  { %v1605_v7 = vrot.slane %v1529_v60, 4  ;;  %v1531_v8 = vpop.f32.mrb[17].mxu0  ;;  %v4401_v11 = vpop.f32.mrb[15].mxu1  ;;  %v1624_v44 = vadd.f32 %v6285_v42, %v1600_v0  ;;  %v5202_v42 = vpack.c.bf16 %v1825_v5, %v1822_v6  ;;  %v1849_v60 = vld [vmem:[#allocation5 + $0xd8] sm:$0xff]  ;;  %v1871_v5 = vld [vmem:[#allocation7 + $0x8] sm:$0xff] }
 0x762   :  { %v1615_v17 = vrot.slane %v1531_v8, 4  ;;  %v1853_v0 = vld [vmem:[#allocation5 + $0xf8] sm:$0xff]  ;;  %v5218_v8 = vpack.c.bf16 %v1849_v60, %v1846_v59  ;;  %v6575_v16 = vpack.c.bf16 %v1874_v15, %v1871_v5  ;;  %v1910_v5 = vld [vmem:[#allocation7 + $0x140] sm:$0xff] }
 0x763   :  { %v1607_v18 = vadd.f32 %v1605_v7, %v6272_v19  ;;  %v1626_v47 = vrot.slane %v1624_v44, 4  ;;  %v1856_v7 = vld [vmem:[#allocation5 + $0x110] sm:$0xff]  ;;  %v1889_v60 = vld [vmem:[#allocation7 + $0x98] sm:$0xff] }
 0x764   :  { %v1617_v21 = vadd.f32 %v1615_v17, %v6274_v22  ;;  %v5220_v11 = vpack.c.bf16 %v1856_v7, %v1853_v0  ;;  %v1852_v17 = vld [vmem:[#allocation5 + $0xf0] sm:$0xff] }
 0x765   :  { %v3838_v26 = vmul.f32 -1.442695, %v1607_v18  ;;  %v1855_v18 = vld [vmem:[#allocation5 + $0x108] sm:$0xff]  ;;  %v1868_v44 = vld [vmem:[#allocation5 + $0x170] sm:$0xff] }
 0x766   :  { %v3839_v27 = vmul.f32 -1.442695, %v1617_v21  ;;  %v1859_v21 = vld [vmem:[#allocation5 + $0x128] sm:$0xff]  ;;  %v1892_v0 = vld [vmem:[#allocation7 + $0xb0] sm:$0xff] }
 0x767   :  { %5787 = vpow2.f32 %v3838_v26  ;;  %v1862_v26 = vld [vmem:[#allocation5 + $0x140] sm:$0xff]  ;;  %v6593_v7 = vpack.c.bf16 %v1892_v0, %v1889_v60 }
 0x768   :  { %5789 = vpow2.f32 %v3839_v27  ;;  %v5222_v27 = vpack.c.bf16 %v1855_v18, %v1852_v17  ;;  %v1854_v18 = vld [vmem:[#allocation5 + $0x100] sm:$0xff] }
 0x771   :  { %v5788_v30 = vpop.eup %5787 }
 0x772   :  { %v5790_v35 = vpop.eup %5789  ;;  %v1611_v36 = vadd.f32 1.0, %v5788_v30  ;;  %v5224_v30 = vpack.c.bf16 %v1862_v26, %v1859_v21  ;;  %v1857_v21 = vld [vmem:[#allocation5 + $0x118] sm:$0xff]  ;;  %v1895_v26 = vld [vmem:[#allocation7 + $0xc8] sm:$0xff] }
 0x773   :  { %v1621_v39 = vadd.f32 1.0, %v5790_v35  ;;  %v1858_v35 = vld [vmem:[#allocation5 + $0x120] sm:$0xff] }
 0x774   :  { %5791 = vrcp.f32 %v1611_v36  ;;  %v1861_v36 = vld [vmem:[#allocation5 + $0x138] sm:$0xff] }
 0x775   :  { %5793 = vrcp.f32 %v1621_v39  ;;  %v1865_v39 = vld [vmem:[#allocation5 + $0x158] sm:$0xff] }
 0x77e   :  { %v5792_v50 = vpop.eup %5791 }
 0x77f   :  { %v5794_v55 = vpop.eup %5793  ;;  %v1628_v58 = vmul.f32 %v5792_v50, %v1626_v47  ;;  %v5226_v47 = vpack.c.bf16 %v1861_v36, %v1858_v35  ;;  %v5228_v50 = vpack.c.bf16 %v1868_v44, %v1865_v39  ;;  %v1894_v35 = vld [vmem:[#allocation7 + $0xc0] sm:$0xff]  ;;  %v1897_v36 = vld [vmem:[#allocation7 + $0xd8] sm:$0xff] }
 0x780   :  { %v1635_v56 = vmul.f32 %v5794_v55, %v1633_v54  ;;  %v1631_v63 = vsub.f32 1.0, %v5794_v55  ;;  %v1864_v54 = vld [vmem:[#allocation5 + $0x150] sm:$0xff]  ;;  %v1867_v55 = vld [vmem:[#allocation5 + $0x168] sm:$0xff]  ;;  %v6601_v44 = vpack.c.bf16 %v1897_v36, %v1894_v35 }
 0x781   :  { %v1629_v57 = vadd.f32 %v1628_v58, %v6270_v13  ;;  %v5230_v58 = vpack.c.bf16 %v1867_v55, %v1864_v54  ;;  %v1901_v54 = vld [vmem:[#allocation7 + $0xf8] sm:$0xff] }
 0x783   :  { %5795 = vtanh.f32 %v1629_v57  ;;  %v1827_v57 = vld [vmem:[#allocation5 + $0x28] sm:$0xff] }
 0x78d   :  { %v5796_v29 = vpop.eup %5795 }
 0x78e   :  { %v1632_v2 = vmul.f32 %v5796_v29, %v1631_v63  ;;  %v1830_v29 = vld [vmem:[#allocation5 + $0x40] sm:$0xff] }
 0x790   :  { %v6561_v51 = vadd.f32 %v1635_v56, %v1632_v2  ;;  %v1824_v56 = vld [vmem:[#allocation5 + $0x10] sm:$0xff]  ;;  %v1833_v2 = vld [vmem:[#allocation5 + $0x58] sm:$0xff] }
 0x791   :  { %v5232_v63 = vpack.c.bf16 %v1827_v57, %v1824_v56  ;;  %v5236_v6 = vpack.c.bf16 %v1833_v2, %v1830_v29  ;;  %v1900_v56 = vld [vmem:[#allocation7 + $0xf0] sm:$0xff]  ;;  %v1903_v57 = vld [vmem:[#allocation7 + $0x108] sm:$0xff]  ;;  %v1866_v29 = vld [vmem:[#allocation5 + $0x160] sm:$0xff] }
 0x792   :  { %v1638_v20 = vrot.slane %v6561_v51, 4  ;;  %v6569_v25 = vsel %vm262_vm0, %v1819_v12, %v6561_v51  ;;  %v1873_v12 = vld [vmem:[#allocation7 + $0x18] sm:$0xff]  ;;  %v6607_v15 = vpack.c.bf16 %v1903_v57, %v1900_v56  ;;  %v1872_v57 = vld [vmem:[#allocation7 + $0x10] sm:$0xff] }
 0x793   :  { %5233 = vmatprep.subr.bf16.mxu1 %v5232_v63  ;;  %v1869_v2 = vld [vmem:[#allocation5 + $0x178] sm:$0xff] }
 0x794   :  { %1705 = vmatmul.mubr.f32.vlgmr.msra.gmra.mrb[18].mxu0 %v1638_v20  ;;  %4435 = vmatmul.mubr.f32.vlgmr.msra.gmra.mrb[16].mxu1 %v1638_v20 }
 0x795   :  { %5203 = vmatpush1.bf16.msra.mxu0 %v5202_v42  ;;  %4469 = vmatprep.mubr.f32.mxu1 %v6432_v10  ;;  %v1870_v42 = vld [vmem:[#allocation7] sm:$0xff] }
 0x796   :  { %5205 = vmatprep.subr.bf16.mxu0 %v5204_v9  ;;  %2000 = vmatprep.mubr.f32.mxu0 %v5987_v1  ;;  %v6577_v20 = vpack.c.bf16 %v1873_v12, %v1870_v42  ;;  %v1839_v9 = vld [vmem:[#allocation5 + $0x88] sm:$0xff]  ;;  %v5260_v42 = vpack.c.bf16 %v1869_v2, %v1866_v29 }
 0x797   :  { %5235 = vmatpush3.bf16.msra.mxu1 %v5232_v63  ;;  %v1875_v29 = vld [vmem:[#allocation7 + $0x28] sm:$0xff] }
 0x798   :  { %5237 = vmatprep.subr.bf16.mxu1 %v5236_v6 }
 0x799   :  { %5207 = vmatpush1.bf16.msra.mxu0 %v5206_v32  ;;  %v1876_v32 = vld [vmem:[#allocation7 + $0x30] sm:$0xff] }
 0x79a   :  { %5209 = vmatprep.subr.bf16.mxu0 %v5208_v33  ;;  %v1879_v33 = vld [vmem:[#allocation7 + $0x48] sm:$0xff] }
 0x79b   :  { %5239 = vmatpush3.bf16.msra.mxu1 %v5236_v6  ;;  %v6583_v23 = vpack.c.bf16 %v1879_v33, %v1876_v32  ;;  %v1907_v6 = vld [vmem:[#allocation7 + $0x128] sm:$0xff]  ;;  %v6618_v32 = vpack.c.bf16 %v1916_v28, %v1913_v14  ;;  %v1912_v33 = vld [vmem:[#allocation7 + $0x150] sm:$0xff]  ;;  %v1890_v28 = vld [vmem:[#allocation7 + $0xa0] sm:$0xff] }
 0x79c   :  { %v6610_v12 = vpack.c.bf16 %v1910_v5, %v1907_v6  ;;  %v6620_v37 = vpack.c.bf16 %v1915_v34, %v1912_v33  ;;  %v6638_v5 = vpack.c.bf16 %v1875_v29, %v1872_v57  ;;  %v1887_v14 = vld [vmem:[#allocation7 + $0x88] sm:$0xff]  ;;  %v1893_v33 = vld [vmem:[#allocation7 + $0xb8] sm:$0xff] }
 0x79d   :  { %5211 = vmatpush1.bf16.msra.mxu0 %v5210_v40  ;;  %v1883_v40 = vld [vmem:[#allocation7 + $0x68] sm:$0xff]  ;;  %v6659_v34 = vpack.c.bf16 %v1893_v33, %v1890_v28 }
 0x79e   :  { %5213 = vmatprep.subr.bf16.mxu0 %v5212_v41  ;;  %v1886_v41 = vld [vmem:[#allocation7 + $0x80] sm:$0xff] }
 0x79f   :  { %v6587_v43 = vpack.c.bf16 %v1886_v41, %v1883_v40 }
 0x7a1   :  { %5215 = vmatpush1.bf16.msra.mxu0 %v5214_v46  ;;  %v1848_v46 = vld [vmem:[#allocation5 + $0xd0] sm:$0xff] }
 0x7a2   :  { %5217 = vmatprep.subr.bf16.mxu0 %v5216_v52  ;;  %v1851_v52 = vld [vmem:[#allocation5 + $0xe8] sm:$0xff] }
 0x7a3   :  { %v5248_v59 = vpack.c.bf16 %v1851_v52, %v1848_v46 }
 0x7a5   :  { %5219 = vmatpush1.bf16.msra.mxu0 %v5218_v8  ;;  %v1888_v8 = vld [vmem:[#allocation7 + $0x90] sm:$0xff] }
 0x7a6   :  { %5221 = vmatprep.subr.bf16.mxu0 %v5220_v11  ;;  %v1891_v11 = vld [vmem:[#allocation7 + $0xa8] sm:$0xff] }
 0x7a7   :  { %v6595_v17 = vpack.c.bf16 %v1891_v11, %v1888_v8 }
 0x7a9   :  { %5223 = vmatpush1.bf16.msra.mxu0 %v5222_v27  ;;  %v5252_v27 = vpack.c.bf16 %v1857_v21, %v1854_v18 }
 0x7aa   :  { %5225 = vmatprep.subr.bf16.mxu0 %v5224_v30  ;;  %v1898_v30 = vld [vmem:[#allocation7 + $0xe0] sm:$0xff] }
 0x7ab   :  { %v6599_v39 = vpack.c.bf16 %v1898_v30, %v1895_v26  ;;  %v5887_v26 = vld [vmem:[%s7135_s4] ss:$0 sm:$0xff] }
 0x7ad   :  { %5227 = vmatpush1.bf16.msra.mxu0 %v5226_v47  ;;  %v1860_v47 = vld [vmem:[#allocation5 + $0x130] sm:$0xff] }
 0x7ae   :  { %5229 = vmatprep.subr.bf16.mxu0 %v5228_v50  ;;  %v1863_v50 = vld [vmem:[#allocation5 + $0x148] sm:$0xff] }
 0x7af   :  { %v5256_v55 = vpack.c.bf16 %v1863_v50, %v1860_v47 }
 0x7b1   :  { %5231 = vmatpush1.bf16.msra.mxu0 %v5230_v58  ;;  %v1904_v58 = vld [vmem:[#allocation7 + $0x110] sm:$0xff] }
 0x7b2   :  { %5265 = vmatprep.subr.bf16.mxu0 %v6575_v16  ;;  %v6604_v63 = vpack.c.bf16 %v1904_v58, %v1901_v54 }
 0x7b4   :  { %2001 = vmatmul.mubr.f32.vlgmr.msra.gmra.mrb[20].mxu0 %v6432_v10  ;;  %v1836_v10 = vld [vmem:[#allocation5 + $0x70] sm:$0xff] }
 0x7b5   :  { %2006 = vmatprep.mubr.f32.mxu0 %v5987_v1  ;;  %5267 = vmatpush1.bf16.msra.mxu0 %v6577_v20  ;;  %v5240_v24 = vpack.c.bf16 %v1839_v9, %v1836_v10  ;;  %v1906_v10 = vld [vmem:[#allocation7 + $0x120] sm:$0xff]  ;;  %v1909_v9 = vld [vmem:[#allocation7 + $0x138] sm:$0xff] }
 0x7b6   :  { %5269 = vmatprep.subr.bf16.mxu0 %v6581_v31 }
 0x7b7   :  { %5241 = vmatprep.subr.bf16.mxu1 %v5240_v24 }
 0x7b8   :  { %5243 = vmatpush3.bf16.msra.mxu1 %v5240_v24  ;;  %v6613_v24 = vpack.c.bf16 %v1909_v9, %v1906_v10  ;;  %v1884_v9 = vld [vmem:[#allocation7 + $0x70] sm:$0xff] }
 0x7b9   :  { %5271 = vmatpush1.bf16.msra.mxu0 %v6583_v23  ;;  %5245 = vmatprep.subr.bf16.mxu1 %v5244_v38 }
 0x7ba   :  { %5273 = vmatprep.subr.bf16.mxu0 %v6587_v43 }
 0x7bc   :  { %5247 = vmatpush3.bf16.msra.mxu1 %v5244_v38 }
 0x7bd   :  { %5275 = vmatpush1.bf16.msra.mxu0 %v6589_v53  ;;  %5249 = vmatprep.subr.bf16.mxu1 %v5248_v59 }
 0x7be   :  { %5277 = vmatprep.subr.bf16.mxu0 %v6593_v7 }
 0x7c0   :  { %5251 = vmatpush3.bf16.msra.mxu1 %v5248_v59 }
 0x7c1   :  { %5279 = vmatpush1.bf16.msra.mxu0 %v6595_v17  ;;  %5253 = vmatprep.subr.bf16.mxu1 %v5252_v27 }
 0x7c2   :  { %5281 = vmatprep.subr.bf16.mxu0 %v6599_v39 }
 0x7c4   :  { %5255 = vmatpush3.bf16.msra.mxu1 %v5252_v27 }
 0x7c5   :  { %5283 = vmatpush1.bf16.msra.mxu0 %v6601_v44  ;;  %5257 = vmatprep.subr.bf16.mxu1 %v5256_v55 }
 0x7c6   :  { %5285 = vmatprep.subr.bf16.mxu0 %v6604_v63 }
 0x7c8   :  { %5259 = vmatpush3.bf16.msra.mxu1 %v5256_v55 }
 0x7c9   :  { %5287 = vmatpush1.bf16.msra.mxu0 %v6607_v15  ;;  %5261 = vmatprep.subr.bf16.mxu1 %v5260_v42 }
 0x7ca   :  { %5289 = vmatprep.subr.bf16.mxu0 %v6610_v12 }
 0x7cc   :  { %5263 = vmatpush3.bf16.msra.mxu1 %v5260_v42  ;;  %v1881_v42 = vld [vmem:[#allocation7 + $0x58] sm:$0xff] }
 0x7cd   :  { %5291 = vmatpush1.bf16.msra.mxu0 %v6613_v24  ;;  %5296 = vmatprep.subr.bf16.mxu1 %v5990_v45 }
 0x7ce   :  { %5293 = vmatprep.subr.bf16.mxu0 %v6618_v32 }
 0x7d1   :  { %5295 = vmatpush1.bf16.msra.mxu0 %v6620_v37 }
 0x7d2   :  { %5321 = vmatprep.subr.bf16.mxu0 %v6575_v16 }
 0x867   :  { %v1706_v38 = vpop.f32.mrb[18].mxu0  ;;  %v1777_v40 = vpop.f32.mrb[16].mxu1 }
 0x868   :  { %v1782_v41 = vrot.slane %v1706_v38, 2  ;;  %v1708_v48 = vpop.f32.mrb[19].mxu0  ;;  %v4436_v49 = vpop.f32.mrb[17].mxu1  ;;  %v1801_v27 = vadd.f32 %v5887_v26, %v1777_v40  ;;  %v1896_v38 = vld [vmem:[#allocation7 + $0xd0] sm:$0xff]  ;;  %v1899_v40 = vld [vmem:[#allocation7 + $0xe8] sm:$0xff] }
 0x869   :  { %v1792_v46 = vrot.slane %v1708_v48, 2  ;;  %v1902_v48 = vld [vmem:[#allocation7 + $0x100] sm:$0xff]  ;;  %v1905_v49 = vld [vmem:[#allocation7 + $0x118] sm:$0xff] }
 0x86a   :  { %v1784_v52 = vadd.f32 %v1782_v41, %v6272_v19  ;;  %v1803_v30 = vrot.slane %v1801_v27, 2  ;;  %v1810_v19 = vrot.slane %v6561_v51, 6  ;;  %v1878_v51 = vld [vmem:[#allocation7 + $0x40] sm:$0xff]  ;;  %v6665_v41 = vpack.c.bf16 %v1899_v40, %v1896_v38 }
 0x86b   :  { %v1794_v59 = vadd.f32 %v1792_v46, %v6274_v22  ;;  %v6671_v46 = vpack.c.bf16 %v1905_v49, %v1902_v48 }
 0x86c   :  { %v3840_v60 = vmul.f32 -1.442695, %v1784_v52  ;;  %v1908_v52 = vld [vmem:[#allocation7 + $0x130] sm:$0xff] }
 0x86d   :  { %v3841_v0 = vmul.f32 -1.442695, %v1794_v59  ;;  %v1911_v59 = vld [vmem:[#allocation7 + $0x148] sm:$0xff] }
 0x86e   :  { %5797 = vpow2.f32 %v3840_v60  ;;  %v6677_v60 = vpack.c.bf16 %v1911_v59, %v1908_v52 }
 0x86f   :  { %5799 = vpow2.f32 %v3841_v0  ;;  %v1914_v0 = vld [vmem:[#allocation7 + $0x160] sm:$0xff] }
 0x878   :  { %v5798_v8 = vpop.eup %5797 }
 0x879   :  { %v5800_v11 = vpop.eup %5799  ;;  %v1788_v18 = vadd.f32 1.0, %v5798_v8  ;;  %v1917_v8 = vld [vmem:[#allocation7 + $0x178] sm:$0xff] }
 0x87a   :  { %v1798_v21 = vadd.f32 1.0, %v5800_v11  ;;  %v6683_v11 = vpack.c.bf16 %v1917_v8, %v1914_v0 }
 0x87b   :  { %5801 = vrcp.f32 %v1788_v18  ;;  %v1918_v18 = vld [vmem:[%s7138_s7] sm:$0x7] }
 0x87c   :  { %5803 = vrcp.f32 %v1798_v21  ;;  %v1932_v21 = vrot.slane %v1918_v18, %v207_v61  ;;  %v6719_v26 = vrot.slane %v1918_v18, %v6259_v62 }
 0x885   :  { %v5802_v35 = vpop.eup %5801 }
 0x886   :  { %v5804_v22 = vpop.eup %5803  ;;  %v1805_v36 = vmul.f32 %v5802_v35, %v1803_v30 }
 0x887   :  { %v6631_v47 = vpop.f32.mrb[20].mxu0  ;;  %v1812_v50 = vmul.f32 %v5804_v22, %v1810_v19  ;;  %v1808_v58 = vsub.f32 1.0, %v5804_v22 }
 0x888   :  { %v1806_v54 = vadd.f32 %v1805_v36, %v6270_v13  ;;  %v6634_v55 = vpop.f32.mrb[21].mxu0  ;;  %v6645_v13 = vpack.c.bf16 %v1881_v42, %v1878_v51  ;;  %v6729_v36 = vadd.f32 %v6631_v47, %v6719_v26 }
 0x88a   :  { %5805 = vtanh.f32 %v1806_v54 }
 0x894   :  { %v5806_v56 = vpop.eup %5805 }
 0x895   :  { %v1809_v2 = vmul.f32 %v5806_v56, %v1808_v58 }
 0x897   :  { %v6636_v6 = vadd.f32 %v1812_v50, %v1809_v2  ;;  %v6733_v50 = vrot.slane %v1918_v18, %v203_v3  ;;  %v6744_v3 = vld [vmem:[%s7139_s8] ss:$0 sm:$0xff]  ;;  %s5993_s8 = smov [#allocation8]  }
 0x898   :  { %s3801_s21 = sshll.u32 %s5993_s8, 4  ;;  %s3802_s21 = int_to_ptr.vmem [resolvable:$true] %s3801_s21 }
 0x899   :  { %v1821_v10 = vsel %vm1817_vm4, %v6569_v25, %v6636_v6  ;;  %v6652_v25 = vpack.c.bf16 %v1887_v14, %v1884_v9  ;;  %v6738_v57 = vadd.f32 %v6634_v55, %v6733_v50  ;;  %s5954_s28 = scalar_lea.vmem %s3802_s21, 256  ;;  %p5959_p11 = scmp.lt.s32.totalorder %s3802_s21, %s3802_s21 }
 0x89a   :  { %2007 = vmatmul.mubr.f32.gmra.mrb[22].mxu0 %v1821_v10  ;;  %4470 = vmatmul.mubr.f32.vlgmr.msra.gmra.mrb[18].mxu1 %v1821_v10  ;;  %p5955_p10 = scmp.ne.s32.totalorder %s3802_s21, %s5954_s28  ;;  %p5960_p12 = scmp.lt.s32.totalorder %s5954_s28, %s5954_s28 }
 0x89b   :  { %5298 = vmatpush3.bf16.msra.mxu1 %v6638_v5  ;;  %2158 = vmatprep.mubr.f32.mxu0 %v5987_v1 }
 0x89c   :  { %5299 = vmatprep.subr.bf16.mxu1 %v5990_v45  ;;  %4504 = vmatprep.mubr.msk.f32.mxu1 %vm5991_vm2, %v5987_v1  ;;  %p5961_p13 = por %p5960_p12, %p5959_p11 }
 0x89e   :  { %2159 = vmatmul.mubr.f32.vlgmr.msra.gmra.mrb[24].mxu0 %v5987_v1  ;;  %p5962_p0 = pnand %p5961_p13, %p5955_p10 }
 0x89f   :  { %5301 = vmatpush3.bf16.msra.mxu1 %v6645_v13  ;;  %5323 = vmatpush1.bf16.msra.mxu0 %v6577_v20 }
 0x8a0   :  { %5302 = vmatprep.subr.bf16.mxu1 %v5990_v45  ;;  %5325 = vmatprep.subr.bf16.mxu0 %v6581_v31 }
 0x8a1   :  { %2321 = vmatprep.mubr.f32.mxu0 %v5987_v1 }
 0x8a3   :  { %5304 = vmatpush3.bf16.msra.mxu1 %v6652_v25  ;;  %5327 = vmatpush1.bf16.msra.mxu0 %v6583_v23 }
 0x8a4   :  { %5305 = vmatprep.subr.bf16.mxu1 %v5990_v45  ;;  %5329 = vmatprep.subr.bf16.mxu0 %v6587_v43 }
 0x8a7   :  { %5307 = vmatpush3.bf16.msra.mxu1 %v6659_v34  ;;  %5331 = vmatpush1.bf16.msra.mxu0 %v6589_v53 }
 0x8a8   :  { %5308 = vmatprep.subr.bf16.mxu1 %v5990_v45  ;;  %5333 = vmatprep.subr.bf16.mxu0 %v6593_v7 }
 0x8ab   :  { %5310 = vmatpush3.bf16.msra.mxu1 %v6665_v41  ;;  %5335 = vmatpush1.bf16.msra.mxu0 %v6595_v17 }
 0x8ac   :  { %5311 = vmatprep.subr.bf16.mxu1 %v5990_v45  ;;  %5337 = vmatprep.subr.bf16.mxu0 %v6599_v39 }
 0x8af   :  { %5313 = vmatpush3.bf16.msra.mxu1 %v6671_v46  ;;  %5339 = vmatpush1.bf16.msra.mxu0 %v6601_v44 }
 0x8b0   :  { %5314 = vmatprep.subr.bf16.mxu1 %v5990_v45  ;;  %5341 = vmatprep.subr.bf16.mxu0 %v6604_v63 }
 0x8b3   :  { %5316 = vmatpush3.bf16.msra.mxu1 %v6677_v60  ;;  %5343 = vmatpush1.bf16.msra.mxu0 %v6607_v15 }
 0x8b4   :  { %5317 = vmatprep.subr.bf16.mxu1 %v5990_v45  ;;  %5345 = vmatprep.subr.bf16.mxu0 %v6610_v12 }
 0x8b7   :  { %5319 = vmatpush3.bf16.msra.mxu1 %v6683_v11  ;;  %5347 = vmatpush1.bf16.msra.mxu0 %v6613_v24 }
 0x8b8   :  { %5352 = vmatprep.subr.bf16.mxu1 %v5990_v45  ;;  %5349 = vmatprep.subr.bf16.mxu0 %v6618_v32 }
 0x8ba   :  { %4505 = vmatmul.mubr.f32.vlgmr.msra.gmra.mrb[20].mxu1 %v5987_v1 }
 0x8bb   :  { %5354 = vmatpush3.bf16.msra.mxu1 %v6638_v5  ;;  %5351 = vmatpush1.bf16.msra.mxu0 %v6620_v37 }
 0x8bc   :  { %5355 = vmatprep.subr.bf16.mxu1 %v5990_v45  ;;  %4539 = vmatprep.mubr.msk.f32.mxu1 %vm5991_vm2, %v5987_v1 }
 0x8bd   :  { %5377 = vmatprep.subr.bf16.mxu0 %v6575_v16 }
 0x8bf   :  { %5357 = vmatpush3.bf16.msra.mxu1 %v6645_v13 }
 0x8c0   :  { %5358 = vmatprep.subr.bf16.mxu1 %v5990_v45 }
 0x8c3   :  { %5360 = vmatpush3.bf16.msra.mxu1 %v6652_v25 }
 0x8c4   :  { %5361 = vmatprep.subr.bf16.mxu1 %v5990_v45 }
 0x8c7   :  { %5363 = vmatpush3.bf16.msra.mxu1 %v6659_v34 }
 0x8c8   :  { %5364 = vmatprep.subr.bf16.mxu1 %v5990_v45 }
 0x8cb   :  { %5366 = vmatpush3.bf16.msra.mxu1 %v6665_v41 }
 0x8cc   :  { %5367 = vmatprep.subr.bf16.mxu1 %v5990_v45 }
 0x8cf   :  { %5369 = vmatpush3.bf16.msra.mxu1 %v6671_v46 }
 0x8d0   :  { %5370 = vmatprep.subr.bf16.mxu1 %v5990_v45 }
 0x8d3   :  { %5372 = vmatpush3.bf16.msra.mxu1 %v6677_v60 }
 0x8d4   :  { %5373 = vmatprep.subr.bf16.mxu1 %v5990_v45 }
 0x8d7   :  { %5375 = vmatpush3.bf16.msra.mxu1 %v6683_v11 }
 0x8d8   :  { %5408 = vmatprep.subr.bf16.mxu1 %v5990_v45 }
 0x96d   :  { %v6721_v27 = vpop.f32.mrb[22].mxu0  ;;  %v4471_v30 = vpop.f32.mrb[18].mxu1 }
 0x96e   :  { %v6723_v35 = vadd.f32 %v4471_v30, %v1932_v21  ;;  %v6725_v19 = vpop.f32.mrb[23].mxu0  ;;  %v2079_v22 = vpop.f32.mrb[19].mxu1 }
 0x96f   :  { %v6747_v33 = vadd.f32 %v2079_v22, %v1932_v21 }
 0x971   :  { %v2160_v61 = vpop.f32.mrb[24].mxu0 }
 0x972   :  { %v2235_v54 = vadd.f32 %v2160_v61, %v6729_v36  ;;  %v2162_v58 = vpop.f32.mrb[25].mxu0 }
 0x973   :  { %v2242_v29 = vadd.f32 %v2162_v58, %v6738_v57 }
 0x974   :  { %v3843_v56 = vmul.f32 -1.442695, %v2235_v54 }
 0x975   :  { %v3844_v2 = vmul.f32 -1.442695, %v2242_v29 }
 0x976   :  { %5807 = vpow2.f32 %v3843_v56 }
 0x977   :  { %5809 = vpow2.f32 %v3844_v2 }
 0x980   :  { %v5808_v47 = vpop.eup %5807 }
 0x981   :  { %v2239_v51 = vadd.f32 1.0, %v5808_v47  ;;  %v5810_v42 = vpop.eup %5809 }
 0x982   :  { %v2246_v10 = vadd.f32 1.0, %v5810_v42 }
 0x983   :  { %5811 = vrcp.f32 %v2239_v51 }
 0x984   :  { %5813 = vrcp.f32 %v2246_v10 }
 0x98d   :  { %v5812_v9 = vpop.eup %5811  ;;  %v2231_v14 = vpop.f32.mrb[20].mxu1 }
 0x98e   :  { %v2249_v55 = vadd.f32 %v6744_v3, %v2231_v14  ;;  %v4506_v28 = vpop.f32.mrb[21].mxu1  ;;  %v5814_v48 = vpop.eup %5813 }
 0x98f   :  { %v2253_v49 = vsub.f32 1.0, %v5814_v48  ;;  %v2255_v0 = vmul.f32 0.0, %v5814_v48 }
 0x990   :  { %v2250_v38 = vmul.f32 %v5812_v9, %v2249_v55 }
 0x992   :  { %v2251_v40 = vadd.f32 %v2250_v38, %v6747_v33 }
 0x994   :  { %5815 = vtanh.f32 %v2251_v40 }
 0x99e   :  { %v5816_v52 = vpop.eup %5815 }
 0x99f   :  { %v2254_v59 = vmul.f32 %v5816_v52, %v2253_v49  ;;  %v5992_v52 = vmov 1966171168  }
 0x9a1   :  { %v6750_v8 = vadd.f32 %v2255_v0, %v2254_v59  ;;  %v3482_v59 = vunpack.c.l.s4 %v5992_v52 }
 0x9a3   :  { %2322 = vmatmul.mubr.f32.vlgmr.msra.gmra.mrb[26].mxu0 %v6750_v8  ;;  %4540 = vmatmul.mubr.f32.vlgmr.msra.gmra.mrb[22].mxu1 %v6750_v8  ;;  %v2428_v28 = vrot.slane %v6750_v8, 6  ;;  %v3483_v0 = vunpack.c.0.s8 %v3482_v59 }
 0x9a4   :  { %5379 = vmatpush1.bf16.msra.mxu0 %v6577_v20  ;;  %5410 = vmatpush3.bf16.msra.mxu1 %v6638_v5 }
 0x9a5   :  { %5381 = vmatprep.subr.bf16.mxu0 %v6581_v31  ;;  %5411 = vmatprep.subr.bf16.mxu1 %v5990_v45 }
 0x9a6   :  { %2499 = vmatprep.mubr.f32.mxu0 %v5987_v1  ;;  %4574 = vmatprep.mubr.msk.f32.mxu1 %vm5991_vm2, %v5987_v1 }
 0x9a8   :  { %5383 = vmatpush1.bf16.msra.mxu0 %v6583_v23  ;;  %5413 = vmatpush3.bf16.msra.mxu1 %v6645_v13 }
 0x9a9   :  { %5385 = vmatprep.subr.bf16.mxu0 %v6587_v43  ;;  %5414 = vmatprep.subr.bf16.mxu1 %v5990_v45 }
 0x9ac   :  { %5387 = vmatpush1.bf16.msra.mxu0 %v6589_v53  ;;  %5416 = vmatpush3.bf16.msra.mxu1 %v6652_v25 }
 0x9ad   :  { %5389 = vmatprep.subr.bf16.mxu0 %v6593_v7  ;;  %5417 = vmatprep.subr.bf16.mxu1 %v5990_v45 }
 0x9b0   :  { %5391 = vmatpush1.bf16.msra.mxu0 %v6595_v17  ;;  %5419 = vmatpush3.bf16.msra.mxu1 %v6659_v34 }
 0x9b1   :  { %5393 = vmatprep.subr.bf16.mxu0 %v6599_v39  ;;  %5420 = vmatprep.subr.bf16.mxu1 %v5990_v45 }
 0x9b4   :  { %5395 = vmatpush1.bf16.msra.mxu0 %v6601_v44  ;;  %5422 = vmatpush3.bf16.msra.mxu1 %v6665_v41 }
 0x9b5   :  { %5397 = vmatprep.subr.bf16.mxu0 %v6604_v63  ;;  %5423 = vmatprep.subr.bf16.mxu1 %v5990_v45 }
 0x9b8   :  { %5399 = vmatpush1.bf16.msra.mxu0 %v6607_v15  ;;  %5425 = vmatpush3.bf16.msra.mxu1 %v6671_v46 }
 0x9b9   :  { %5401 = vmatprep.subr.bf16.mxu0 %v6610_v12  ;;  %5426 = vmatprep.subr.bf16.mxu1 %v5990_v45 }
 0x9bc   :  { %5403 = vmatpush1.bf16.msra.mxu0 %v6613_v24  ;;  %5428 = vmatpush3.bf16.msra.mxu1 %v6677_v60 }
 0x9bd   :  { %5405 = vmatprep.subr.bf16.mxu0 %v6618_v32  ;;  %5429 = vmatprep.subr.bf16.mxu1 %v5990_v45 }
 0x9c0   :  { %5407 = vmatpush1.bf16.msra.mxu0 %v6620_v37  ;;  %5431 = vmatpush3.bf16.msra.mxu1 %v6683_v11 }
 0x9c1   :  { %5433 = vmatprep.subr.bf16.mxu0 %v6575_v16  ;;  %5464 = vmatprep.subr.bf16.mxu1 %v5990_v45 }
 0xa76   :  { %v2323_v18 = vpop.f32.mrb[26].mxu0  ;;  %v2394_v21 = vpop.f32.mrb[22].mxu1 }
 0xa77   :  { %v2399_v30 = vrot.slane %v2323_v18, 6  ;;  %v2325_v22 = vpop.f32.mrb[27].mxu0  ;;  %v4541_v61 = vpop.f32.mrb[23].mxu1  ;;  %v2418_v9 = vadd.f32 %v6744_v3, %v2394_v21 }
 0xa78   :  { %v2409_v54 = vrot.slane %v2325_v22, 6  ;;  %v6795_v61 = vsub.s32 %v3483_v0, %v6104_v4 }
 0xa79   :  { %v2401_v58 = vadd.f32 %v2399_v30, %v6729_v36  ;;  %v2420_v14 = vrot.slane %v2418_v9, 6 }
 0xa7a   :  { %v2411_v56 = vadd.f32 %v2409_v54, %v6738_v57  ;;  %v3487_v54 = vrot.slane %v6750_v8, %v6795_v61 }
 0xa7b   :  { %v3845_v29 = vmul.f32 -1.442695, %v2401_v58 }
 0xa7c   :  { %v3846_v2 = vmul.f32 -1.442695, %v2411_v56  ;;  %v3488_v4 = vcombine.high %v3487_v54, %v3487_v54  ;;  %v3495_v8 = vrot.slane %v3487_v54, %v6795_v61 }
 0xa7d   :  { %5817 = vpow2.f32 %v3845_v29 }
 0xa7e   :  { %5819 = vpow2.f32 %v3846_v2  ;;  %v3502_v9 = vrot.slane %v3488_v4, %v6795_v61 }
 0xa87   :  { %v5818_v47 = vpop.eup %5817 }
 0xa88   :  { %v5820_v51 = vpop.eup %5819  ;;  %v2405_v42 = vadd.f32 1.0, %v5818_v47 }
 0xa89   :  { %v2415_v10 = vadd.f32 1.0, %v5820_v51 }
 0xa8a   :  { %5821 = vrcp.f32 %v2405_v42 }
 0xa8b   :  { %5823 = vrcp.f32 %v2415_v10 }
 0xa94   :  { %v5822_v55 = vpop.eup %5821 }
 0xa95   :  { %v5824_v38 = vpop.eup %5823  ;;  %v2422_v40 = vmul.f32 %v5822_v55, %v2420_v14 }
 0xa96   :  { %v2430_v48 = vmul.f32 %v5824_v38, %v2428_v28  ;;  %v2425_v18 = vsub.f32 1.0, %v5824_v38 }
 0xa97   :  { %v2423_v49 = vadd.f32 %v2422_v40, %v6747_v33 }
 0xa99   :  { %5825 = vtanh.f32 %v2423_v49 }
 0xaa3   :  { %v5826_v30 = vpop.eup %5825 }
 0xaa4   :  { %v2426_v22 = vmul.f32 %v5826_v30, %v2425_v18 }
 0xaa6   :  { %v6797_v21 = vadd.f32 %v2430_v48, %v2426_v22 }
 0xaa8   :  { %v2433_v58 = vrot.slane %v6797_v21, 2  ;;  %v3511_v56 = vrot.slane %v6797_v21, %v6795_v61 }
 0xaaa   :  { %2500 = vmatmul.mubr.f32.vlgmr.msra.gmra.mrb[28].mxu0 %v2433_v58  ;;  %v3512_v29 = vcombine.high %v3511_v56, %v3511_v56  ;;  %v3519_v2 = vrot.slane %v3511_v56, %v6795_v61  ;;  %4575 = vmatmul.mubr.f32.vlgmr.msra.gmra.mrb[24].mxu1 %v2433_v58 }
 0xaab   :  { %5435 = vmatpush1.bf16.msra.mxu0 %v6577_v20  ;;  %5466 = vmatpush3.bf16.msra.mxu1 %v6638_v5 }
 0xaac   :  { %v3526_v47 = vrot.slane %v3512_v29, %v6795_v61  ;;  %v3527_v51 = vcombine.high %v3519_v2, %v3519_v2  ;;  %5437 = vmatprep.subr.bf16.mxu0 %v6581_v31  ;;  %5467 = vmatprep.subr.bf16.mxu1 %v5990_v45 }
 0xaad   :  { %2676 = vmatprep.mubr.f32.mxu0 %v5987_v1  ;;  %4609 = vmatprep.mubr.msk.f32.mxu1 %vm5991_vm2, %v5987_v1 }
 0xaae   :  { %v3528_v42 = vcombine.high %v3526_v47, %v3526_v47  ;;  %v3675_v10 = vrot.slane %v3527_v51, %v6259_v62  ;;  %v2605_v51 = vrot.slane %v6797_v21, 6 }
 0xaaf   :  { %5439 = vmatpush1.bf16.msra.mxu0 %v6583_v23  ;;  %5469 = vmatpush3.bf16.msra.mxu1 %v6645_v13 }
 0xab0   :  { %v3679_v14 = vrot.slane %v3528_v42, %v6259_v62  ;;  %5441 = vmatprep.subr.bf16.mxu0 %v6587_v43  ;;  %5470 = vmatprep.subr.bf16.mxu1 %v5990_v45  ;;  %v6822_v55 = vsel %vm3742_vm5, %v3495_v8, %v3675_v10 }
 0xab2   :  { %v6825_v28 = vsel %vm3742_vm5, %v3502_v9, %v3679_v14 }
 0xab3   :  { %5443 = vmatpush1.bf16.msra.mxu0 %v6589_v53  ;;  %5472 = vmatpush3.bf16.msra.mxu1 %v6652_v25 }
 0xab4   :  { %5445 = vmatprep.subr.bf16.mxu0 %v6593_v7  ;;  %5473 = vmatprep.subr.bf16.mxu1 %v5990_v45 }
 0xab7   :  { %5447 = vmatpush1.bf16.msra.mxu0 %v6595_v17  ;;  %5475 = vmatpush3.bf16.msra.mxu1 %v6659_v34 }
 0xab8   :  { %5449 = vmatprep.subr.bf16.mxu0 %v6599_v39  ;;  %5476 = vmatprep.subr.bf16.mxu1 %v5990_v45 }
 0xabb   :  { %5451 = vmatpush1.bf16.msra.mxu0 %v6601_v44  ;;  %5478 = vmatpush3.bf16.msra.mxu1 %v6665_v41 }
 0xabc   :  { %5453 = vmatprep.subr.bf16.mxu0 %v6604_v63  ;;  %5479 = vmatprep.subr.bf16.mxu1 %v5990_v45 }
 0xabf   :  { %5455 = vmatpush1.bf16.msra.mxu0 %v6607_v15  ;;  %5481 = vmatpush3.bf16.msra.mxu1 %v6671_v46 }
 0xac0   :  { %5457 = vmatprep.subr.bf16.mxu0 %v6610_v12  ;;  %5482 = vmatprep.subr.bf16.mxu1 %v5990_v45 }
 0xac3   :  { %5459 = vmatpush1.bf16.msra.mxu0 %v6613_v24  ;;  %5484 = vmatpush3.bf16.msra.mxu1 %v6677_v60 }
 0xac4   :  { %5461 = vmatprep.subr.bf16.mxu0 %v6618_v32  ;;  %5485 = vmatprep.subr.bf16.mxu1 %v5990_v45 }
 0xac7   :  { %5463 = vmatpush1.bf16.msra.mxu0 %v6620_v37  ;;  %5487 = vmatpush3.bf16.msra.mxu1 %v6683_v11 }
 0xac8   :  { %5489 = vmatprep.subr.bf16.mxu0 %v6575_v16  ;;  %5520 = vmatprep.subr.bf16.mxu1 %v5990_v45 }
 0xb7d   :  { %v2501_v38 = vpop.f32.mrb[28].mxu0  ;;  %v2572_v40 = vpop.f32.mrb[24].mxu1 }
 0xb7e   :  { %v2577_v48 = vrot.slane %v2501_v38, 4  ;;  %v2503_v49 = vpop.f32.mrb[29].mxu0  ;;  %v4576_v52 = vpop.f32.mrb[25].mxu1  ;;  %v2596_v2 = vadd.f32 %v6744_v3, %v2572_v40 }
 0xb7f   :  { %v2587_v59 = vrot.slane %v2503_v49, 4 }
 0xb80   :  { %v2579_v0 = vadd.f32 %v2577_v48, %v6729_v36  ;;  %v2598_v4 = vrot.slane %v2596_v2, 4 }
 0xb81   :  { %v2589_v18 = vadd.f32 %v2587_v59, %v6738_v57 }
 0xb82   :  { %v3847_v30 = vmul.f32 -1.442695, %v2579_v0 }
 0xb83   :  { %v3848_v22 = vmul.f32 -1.442695, %v2589_v18 }
 0xb84   :  { %5827 = vpow2.f32 %v3847_v30 }
 0xb85   :  { %5829 = vpow2.f32 %v3848_v22 }
 0xb8e   :  { %v5828_v54 = vpop.eup %5827 }
 0xb8f   :  { %v5830_v58 = vpop.eup %5829  ;;  %v2583_v56 = vadd.f32 1.0, %v5828_v54 }
 0xb90   :  { %v2593_v29 = vadd.f32 1.0, %v5830_v58 }
 0xb91   :  { %5831 = vrcp.f32 %v2583_v56 }
 0xb92   :  { %5833 = vrcp.f32 %v2593_v29 }
 0xb9b   :  { %v5832_v47 = vpop.eup %5831 }
 0xb9c   :  { %v5834_v8 = vpop.eup %5833  ;;  %v2600_v42 = vmul.f32 %v5832_v47, %v2598_v4 }
 0xb9d   :  { %v2607_v10 = vmul.f32 %v5834_v8, %v2605_v51  ;;  %v2603_v14 = vsub.f32 1.0, %v5834_v8 }
 0xb9e   :  { %v2601_v9 = vadd.f32 %v2600_v42, %v6747_v33 }
 0xba0   :  { %5835 = vtanh.f32 %v2601_v9 }
 0xbaa   :  { %v5836_v38 = vpop.eup %5835 }
 0xbab   :  { %v2604_v48 = vmul.f32 %v5836_v38, %v2603_v14 }
 0xbad   :  { %v6856_v49 = vadd.f32 %v2607_v10, %v2604_v48 }
 0xbaf   :  { %v2610_v52 = vrot.slane %v6856_v49, 4  ;;  %v3529_v40 = vcombine.high %v6856_v49, %v6856_v49 }
 0xbb1   :  { %2677 = vmatmul.mubr.f32.vlgmr.msra.gmra.mrb[30].mxu0 %v2610_v52  ;;  %v3536_v59 = vrot.slane %v3529_v40, %v6795_v61  ;;  %4610 = vmatmul.mubr.f32.vlgmr.msra.gmra.mrb[26].mxu1 %v2610_v52 }
 0xbb2   :  { %5491 = vmatpush1.bf16.msra.mxu0 %v6577_v20  ;;  %5522 = vmatpush3.bf16.msra.mxu1 %v6638_v5 }
 0xbb3   :  { %v3537_v21 = vcombine.high %v3536_v59, %v3536_v59  ;;  %v3544_v0 = vrot.slane %v3536_v59, %v6795_v61  ;;  %5493 = vmatprep.subr.bf16.mxu0 %v6581_v31  ;;  %5523 = vmatprep.subr.bf16.mxu1 %v5990_v45  ;;  %v2782_v59 = vrot.slane %v6856_v49, 6 }
 0xbb4   :  { %2853 = vmatprep.mubr.f32.mxu0 %v5987_v1  ;;  %4644 = vmatprep.mubr.msk.f32.mxu1 %vm5991_vm2, %v5987_v1 }
 0xbb5   :  { %v3551_v18 = vrot.slane %v3537_v21, %v6795_v61  ;;  %v3685_v30 = vrot.slane %v3544_v0, %v6259_v62 }
 0xbb6   :  { %5495 = vmatpush1.bf16.msra.mxu0 %v6583_v23  ;;  %5525 = vmatpush3.bf16.msra.mxu1 %v6645_v13 }
 0xbb7   :  { %v3689_v22 = vrot.slane %v3551_v18, %v6259_v62  ;;  %5497 = vmatprep.subr.bf16.mxu0 %v6587_v43  ;;  %5526 = vmatprep.subr.bf16.mxu1 %v5990_v45  ;;  %v6879_v54 = vsel %vm1814_vm3, %v6822_v55, %v3685_v30 }
 0xbb9   :  { %v6883_v58 = vsel %vm1814_vm3, %v6825_v28, %v3689_v22 }
 0xbba   :  { %5499 = vmatpush1.bf16.msra.mxu0 %v6589_v53  ;;  %5528 = vmatpush3.bf16.msra.mxu1 %v6652_v25 }
 0xbbb   :  { %5501 = vmatprep.subr.bf16.mxu0 %v6593_v7  ;;  %5529 = vmatprep.subr.bf16.mxu1 %v5990_v45 }
 0xbbe   :  { %5503 = vmatpush1.bf16.msra.mxu0 %v6595_v17  ;;  %5531 = vmatpush3.bf16.msra.mxu1 %v6659_v34 }
 0xbbf   :  { %5505 = vmatprep.subr.bf16.mxu0 %v6599_v39  ;;  %5532 = vmatprep.subr.bf16.mxu1 %v5990_v45 }
 0xbc2   :  { %5507 = vmatpush1.bf16.msra.mxu0 %v6601_v44  ;;  %5534 = vmatpush3.bf16.msra.mxu1 %v6665_v41 }
 0xbc3   :  { %5509 = vmatprep.subr.bf16.mxu0 %v6604_v63  ;;  %5535 = vmatprep.subr.bf16.mxu1 %v5990_v45 }
 0xbc6   :  { %5511 = vmatpush1.bf16.msra.mxu0 %v6607_v15  ;;  %5537 = vmatpush3.bf16.msra.mxu1 %v6671_v46 }
 0xbc7   :  { %5513 = vmatprep.subr.bf16.mxu0 %v6610_v12  ;;  %5538 = vmatprep.subr.bf16.mxu1 %v5990_v45 }
 0xbca   :  { %5515 = vmatpush1.bf16.msra.mxu0 %v6613_v24  ;;  %5540 = vmatpush3.bf16.msra.mxu1 %v6677_v60 }
 0xbcb   :  { %5517 = vmatprep.subr.bf16.mxu0 %v6618_v32  ;;  %5541 = vmatprep.subr.bf16.mxu1 %v5990_v45 }
 0xbce   :  { %5519 = vmatpush1.bf16.msra.mxu0 %v6620_v37  ;;  %5543 = vmatpush3.bf16.msra.mxu1 %v6683_v11 }
 0xbcf   :  { %5545 = vmatprep.subr.bf16.mxu0 %v6575_v16  ;;  %5576 = vmatprep.subr.bf16.mxu1 %v5990_v45 }
 0xc84   :  { %v2678_v55 = vpop.f32.mrb[30].mxu0  ;;  %v2749_v28 = vpop.f32.mrb[26].mxu1 }
 0xc85   :  { %v2754_v56 = vrot.slane %v2678_v55, 2  ;;  %v2680_v29 = vpop.f32.mrb[31].mxu0  ;;  %v4611_v2 = vpop.f32.mrb[27].mxu1  ;;  %v2773_v48 = vadd.f32 %v6744_v3, %v2749_v28 }
 0xc86   :  { %v2764_v4 = vrot.slane %v2680_v29, 2 }
 0xc87   :  { %v2756_v47 = vadd.f32 %v2754_v56, %v6729_v36  ;;  %v2775_v52 = vrot.slane %v2773_v48, 2 }
 0xc88   :  { %v2766_v51 = vadd.f32 %v2764_v4, %v6738_v57 }
 0xc89   :  { %v3849_v8 = vmul.f32 -1.442695, %v2756_v47 }
 0xc8a   :  { %v3850_v42 = vmul.f32 -1.442695, %v2766_v51 }
 0xc8b   :  { %5837 = vpow2.f32 %v3849_v8 }
 0xc8c   :  { %5839 = vpow2.f32 %v3850_v42 }
 0xc95   :  { %v5838_v10 = vpop.eup %5837 }
 0xc96   :  { %v5840_v9 = vpop.eup %5839  ;;  %v2760_v14 = vadd.f32 1.0, %v5838_v10 }
 0xc97   :  { %v2770_v38 = vadd.f32 1.0, %v5840_v9 }
 0xc98   :  { %5841 = vrcp.f32 %v2760_v14 }
 0xc99   :  { %5843 = vrcp.f32 %v2770_v38 }
 0xca2   :  { %v5842_v40 = vpop.eup %5841 }
 0xca3   :  { %v5844_v21 = vpop.eup %5843  ;;  %v2777_v36 = vmul.f32 %v5842_v40, %v2775_v52  ;;  %v6971_v52 = vadd.f32 %v6725_v19, %v6733_v50 }
 0xca4   :  { %v2784_v0 = vmul.f32 %v5844_v21, %v2782_v59  ;;  %v2780_v18 = vsub.f32 1.0, %v5844_v21 }
 0xca5   :  { %v2778_v57 = vadd.f32 %v2777_v36, %v6747_v33 }
 0xca7   :  { %5845 = vtanh.f32 %v2778_v57 }
 0xcb1   :  { %v5846_v30 = vpop.eup %5845 }
 0xcb2   :  { %v2781_v22 = vmul.f32 %v5846_v30, %v2780_v18 }
 0xcb4   :  { %v2785_v55 = vadd.f32 %v2784_v0, %v2781_v22 }
 0xcb6   :  { %v6914_v56 = vrot.slane %v2785_v55, 6  ;;  %v3552_v29 = vcombine.high %v2785_v55, %v2785_v55 }
 0xcb8   :  { %2854 = vmatmul.mubr.f32.vlgmr.msra.gmra.mrb[32].mxu0 %v6914_v56  ;;  %v3559_v28 = vrot.slane %v3552_v29, %v6795_v61  ;;  %4645 = vmatmul.mubr.f32.vlgmr.msra.gmra.mrb[28].mxu1 %v6914_v56 }
 0xcb9   :  { %5547 = vmatpush1.bf16.msra.mxu0 %v6577_v20  ;;  %5578 = vmatpush3.bf16.msra.mxu1 %v6638_v5 }
 0xcba   :  { %v3560_v49 = vcombine.high %v3559_v28, %v3559_v28  ;;  %v3567_v33 = vrot.slane %v3559_v28, %v6795_v61  ;;  %5549 = vmatprep.subr.bf16.mxu0 %v6581_v31  ;;  %5579 = vmatprep.subr.bf16.mxu1 %v5990_v45 }
 0xcbb   :  { %3016 = vmatprep.mubr.f32.mxu0 %v5987_v1  ;;  %4679 = vmatprep.mubr.msk.f32.mxu1 %vm5991_vm2, %v5987_v1 }
 0xcbc   :  { %v3574_v2 = vrot.slane %v3560_v49, %v6795_v61  ;;  %v3575_v4 = vcombine.high %v3567_v33, %v3567_v33 }
 0xcbd   :  { %5551 = vmatpush1.bf16.msra.mxu0 %v6583_v23  ;;  %5581 = vmatpush3.bf16.msra.mxu1 %v6645_v13 }
 0xcbe   :  { %v3576_v47 = vcombine.high %v3574_v2, %v3574_v2  ;;  %v3695_v51 = vrot.slane %v3575_v4, %v6259_v62  ;;  %5553 = vmatprep.subr.bf16.mxu0 %v6587_v43  ;;  %5582 = vmatprep.subr.bf16.mxu1 %v5990_v45 }
 0xcc0   :  { %v3699_v8 = vrot.slane %v3576_v47, %v6259_v62  ;;  %v6935_v42 = vsel %vm3747_vm6, %v6879_v54, %v3695_v51  ;;  %v6966_v54 = vadd.f32 %v6721_v27, %v6719_v26 }
 0xcc1   :  { %5555 = vmatpush1.bf16.msra.mxu0 %v6589_v53  ;;  %5584 = vmatpush3.bf16.msra.mxu1 %v6652_v25 }
 0xcc2   :  { %5557 = vmatprep.subr.bf16.mxu0 %v6593_v7  ;;  %5585 = vmatprep.subr.bf16.mxu1 %v5990_v45  ;;  %v6942_v10 = vsel %vm3747_vm6, %v6883_v58, %v3699_v8 }
 0xcc5   :  { %5559 = vmatpush1.bf16.msra.mxu0 %v6595_v17  ;;  %5587 = vmatpush3.bf16.msra.mxu1 %v6659_v34 }
 0xcc6   :  { %5561 = vmatprep.subr.bf16.mxu0 %v6599_v39  ;;  %5588 = vmatprep.subr.bf16.mxu1 %v5990_v45 }
 0xcc9   :  { %5563 = vmatpush1.bf16.msra.mxu0 %v6601_v44  ;;  %5590 = vmatpush3.bf16.msra.mxu1 %v6665_v41 }
 0xcca   :  { %5565 = vmatprep.subr.bf16.mxu0 %v6604_v63  ;;  %5591 = vmatprep.subr.bf16.mxu1 %v5990_v45 }
 0xccd   :  { %5567 = vmatpush1.bf16.msra.mxu0 %v6607_v15  ;;  %5593 = vmatpush3.bf16.msra.mxu1 %v6671_v46 }
 0xcce   :  { %5569 = vmatprep.subr.bf16.mxu0 %v6610_v12  ;;  %5594 = vmatprep.subr.bf16.mxu1 %v5990_v45 }
 0xcd1   :  { %5571 = vmatpush1.bf16.msra.mxu0 %v6613_v24  ;;  %5596 = vmatpush3.bf16.msra.mxu1 %v6677_v60 }
 0xcd2   :  { %5573 = vmatprep.subr.bf16.mxu0 %v6618_v32  ;;  %5597 = vmatprep.subr.bf16.mxu1 %v5990_v45 }
 0xcd5   :  { %5575 = vmatpush1.bf16.msra.mxu0 %v6620_v37  ;;  %5599 = vmatpush3.bf16.msra.mxu1 %v6683_v11 }
 0xcd6   :  { %5601 = vmatprep.subr.bf16.mxu0 %v6575_v16  ;;  %5632 = vmatprep.subr.bf16.mxu1 %v5990_v45 }
 0xd8b   :  { %v2855_v58 = vpop.f32.mrb[32].mxu0  ;;  %v2926_v9 = vpop.f32.mrb[28].mxu1 }
 0xd8c   :  { %v2930_v14 = vadd.f32 %v2855_v58, %v6966_v54  ;;  %v2857_v38 = vpop.f32.mrb[33].mxu0  ;;  %v4646_v48 = vpop.f32.mrb[29].mxu1  ;;  %v2944_v57 = vadd.f32 %v6744_v3, %v2926_v9 }
 0xd8d   :  { %v2937_v59 = vadd.f32 %v2857_v38, %v6971_v52 }
 0xd8e   :  { %v3851_v40 = vmul.f32 -1.442695, %v2930_v14 }
 0xd8f   :  { %v3852_v21 = vmul.f32 -1.442695, %v2937_v59 }
 0xd90   :  { %5847 = vpow2.f32 %v3851_v40 }
 0xd91   :  { %5849 = vpow2.f32 %v3852_v21 }
 0xd9a   :  { %v5848_v36 = vpop.eup %5847 }
 0xd9b   :  { %v2934_v0 = vadd.f32 1.0, %v5848_v36  ;;  %v5850_v26 = vpop.eup %5849 }
 0xd9c   :  { %v2941_v27 = vadd.f32 1.0, %v5850_v26 }
 0xd9d   :  { %5851 = vrcp.f32 %v2934_v0 }
 0xd9e   :  { %5853 = vrcp.f32 %v2941_v27 }
 0xda7   :  { %v5852_v18 = vpop.eup %5851 }
 0xda8   :  { %v2945_v30 = vmul.f32 %v5852_v18, %v2944_v57  ;;  %v5854_v19 = vpop.eup %5853 }
 0xda9   :  { %v2948_v50 = vsub.f32 1.0, %v5854_v19  ;;  %v2950_v28 = vmul.f32 %v5854_v19, %v6914_v56 }
 0xdaa   :  { %v2946_v22 = vadd.f32 %v2945_v30, %v6723_v35 }
 0xdac   :  { %5855 = vtanh.f32 %v2946_v22 }
 0xdb6   :  { %v5856_v55 = vpop.eup %5855 }
 0xdb7   :  { %v2949_v29 = vmul.f32 %v5856_v55, %v2948_v50 }
 0xdb9   :  { %v6977_v49 = vadd.f32 %v2950_v28, %v2949_v29 }
 0xdbb   :  { %3017 = vmatmul.mubr.f32.vlgmr.msra.gmra.mrb[34].mxu0 %v6977_v49  ;;  %v3583_v33 = vrot.slane %v6977_v49, %v6795_v61  ;;  %4680 = vmatmul.mubr.f32.vlgmr.msra.gmra.mrb[30].mxu1 %v6977_v49  ;;  %v3123_v22 = vrot.slane %v6977_v49, 6 }
 0xdbc   :  { %5603 = vmatpush1.bf16.msra.mxu0 %v6577_v20  ;;  %5634 = vmatpush3.bf16.msra.mxu1 %v6638_v5 }
 0xdbd   :  { %v3584_v2 = vcombine.high %v3583_v33, %v3583_v33  ;;  %v3591_v4 = vrot.slane %v3583_v33, %v6795_v61  ;;  %5605 = vmatprep.subr.bf16.mxu0 %v6581_v31  ;;  %5635 = vmatprep.subr.bf16.mxu1 %v5990_v45 }
 0xdbe   :  { %3194 = vmatprep.mubr.f32.mxu0 %v5987_v1  ;;  %4714 = vmatprep.mubr.msk.f32.mxu1 %vm5991_vm2, %v5987_v1 }
 0xdbf   :  { %v3598_v56 = vrot.slane %v3584_v2, %v6795_v61  ;;  %v3705_v47 = vrot.slane %v3591_v4, %v6259_v62 }
 0xdc0   :  { %5607 = vmatpush1.bf16.msra.mxu0 %v6583_v23  ;;  %5637 = vmatpush3.bf16.msra.mxu1 %v6645_v13 }
 0xdc1   :  { %v3709_v51 = vrot.slane %v3598_v56, %v6259_v62  ;;  %5609 = vmatprep.subr.bf16.mxu0 %v6587_v43  ;;  %5638 = vmatprep.subr.bf16.mxu1 %v5990_v45  ;;  %v7000_v8 = vsel %vm262_vm0, %v6935_v42, %v3705_v47 }
 0xdc3   :  { %v7004_v58 = vsel %vm262_vm0, %v6942_v10, %v3709_v51 }
 0xdc4   :  { %5611 = vmatpush1.bf16.msra.mxu0 %v6589_v53  ;;  %5640 = vmatpush3.bf16.msra.mxu1 %v6652_v25 }
 0xdc5   :  { %5613 = vmatprep.subr.bf16.mxu0 %v6593_v7  ;;  %5641 = vmatprep.subr.bf16.mxu1 %v5990_v45 }
 0xdc8   :  { %5615 = vmatpush1.bf16.msra.mxu0 %v6595_v17  ;;  %5643 = vmatpush3.bf16.msra.mxu1 %v6659_v34 }
 0xdc9   :  { %5617 = vmatprep.subr.bf16.mxu0 %v6599_v39  ;;  %5644 = vmatprep.subr.bf16.mxu1 %v5990_v45 }
 0xdcc   :  { %5619 = vmatpush1.bf16.msra.mxu0 %v6601_v44  ;;  %5646 = vmatpush3.bf16.msra.mxu1 %v6665_v41 }
 0xdcd   :  { %5621 = vmatprep.subr.bf16.mxu0 %v6604_v63  ;;  %5647 = vmatprep.subr.bf16.mxu1 %v5990_v45 }
 0xdd0   :  { %5623 = vmatpush1.bf16.msra.mxu0 %v6607_v15  ;;  %5649 = vmatpush3.bf16.msra.mxu1 %v6671_v46 }
 0xdd1   :  { %5625 = vmatprep.subr.bf16.mxu0 %v6610_v12  ;;  %5650 = vmatprep.subr.bf16.mxu1 %v5990_v45 }
 0xdd4   :  { %5627 = vmatpush1.bf16.msra.mxu0 %v6613_v24  ;;  %5652 = vmatpush3.bf16.msra.mxu1 %v6677_v60 }
 0xdd5   :  { %5629 = vmatprep.subr.bf16.mxu0 %v6618_v32  ;;  %5653 = vmatprep.subr.bf16.mxu1 %v5990_v45 }
 0xdd8   :  { %5631 = vmatpush1.bf16.msra.mxu0 %v6620_v37  ;;  %5655 = vmatpush3.bf16.msra.mxu1 %v6683_v11 }
 0xdd9   :  { %5657 = vmatprep.subr.bf16.mxu0 %v6575_v16  ;;  %5688 = vmatprep.subr.bf16.mxu1 %v5990_v45 }
 0xe8e   :  { %v3018_v42 = vpop.f32.mrb[34].mxu0  ;;  %v3089_v10 = vpop.f32.mrb[30].mxu1 }
 0xe8f   :  { %v3094_v9 = vrot.slane %v3018_v42, 6  ;;  %v3020_v14 = vpop.f32.mrb[35].mxu0  ;;  %v4681_v38 = vpop.f32.mrb[31].mxu1  ;;  %v3113_v57 = vadd.f32 %v6744_v3, %v3089_v10 }
 0xe90   :  { %v3104_v48 = vrot.slane %v3020_v14, 6 }
 0xe91   :  { %v3096_v40 = vadd.f32 %v3094_v9, %v6966_v54  ;;  %v3115_v18 = vrot.slane %v3113_v57, 6 }
 0xe92   :  { %v3106_v59 = vadd.f32 %v3104_v48, %v6971_v52 }
 0xe93   :  { %v3853_v21 = vmul.f32 -1.442695, %v3096_v40 }
 0xe94   :  { %v3854_v36 = vmul.f32 -1.442695, %v3106_v59 }
 0xe95   :  { %5857 = vpow2.f32 %v3853_v21 }
 0xe96   :  { %5859 = vpow2.f32 %v3854_v36 }
 0xe9f   :  { %v5858_v0 = vpop.eup %5857 }
 0xea0   :  { %v5860_v26 = vpop.eup %5859  ;;  %v3100_v27 = vadd.f32 1.0, %v5858_v0 }
 0xea1   :  { %v3110_v16 = vadd.f32 1.0, %v5860_v26 }
 0xea2   :  { %5861 = vrcp.f32 %v3100_v27 }
 0xea3   :  { %5863 = vrcp.f32 %v3110_v16 }
 0xeac   :  { %v5862_v30 = vpop.eup %5861 }
 0xead   :  { %v5864_v19 = vpop.eup %5863  ;;  %v3117_v50 = vmul.f32 %v5862_v30, %v3115_v18 }
 0xeae   :  { %v3125_v55 = vmul.f32 %v5864_v19, %v3123_v22  ;;  %v3120_v28 = vsub.f32 1.0, %v5864_v19 }
 0xeaf   :  { %v3118_v29 = vadd.f32 %v3117_v50, %v6723_v35 }
 0xeb1   :  { %5865 = vtanh.f32 %v3118_v29 }
 0xebb   :  { %v5866_v33 = vpop.eup %5865 }
 0xebc   :  { %v3121_v2 = vmul.f32 %v5866_v33, %v3120_v28 }
 0xebe   :  { %v7035_v4 = vadd.f32 %v3125_v55, %v3121_v2 }
 0xec0   :  { %v3128_v56 = vrot.slane %v7035_v4, 2  ;;  %v3605_v47 = vrot.slane %v7035_v4, %v6795_v61 }
 0xec2   :  { %3195 = vmatmul.mubr.f32.vlgmr.msra.gmra.mrb[36].mxu0 %v3128_v56  ;;  %v3606_v51 = vcombine.high %v3605_v47, %v3605_v47  ;;  %v3613_v49 = vrot.slane %v3605_v47, %v6795_v61  ;;  %4715 = vmatmul.mubr.f32.vlgmr.msra.gmra.mrb[32].mxu1 %v3128_v56 }
 0xec3   :  { %5659 = vmatpush1.bf16.msra.mxu0 %v6577_v20  ;;  %5690 = vmatpush3.bf16.msra.mxu1 %v6638_v5 }
 0xec4   :  { %v3620_v42 = vrot.slane %v3606_v51, %v6795_v61  ;;  %v3621_v10 = vcombine.high %v3613_v49, %v3613_v49  ;;  %5661 = vmatprep.subr.bf16.mxu0 %v6581_v31  ;;  %5691 = vmatprep.subr.bf16.mxu1 %v5990_v45 }
 0xec5   :  { %3371 = vmatprep.mubr.f32.mxu0 %v5987_v1  ;;  %4749 = vmatprep.mubr.msk.f32.mxu1 %vm5991_vm2, %v5987_v1 }
 0xec6   :  { %v3622_v9 = vcombine.high %v3620_v42, %v3620_v42  ;;  %v3715_v14 = vrot.slane %v3621_v10, %v6259_v62 }
 0xec7   :  { %5663 = vmatpush1.bf16.msra.mxu0 %v6583_v23  ;;  %5693 = vmatpush3.bf16.msra.mxu1 %v6645_v13 }
 0xec8   :  { %5665 = vmatprep.subr.bf16.mxu0 %v6587_v43  ;;  %5694 = vmatprep.subr.bf16.mxu1 %v5990_v45  ;;  %v3719_v20 = vrot.slane %v3622_v9, %v6259_v62  ;;  %v7056_v31 = vsel %vm3752_vm7, %v7000_v8, %v3715_v14 }
 0xeca   :  { %v7059_v5 = vsel %vm3752_vm7, %v7004_v58, %v3719_v20 }
 0xecb   :  { %5667 = vmatpush1.bf16.msra.mxu0 %v6589_v53  ;;  %5696 = vmatpush3.bf16.msra.mxu1 %v6652_v25 }
 0xecc   :  { %5669 = vmatprep.subr.bf16.mxu0 %v6593_v7  ;;  %5697 = vmatprep.subr.bf16.mxu1 %v5990_v45 }
 0xecf   :  { %5671 = vmatpush1.bf16.msra.mxu0 %v6595_v17  ;;  %5699 = vmatpush3.bf16.msra.mxu1 %v6659_v34  ;;  %v3300_v34 = vrot.slane %v7035_v4, 6 }
 0xed0   :  { %5673 = vmatprep.subr.bf16.mxu0 %v6599_v39  ;;  %5700 = vmatprep.subr.bf16.mxu1 %v5990_v45 }
 0xed3   :  { %5675 = vmatpush1.bf16.msra.mxu0 %v6601_v44  ;;  %5702 = vmatpush3.bf16.msra.mxu1 %v6665_v41 }
 0xed4   :  { %5677 = vmatprep.subr.bf16.mxu0 %v6604_v63  ;;  %5703 = vmatprep.subr.bf16.mxu1 %v5990_v45 }
 0xed7   :  { %5679 = vmatpush1.bf16.msra.mxu0 %v6607_v15  ;;  %5705 = vmatpush3.bf16.msra.mxu1 %v6671_v46 }
 0xed8   :  { %5681 = vmatprep.subr.bf16.mxu0 %v6610_v12  ;;  %5706 = vmatprep.subr.bf16.mxu1 %v5990_v45 }
 0xedb   :  { %5683 = vmatpush1.bf16.msra.mxu0 %v6613_v24  ;;  %5708 = vmatpush3.bf16.msra.mxu1 %v6677_v60 }
 0xedc   :  { %5685 = vmatprep.subr.bf16.mxu0 %v6618_v32  ;;  %5709 = vmatprep.subr.bf16.mxu1 %v5990_v45 }
 0xedf   :  { %5687 = vmatpush1.bf16.msra.mxu0 %v6620_v37  ;;  %5711 = vmatpush3.bf16.msra.mxu1 %v6683_v11 }
 0xf95   :  { %v3196_v1 = vpop.f32.mrb[36].mxu0  ;;  %v3267_v23 = vpop.f32.mrb[32].mxu1 }
 0xf96   :  { %v3272_v43 = vrot.slane %v3196_v1, 4  ;;  %v3198_v53 = vpop.f32.mrb[37].mxu0  ;;  %v4716_v7 = vpop.f32.mrb[33].mxu1  ;;  %v3291_v37 = vadd.f32 %v6744_v3, %v3267_v23 }
 0xf97   :  { %v3282_v17 = vrot.slane %v3198_v53, 4 }
 0xf98   :  { %v3274_v39 = vadd.f32 %v3272_v43, %v6966_v54  ;;  %v3293_v13 = vrot.slane %v3291_v37, 4 }
 0xf99   :  { %v3284_v44 = vadd.f32 %v3282_v17, %v6971_v52 }
 0xf9a   :  { %v3855_v63 = vmul.f32 -1.442695, %v3274_v39 }
 0xf9b   :  { %v3856_v15 = vmul.f32 -1.442695, %v3284_v44 }
 0xf9c   :  { %5867 = vpow2.f32 %v3855_v63 }
 0xf9d   :  { %5869 = vpow2.f32 %v3856_v15 }
 0xfa6   :  { %v5868_v12 = vpop.eup %5867 }
 0xfa7   :  { %v5870_v45 = vpop.eup %5869  ;;  %v3278_v24 = vadd.f32 1.0, %v5868_v12 }
 0xfa8   :  { %v3288_v32 = vadd.f32 1.0, %v5870_v45 }
 0xfa9   :  { %5871 = vrcp.f32 %v3278_v24 }
 0xfaa   :  { %5873 = vrcp.f32 %v3288_v32 }
 0xfb3   :  { %v5872_v25 = vpop.eup %5871 }
 0xfb4   :  { %v5874_v41 = vpop.eup %5873  ;;  %v3295_v46 = vmul.f32 %v5872_v25, %v3293_v13 }
 0xfb5   :  { %v3302_v60 = vmul.f32 %v5874_v41, %v3300_v34  ;;  %v3298_v8 = vsub.f32 1.0, %v5874_v41 }
 0xfb6   :  { %v3296_v11 = vadd.f32 %v3295_v46, %v6723_v35 }
 0xfb8   :  { %5875 = vtanh.f32 %v3296_v11 }
 0xfc2   :  { %v5876_v58 = vpop.eup %5875 }
 0xfc3   :  { %v3299_v38 = vmul.f32 %v5876_v58, %v3298_v8 }
 0xfc5   :  { %v3303_v48 = vadd.f32 %v3302_v60, %v3299_v38 }
 0xfc7   :  { %v3305_v40 = vrot.slane %v3303_v48, 4  ;;  %v3623_v59 = vcombine.high %v3303_v48, %v3303_v48  ;;  %v3477_v14 = vrot.slane %v3303_v48, 6 }
 0xfc9   :  { %3372 = vmatmul.mubr.f32.vlgmr.msra.gmra.mrb[38].mxu0 %v3305_v40  ;;  %v3630_v21 = vrot.slane %v3623_v59, %v6795_v61  ;;  %4750 = vmatmul.mubr.f32.vlgmr.msra.gmra.mrb[34].mxu1 %v3305_v40 }
 0xfcb   :  { %v3631_v36 = vcombine.high %v3630_v21, %v3630_v21  ;;  %v3638_v0 = vrot.slane %v3630_v21, %v6795_v61 }
 0xfcd   :  { %v3645_v26 = vrot.slane %v3631_v36, %v6795_v61  ;;  %v3725_v27 = vrot.slane %v3638_v0, %v6259_v62 }
 0xfcf   :  { %v3729_v16 = vrot.slane %v3645_v26, %v6259_v62  ;;  %v3755_v57 = vsel %vm1817_vm4, %v7056_v31, %v3725_v27 }
 0xfd1   :  { %v3756_v18 = vsel %vm1817_vm4, %v7059_v5, %v3729_v16  ;;  %v3764_v5 = vcombine.high %v6636_v6, %v6636_v6 }
 0xfd3   :  { %v3771_v53 = vrot.slane %v3764_v5, %v6795_v61 }
 0xfd5   :  { %v3779_v44 = vrot.slane %v3771_v53, %v6795_v61 }
 0xfd7   :  { %v3787_v45 = vcombine.high %v3779_v44, %v3779_v44 }
0x109c   :  { %v3373_v30 = vpop.f32.mrb[38].mxu0  ;;  %v3444_v22 = vpop.f32.mrb[34].mxu1 }
0x109d   :  { %v3449_v19 = vrot.slane %v3373_v30, 2  ;;  %v3375_v50 = vpop.f32.mrb[39].mxu0  ;;  %v4751_v55 = vpop.f32.mrb[35].mxu1  ;;  %v3468_v42 = vadd.f32 %v6744_v3, %v3444_v22  ;;  %v3772_v3 = vcombine.high %v3771_v53, %v3771_v53 }
0x109e   :  { %v3459_v29 = vrot.slane %v3375_v50, 2 }
0x109f   :  { %v3451_v28 = vadd.f32 %v3449_v19, %v6966_v54  ;;  %v3470_v10 = vrot.slane %v3468_v42, 2 }
0x10a0   :  { %v3461_v33 = vadd.f32 %v3459_v29, %v6971_v52 }
0x10a1   :  { %v3857_v2 = vmul.f32 -1.442695, %v3451_v28 }
0x10a2   :  { %v3858_v4 = vmul.f32 -1.442695, %v3461_v33 }
0x10a3   :  { %5877 = vpow2.f32 %v3857_v2 }
0x10a4   :  { %5879 = vpow2.f32 %v3858_v4 }
0x10ad   :  { %v5878_v56 = vpop.eup %5877 }
0x10ae   :  { %v5880_v47 = vpop.eup %5879  ;;  %v3455_v51 = vadd.f32 1.0, %v5878_v56 }
0x10af   :  { %v3465_v49 = vadd.f32 1.0, %v5880_v47 }
0x10b0   :  { %5881 = vrcp.f32 %v3455_v51 }
0x10b1   :  { %5883 = vrcp.f32 %v3465_v49 }
0x10ba   :  { %v5882_v9 = vpop.eup %5881 }
0x10bb   :  { %v5884_v20 = vpop.eup %5883  ;;  %v3472_v31 = vmul.f32 %v5882_v9, %v3470_v10 }
0x10bc   :  { %v3479_v54 = vmul.f32 %v5884_v20, %v3477_v14  ;;  %v3475_v1 = vsub.f32 1.0, %v5884_v20 }
0x10bd   :  { %v3473_v52 = vadd.f32 %v3472_v31, %v6723_v35  ;;  %v3786_v35 = vrot.slane %v3772_v3, %v6795_v61 }
0x10bf   :  { %5885 = vtanh.f32 %v3473_v52  ;;  %v3788_v37 = vcombine.high %v3786_v35, %v3786_v35 }
0x10c9   :  { %v5886_v23 = vpop.eup %5885 }
0x10ca   :  { %v3476_v43 = vmul.f32 %v5886_v23, %v3475_v1 }
0x10cc   :  { %v3480_v7 = vadd.f32 %v3479_v54, %v3476_v43 }
0x10ce   :  { %v3647_v17 = vcombine.high %v3480_v7, %v3480_v7 }
0x10d0   :  { %v3654_v39 = vrot.slane %v3647_v17, %v6795_v61 }
0x10d2   :  { %v3655_v63 = vcombine.high %v3654_v39, %v3654_v39  ;;  %v3662_v15 = vrot.slane %v3654_v39, %v6795_v61 }
0x10d4   :  { %v3669_v12 = vrot.slane %v3655_v63, %v6795_v61  ;;  %v3670_v6 = vcombine.high %v3662_v15, %v3662_v15 }
0x10d6   :  { %v3671_v24 = vcombine.high %v3669_v12, %v3669_v12  ;;  %v3735_v32 = vrot.slane %v3670_v6, %v6259_v62 }
0x10d8   :  { %v3739_v13 = vrot.slane %v3671_v24, %v6259_v62  ;;  %v3758_v25 = vsel %vm3757_vm8, %v3755_v57, %v3735_v32  ;;  %v3791_v34 = vsel %vm3742_vm5, %v3787_v45, %v3735_v32 }
0x10d9   :  { %3761 = vst.msk [vmem:[#allocation8] sm:$0xff] %vm3760_vm9, %v3758_v25 }
0x10da   :  { %3794 = vst.msk [vmem:[%s7141_s10] sm:$0x3] %vm3793_vm10, %v3791_v34  ;;  %v3759_v61 = vsel %vm3757_vm8, %v3756_v18, %v3739_v13  ;;  %v3792_v41 = vsel %vm3742_vm5, %v3788_v37, %v3739_v13 }
0x10db   :  { %3762 = vst.msk [vmem:[#allocation8 + $0x8] sm:$0xff] %vm3760_vm9, %v3759_v61 }
0x10dc   :  { %3795 = vst.msk [vmem:[%s7141_s10 + $0x2] sm:$0x3] %vm3793_vm10, %v3792_v41 }
0x10dd   :  { %5965 = shalt.err (!%p5962_p0)
}
0x10de   :  { %s5966_s2 = scalar_lea.hbm %s7140_s9, 256 }
0x10df   :  { %p5967_p1 = scmp.ne.s32.totalorder %s7140_s9, %s5966_s2  ;;  %p5970_p2 = scmp.lt.u32.totalorder %s5966_s2, %s7140_s9 }
0x10e1   :  { %p5972_p3 = pnand %p5970_p2, %p5967_p1 }
0x10e3   :  { %5975 = shalt.err (!%p5972_p3)
}
0x10e4   :  { %s5994_s10 = smov 128   ;;  %s5995_s26 = smov 8  }
0x10e5   :  { %3807 = dma.vmem_to_hbm [thread:$0]  %s3802_s21, 256, %s7140_s9, [#allocation4], %s5994_s10, %s5994_s10, %s5995_s26  }
0x10e6   :  { %5980 = dma.done.wait [#allocation4], 256  }
0x10e7   :  { %5981 = vsyncadd [#allocation4], 4294967040 }
0x10e8   :  { %3815 = vsyncpa [#allocation3], 1 }
0x10e9   :  { %3816 = vsyncpa [#allocation6], 1 }
0x10ea   :  { %3817 = vsyncpa [#allocation4], 1 }

</bundles_post_ra>
